<compile_context>
chip_gen: v7x
topology: tpu7x:2x2x1
jax: 0.10.0
libtpu: 0.0.40
codegen_flags: <defaults>
</compile_context>

<pallas_src>
import functools

import jax
import jax.numpy as jnp
from jax.experimental import pallas as pl
from jax.experimental.pallas import tpu as pltpu


def _unet_fused_kernel(patches1_ref, w1_ref, b1_ref, w2_ref, b2_ref,
                       wt_ref, bt_ref, w3_ref, b3_ref,
                       o_ref,
                       p1_ref, tflat_ref,
                       *, H, W, PADL, LPAD):
    f32 = jnp.float32
    bf16 = jnp.bfloat16
    C1 = w1_ref.shape[1]            # 64
    C2 = w2_ref.shape[2]            # 128
    C3 = wt_ref.shape[1]            # 64
    HW = H * W

    # ---- halo-only zeroing (interiors are fully overwritten every grid step) ----
    # conv2 reads rows 0..H+1, cols PADL-1..PADL+W of p1; only the 1-wide border of that
    # window is never written by the conv1 store below.  (Do NOT guard with program_id==0:
    # under megacore each core has its own scratch instance.)
    p1_ref[0:1, PADL - 1:PADL + W + 1, :] = jnp.zeros((1, W + 2, C1), bf16)
    p1_ref[H + 1:H + 2, PADL - 1:PADL + W + 1, :] = jnp.zeros((1, W + 2, C1), bf16)
    p1_ref[1:H + 1, PADL - 1:PADL, :] = jnp.zeros((H, 1, C1), bf16)
    p1_ref[1:H + 1, PADL + W:PADL + W + 1, :] = jnp.zeros((H, 1, C1), bf16)
    # Flat tap-contracted planes need one zero "row" (W+1 lanes) on each side so that
    # row-shifted window loads read the conv's zero padding.
    tflat_ref[:, :, LPAD - W - 1:LPAD] = jnp.zeros((4, 9, W + 1), f32)
    tflat_ref[:, :, LPAD + HW:LPAD + HW + W + 1] = jnp.zeros((4, 9, W + 1), f32)

    # ---- encoder conv1: 1 -> C1, 3x3, pad 1, ReLU (tiny im2col GEMM, K = 9*Cin) ----
    h1 = jnp.dot(patches1_ref[0], w1_ref[...], preferred_element_type=f32)
    h1 = jnp.maximum(h1 + b1_ref[...], 0.0)                       # (HW, C1) f32
    p1_ref[1:H + 1, PADL:PADL + W, :] = h1.astype(bf16).reshape(H, W, C1)

    # ---- encoder conv2: C1 -> C2, 3x3, pad 1, ReLU (3 tap-fused GEMMs, K = 3*C1) ----
    acc2 = jnp.zeros((HW, C2), f32)
    for dy in range(3):
        lhs = jnp.concatenate(
            [p1_ref[dy:dy + H, PADL - 1 + dx:PADL - 1 + dx + W, :].reshape(HW, C1)
             for dx in range(3)],
            axis=-1)                                              # (HW, 3*C1) bf16
        acc2 = acc2 + jnp.dot(lhs, w2_ref[dy], preferred_element_type=f32)
    h2 = jnp.maximum(acc2 + b2_ref[...], 0.0)                     # (HW, C2) f32

    # Decoder runs transposed (channels x pixels): one tile-aligned transpose, reused 4x.
    h2t = jnp.transpose(h2).astype(bf16)                          # (C2, HW) bf16

    # ---- decoder ConvT (k=2, s=2) + MXU tap pre-contraction of the final conv ----
    # Phase k = ki*2+kj: y_k = relu(Wt_k @ h2^T + bt) is the ConvT output at pixels
    # (2i+ki, 2j+kj); t_k[tap, s] = sum_c w3[tap, c] * y_k[c, s] are the 9 per-tap
    # contracted planes (the full 2x-upsampled image is never materialized).
    for k in range(4):
        yt = jnp.dot(wt_ref[k], h2t, preferred_element_type=f32)  # (C3, HW) f32
        yt = jnp.maximum(yt + bt_ref[...], 0.0)
        tt = jnp.dot(w3_ref[...], yt.astype(bf16),
                     preferred_element_type=f32)                  # (9, HW) f32
        tflat_ref[k, :, LPAD:LPAD + HW] = tt

    # ---- final 3x3 conv + sigmoid: 9 shifted, masked lane-vector adds per parity ----
    col = jax.lax.broadcasted_iota(jnp.int32, (1, HW), 1) % W
    mask_m1 = (col >= 1).astype(f32)        # column valid for a -1 column shift
    mask_p1 = (col <= W - 2).astype(f32)    # column valid for a +1 column shift
    rows = []
    for pa in range(2):
        for qa in range(2):
            acc = jnp.zeros((1, HW), f32)
            for dy in range(3):
                for dx in range(3):
                    e = pa + dy - 1
                    fq = qa + dx - 1
                    k = (e % 2) * 2 + (fq % 2)   # source phase plane
                    sr = e // 2                  # row shift within the plane
                    sc = fq // 2                 # col shift within the plane
                    start = LPAD + sr * W + sc
                    v = tflat_ref[k, dy * 3 + dx, start:start + HW].reshape(1, HW)
                    if sc == -1:
                        v = v * mask_m1
                    elif sc == 1:
                        v = v * mask_p1
                    acc = acc + v
            rows.append(acc)
    pre = jnp.concatenate(rows, axis=0) + b3_ref[...]             # (4, HW) f32
    o_ref[0] = pl.reciprocal(1.0 + jnp.exp(-pre), approx=True)    # lane-dense store


def unet_forward(x_nchw, params):
    N, Cin, H, W = x_nchw.shape
    C1 = params["w1"].shape[0]                                    # 64
    C2 = params["w2"].shape[0]                                    # 128
    C3 = params["wt"].shape[1]                                    # 64
    HW = H * W
    PADL = 8                                  # sublane-aligned interior of conv2 scratch
    Wp = PADL + W + PADL
    LPAD = 128                                # lane-aligned interior of flat tap planes
    TLEN = ((LPAD + HW + W + 1) + 127) // 128 * 128
    bf16 = jnp.bfloat16

    # Layer-1 im2col in plain JAX (Cin=1 -> ~9 KB in bf16; everything else stays in VMEM).
    x_nhwc = jnp.transpose(x_nchw, (0, 2, 3, 1))
    xp = jnp.pad(x_nhwc, ((0, 0), (1, 1), (1, 1), (0, 0)))
    cols = [xp[:, dy:dy + H, dx:dx + W, :] for dy in range(3) for dx in range(3)]
    patches1 = jnp.concatenate(cols, axis=-1).reshape(N, HW, 9 * Cin).astype(bf16)

    # Repack torch weight layouts for the in-kernel GEMMs (bf16 weights, f32 biases).
    w1 = jnp.transpose(params["w1"], (2, 3, 1, 0)).reshape(9 * Cin, C1).astype(bf16)
    b1 = params["b1"].reshape(1, C1).astype(jnp.float32)
    w2 = jnp.transpose(params["w2"], (2, 3, 1, 0)).reshape(3, 3 * C1, C2).astype(bf16)
    b2 = params["b2"].reshape(1, C2).astype(jnp.float32)
    wt = jnp.transpose(params["wt"], (2, 3, 1, 0)).reshape(4, C3, C2).astype(bf16)
    bt = params["bt"].reshape(C3, 1).astype(jnp.float32)
    w3 = jnp.transpose(params["w3"], (2, 3, 1, 0)).reshape(9, C3).astype(bf16)
    b3 = params["b3"].reshape(1, 1).astype(jnp.float32)

    kernel = functools.partial(_unet_fused_kernel, H=H, W=W, PADL=PADL, LPAD=LPAD)

    out_phase = pl.pallas_call(
        kernel,
        out_shape=jax.ShapeDtypeStruct((N, 4, HW), jnp.float32),
        grid_spec=pltpu.PrefetchScalarGridSpec(
            num_scalar_prefetch=0,
            grid=(N,),
            in_specs=[
                pl.BlockSpec((1, HW, 9 * Cin), lambda n: (n, 0, 0)),
                pl.BlockSpec((9 * Cin, C1), lambda n: (0, 0)),
                pl.BlockSpec((1, C1), lambda n: (0, 0)),
                pl.BlockSpec((3, 3 * C1, C2), lambda n: (0, 0, 0)),
                pl.BlockSpec((1, C2), lambda n: (0, 0)),
                pl.BlockSpec((4, C3, C2), lambda n: (0, 0, 0)),
                pl.BlockSpec((C3, 1), lambda n: (0, 0)),
                pl.BlockSpec((9, C3), lambda n: (0, 0)),
                pl.BlockSpec((1, 1), lambda n: (0, 0)),
            ],
            out_specs=pl.BlockSpec((1, 4, HW), lambda n: (n, 0, 0)),
            scratch_shapes=[
                pltpu.VMEM((H + 2, Wp, C1), jnp.bfloat16),    # padded conv2 input (bf16)
                pltpu.VMEM((4, 9, TLEN), jnp.float32),        # flat tap-contracted planes
            ],
        ),
        compiler_params=pltpu.CompilerParams(
            dimension_semantics=("parallel",),
        ),
    )(patches1, w1, b1, w2, b2, wt, bt, w3, b3)

    # Tiny parity de-interleave of the 1-channel output: (N,4,HW) -> (N,1,2H,2W).
    out = out_phase.reshape(N, 2, 2, H, W)                       # (n, pa, qa, a, b)
    out = jnp.transpose(out, (0, 3, 1, 4, 2)).reshape(N, 1, 2 * H, 2 * W)
    return out


def unet_reference(x_nchw, params):
    """Pure-JAX (lax.conv / einsum) reference for numerical verification."""
    x = jnp.transpose(x_nchw, (0, 2, 3, 1))

    def conv(x, w, b):
        w_hwio = jnp.transpose(w, (2, 3, 1, 0))
        y = jax.lax.conv_general_dilated(
            x, w_hwio, window_strides=(1, 1), padding="SAME",
            dimension_numbers=("NHWC", "HWIO", "NHWC"))
        return y + b

    x = jnp.maximum(conv(x, params["w1"], params["b1"]), 0.0)
    x = jnp.maximum(conv(x, params["w2"], params["b2"]), 0.0)
    N, H, W, _ = x.shape
    wt = params["wt"]                                            # (Cin, Cout, 2, 2)
    y = jnp.einsum("nhwc,coyx->nhywxo", x, wt)
    y = y.reshape(N, 2 * H, 2 * W, wt.shape[1]) + params["bt"]
    x = jnp.maximum(y, 0.0)
    x = jax.nn.sigmoid(conv(x, params["w3"], params["b3"]))
    return jnp.transpose(x, (0, 3, 1, 2))


if __name__ == "__main__":
    key = jax.random.PRNGKey(0)
    ks = jax.random.split(key, 9)
    # Deterministic synthetic parameters (shapes from UNet.__init__, torch layouts).
    params = {
        "w1": jax.random.normal(ks[0], (64, 1, 3, 3), jnp.float32) * 0.2,
        "b1": jax.random.normal(ks[1], (64,), jnp.float32) * 0.1,
        "w2": jax.random.normal(ks[2], (128, 64, 3, 3), jnp.float32) * 0.05,
        "b2": jax.random.normal(ks[3], (128,), jnp.float32) * 0.1,
        "wt": jax.random.normal(ks[4], (128, 64, 2, 2), jnp.float32) * 0.05,
        "bt": jax.random.normal(ks[5], (64,), jnp.float32) * 0.1,
        "w3": jax.random.normal(ks[6], (1, 64, 3, 3), jnp.float32) * 0.05,
        "b3": jax.random.normal(ks[7], (1,), jnp.float32) * 0.1,
    }
    x = jax.random.normal(ks[8], (2, 1, 16, 16), jnp.float32)     # NCHW, 1 input channel

    out = jax.block_until_ready(jax.jit(unet_forward)(x, params))
    assert out.shape == (2, 1, 32, 32), out.shape

    ref = jax.block_until_ready(jax.jit(unet_reference)(x, params))
    max_err = float(jnp.max(jnp.abs(out - ref)))
    # Tolerance covers bf16 operand/activation storage, single-pass bf16 MXU (default
    # precision) across 4 chained GEMM stages, and the approx-reciprocal sigmoid.
    assert max_err < 1e-2, max_err

    print("KERNEL_OK")
</pallas_src>

<mosaic_0001>
module attributes {stable_mosaic.version = 11 : i64} {
  func.func @_unet_fused_kernel(%arg0: i32, %arg1: memref<1x256x9xbf16, #tpu.memory_space<vmem>>, %arg2: memref<9x64xbf16, #tpu.memory_space<vmem>>, %arg3: memref<1x64xf32, #tpu.memory_space<vmem>>, %arg4: memref<3x192x128xbf16, #tpu.memory_space<vmem>>, %arg5: memref<1x128xf32, #tpu.memory_space<vmem>>, %arg6: memref<4x64x128xbf16, #tpu.memory_space<vmem>>, %arg7: memref<64x1xf32, #tpu.memory_space<vmem>>, %arg8: memref<9x64xbf16, #tpu.memory_space<vmem>>, %arg9: memref<1x1xf32, #tpu.memory_space<vmem>>, %arg10: memref<1x4x256xf32, #tpu.memory_space<vmem>>, %arg11: memref<18x32x64xbf16, #tpu.memory_space<vmem>>, %arg12: memref<4x9x512xf32, #tpu.memory_space<vmem>>) attributes {dimension_semantics = [#tpu.dimension_semantics<parallel>], iteration_bounds = array<i64: 2>, scalar_prefetch = 0 : i64, scratch_operands = 2 : i64, tpu.core_type = #tpu.core_type<tc>, window_params = [{transform_indices = @transform_0, window_bounds = array<i64: 1, 256, 9>}, {pipeline_mode = #tpu.pipeline_mode<synchronous>, transform_indices = @transform_1, window_bounds = array<i64: 9, 64>}, {pipeline_mode = #tpu.pipeline_mode<synchronous>, transform_indices = @transform_2, window_bounds = array<i64: 1, 64>}, {pipeline_mode = #tpu.pipeline_mode<synchronous>, transform_indices = @transform_3, window_bounds = array<i64: 3, 192, 128>}, {pipeline_mode = #tpu.pipeline_mode<synchronous>, transform_indices = @transform_4, window_bounds = array<i64: 1, 128>}, {pipeline_mode = #tpu.pipeline_mode<synchronous>, transform_indices = @transform_5, window_bounds = array<i64: 4, 64, 128>}, {pipeline_mode = #tpu.pipeline_mode<synchronous>, transform_indices = @transform_6, window_bounds = array<i64: 64, 1>}, {pipeline_mode = #tpu.pipeline_mode<synchronous>, transform_indices = @transform_7, window_bounds = array<i64: 9, 64>}, {pipeline_mode = #tpu.pipeline_mode<synchronous>, transform_indices = @transform_8, window_bounds = array<i64: 1, 1>}, {transform_indices = @transform_9, window_bounds = array<i64: 1, 4, 256>}]} {
    %cst = arith.constant 0.000000e+00 : bf16
    %0 = vector.broadcast %cst : bf16 to vector<1x18x64xbf16>
    %c0 = arith.constant 0 : index
    %c7 = arith.constant 7 : index
    %c0_0 = arith.constant 0 : index
    %1 = vector.load %arg11[%c0, %c7, %c0_0] : memref<18x32x64xbf16, #tpu.memory_space<vmem>>, vector<1x18x64xbf16>
    tpu.vector_store %arg11[%c0, %c7, %c0_0], %0 {strides = array<i32>} : memref<18x32x64xbf16, #tpu.memory_space<vmem>>, vector<1x18x64xbf16>,
    %cst_1 = arith.constant 0.000000e+00 : bf16
    %2 = vector.broadcast %cst_1 : bf16 to vector<1x18x64xbf16>
    %c17 = arith.constant 17 : index
    %c7_2 = arith.constant 7 : index
    %c0_3 = arith.constant 0 : index
    %3 = vector.load %arg11[%c17, %c7_2, %c0_3] : memref<18x32x64xbf16, #tpu.memory_space<vmem>>, vector<1x18x64xbf16>
    tpu.vector_store %arg11[%c17, %c7_2, %c0_3], %2 {strides = array<i32>} : memref<18x32x64xbf16, #tpu.memory_space<vmem>>, vector<1x18x64xbf16>,
    %cst_4 = arith.constant 0.000000e+00 : bf16
    %4 = vector.broadcast %cst_4 : bf16 to vector<16x1x64xbf16>
    %c1 = arith.constant 1 : index
    %c7_5 = arith.constant 7 : index
    %c0_6 = arith.constant 0 : index
    %5 = vector.load %arg11[%c1, %c7_5, %c0_6] : memref<18x32x64xbf16, #tpu.memory_space<vmem>>, vector<16x1x64xbf16>
    tpu.vector_store %arg11[%c1, %c7_5, %c0_6], %4 {strides = array<i32>} : memref<18x32x64xbf16, #tpu.memory_space<vmem>>, vector<16x1x64xbf16>,
    %cst_7 = arith.constant 0.000000e+00 : bf16
    %6 = vector.broadcast %cst_7 : bf16 to vector<16x1x64xbf16>
    %c1_8 = arith.constant 1 : index
    %c24 = arith.constant 24 : index
    %c0_9 = arith.constant 0 : index
    %7 = vector.load %arg11[%c1_8, %c24, %c0_9] : memref<18x32x64xbf16, #tpu.memory_space<vmem>>, vector<16x1x64xbf16>
    tpu.vector_store %arg11[%c1_8, %c24, %c0_9], %6 {strides = array<i32>} : memref<18x32x64xbf16, #tpu.memory_space<vmem>>, vector<16x1x64xbf16>,
    %cst_10 = arith.constant 0.000000e+00 : f32
    %8 = vector.broadcast %cst_10 : f32 to vector<4x9x17xf32>
    %c0_11 = arith.constant 0 : index
    %c0_12 = arith.constant 0 : index
    %c111 = arith.constant 111 : index
    %9 = vector.load %arg12[%c0_11, %c0_12, %c111] : memref<4x9x512xf32, #tpu.memory_space<vmem>>, vector<4x9x17xf32>
    tpu.vector_store %arg12[%c0_11, %c0_12, %c111], %8 {strides = array<i32>} : memref<4x9x512xf32, #tpu.memory_space<vmem>>, vector<4x9x17xf32>,
    %cst_13 = arith.constant 0.000000e+00 : f32
    %10 = vector.broadcast %cst_13 : f32 to vector<4x9x17xf32>
    %c0_14 = arith.constant 0 : index
    %c0_15 = arith.constant 0 : index
    %c384 = arith.constant 384 : index
    %11 = vector.load %arg12[%c0_14, %c0_15, %c384] : memref<4x9x512xf32, #tpu.memory_space<vmem>>, vector<4x9x17xf32>
    tpu.vector_store %arg12[%c0_14, %c0_15, %c384], %10 {strides = array<i32>} : memref<4x9x512xf32, #tpu.memory_space<vmem>>, vector<4x9x17xf32>,
    %c0_16 = arith.constant 0 : index
    %c0_17 = arith.constant 0 : index
    %c0_18 = arith.constant 0 : index
    %12 = vector.load %arg1[%c0_16, %c0_17, %c0_18] : memref<1x256x9xbf16, #tpu.memory_space<vmem>>, vector<1x256x9xbf16>
    %13 = vector.shape_cast %12 : vector<1x256x9xbf16> to vector<256x9xbf16>
    %c0_19 = arith.constant 0 : index
    %c0_20 = arith.constant 0 : index
    %14 = vector.load %arg2[%c0_19, %c0_20] : memref<9x64xbf16, #tpu.memory_space<vmem>>, vector<9x64xbf16>
    %cst_21 = arith.constant dense<0.000000e+00> : vector<256x64xf32>
    %15 = tpu.matmul %13, %14, %cst_21 {dimension_numbers = #tpu.dot_dimension_numbers<[1], [0], [0], [1], [0, 0, 1, 1], [], []>} : vector<256x9xbf16>, vector<9x64xbf16>, vector<256x64xf32> -> vector<256x64xf32>
    %c0_22 = arith.constant 0 : index
    %c0_23 = arith.constant 0 : index
    %16 = vector.load %arg3[%c0_22, %c0_23] : memref<1x64xf32, #tpu.memory_space<vmem>>, vector<1x64xf32>
    %17 = vector.broadcast %16 : vector<1x64xf32> to vector<256x64xf32>
    %18 = arith.addf %15, %17 : vector<256x64xf32>
    %cst_24 = arith.constant 0.000000e+00 : f32
    %19 = vector.broadcast %cst_24 : f32 to vector<256x64xf32>
    %20 = arith.maximumf %18, %19 : vector<256x64xf32>
    %21 = arith.truncf %20 : vector<256x64xf32> to vector<256x64xbf16>
    %22 = vector.shape_cast %21 : vector<256x64xbf16> to vector<16x16x64xbf16>
    %c1_25 = arith.constant 1 : index
    %c8 = arith.constant 8 : index
    %c0_26 = arith.constant 0 : index
    %23 = vector.load %arg11[%c1_25, %c8, %c0_26] : memref<18x32x64xbf16, #tpu.memory_space<vmem>>, vector<16x16x64xbf16>
    tpu.vector_store %arg11[%c1_25, %c8, %c0_26], %22 {strides = array<i32>} : memref<18x32x64xbf16, #tpu.memory_space<vmem>>, vector<16x16x64xbf16>,
    %cst_27 = arith.constant 0.000000e+00 : f32
    %24 = vector.broadcast %cst_27 : f32 to vector<256x128xf32>
    %c0_28 = arith.constant 0 : index
    %c7_29 = arith.constant 7 : index
    %c0_30 = arith.constant 0 : index
    %25 = vector.load %arg11[%c0_28, %c7_29, %c0_30] : memref<18x32x64xbf16, #tpu.memory_space<vmem>>, vector<16x16x64xbf16>
    %26 = vector.shape_cast %25 : vector<16x16x64xbf16> to vector<256x64xbf16>
    %c0_31 = arith.constant 0 : index
    %c8_32 = arith.constant 8 : index
    %c0_33 = arith.constant 0 : index
    %27 = vector.load %arg11[%c0_31, %c8_32, %c0_33] : memref<18x32x64xbf16, #tpu.memory_space<vmem>>, vector<16x16x64xbf16>
    %28 = vector.shape_cast %27 : vector<16x16x64xbf16> to vector<256x64xbf16>
    %c0_34 = arith.constant 0 : index
    %c9 = arith.constant 9 : index
    %c0_35 = arith.constant 0 : index
    %29 = vector.load %arg11[%c0_34, %c9, %c0_35] : memref<18x32x64xbf16, #tpu.memory_space<vmem>>, vector<16x16x64xbf16>
    %30 = vector.shape_cast %29 : vector<16x16x64xbf16> to vector<256x64xbf16>
    %31 = tpu.concatenate %26, %28, %30 in 1 : vector<256x64xbf16>, vector<256x64xbf16>, vector<256x64xbf16> -> vector<256x192xbf16>
    %c0_36 = arith.constant 0 : index
    %c0_37 = arith.constant 0 : index
    %c0_38 = arith.constant 0 : index
    %32 = vector.load %arg4[%c0_36, %c0_37, %c0_38] : memref<3x192x128xbf16, #tpu.memory_space<vmem>>, vector<1x192x128xbf16>
    %33 = vector.shape_cast %32 : vector<1x192x128xbf16> to vector<192x128xbf16>
    %cst_39 = arith.constant dense<0.000000e+00> : vector<256x128xf32>
    %34 = tpu.matmul %31, %33, %cst_39 {dimension_numbers = #tpu.dot_dimension_numbers<[1], [0], [0], [1], [0, 0, 1, 1], [], []>} : vector<256x192xbf16>, vector<192x128xbf16>, vector<256x128xf32> -> vector<256x128xf32>
    %35 = arith.addf %24, %34 : vector<256x128xf32>
    %c1_40 = arith.constant 1 : index
    %c7_41 = arith.constant 7 : index
    %c0_42 = arith.constant 0 : index
    %36 = vector.load %arg11[%c1_40, %c7_41, %c0_42] : memref<18x32x64xbf16, #tpu.memory_space<vmem>>, vector<16x16x64xbf16>
    %37 = vector.shape_cast %36 : vector<16x16x64xbf16> to vector<256x64xbf16>
    %c1_43 = arith.constant 1 : index
    %c8_44 = arith.constant 8 : index
    %c0_45 = arith.constant 0 : index
    %38 = vector.load %arg11[%c1_43, %c8_44, %c0_45] : memref<18x32x64xbf16, #tpu.memory_space<vmem>>, vector<16x16x64xbf16>
    %39 = vector.shape_cast %38 : vector<16x16x64xbf16> to vector<256x64xbf16>
    %c1_46 = arith.constant 1 : index
    %c9_47 = arith.constant 9 : index
    %c0_48 = arith.constant 0 : index
    %40 = vector.load %arg11[%c1_46, %c9_47, %c0_48] : memref<18x32x64xbf16, #tpu.memory_space<vmem>>, vector<16x16x64xbf16>
    %41 = vector.shape_cast %40 : vector<16x16x64xbf16> to vector<256x64xbf16>
    %42 = tpu.concatenate %37, %39, %41 in 1 : vector<256x64xbf16>, vector<256x64xbf16>, vector<256x64xbf16> -> vector<256x192xbf16>
    %c1_49 = arith.constant 1 : index
    %c0_50 = arith.constant 0 : index
    %c0_51 = arith.constant 0 : index
    %43 = vector.load %arg4[%c1_49, %c0_50, %c0_51] : memref<3x192x128xbf16, #tpu.memory_space<vmem>>, vector<1x192x128xbf16>
    %44 = vector.shape_cast %43 : vector<1x192x128xbf16> to vector<192x128xbf16>
    %cst_52 = arith.constant dense<0.000000e+00> : vector<256x128xf32>
    %45 = tpu.matmul %42, %44, %cst_52 {dimension_numbers = #tpu.dot_dimension_numbers<[1], [0], [0], [1], [0, 0, 1, 1], [], []>} : vector<256x192xbf16>, vector<192x128xbf16>, vector<256x128xf32> -> vector<256x128xf32>
    %46 = arith.addf %35, %45 : vector<256x128xf32>
    %c2 = arith.constant 2 : index
    %c7_53 = arith.constant 7 : index
    %c0_54 = arith.constant 0 : index
    %47 = vector.load %arg11[%c2, %c7_53, %c0_54] : memref<18x32x64xbf16, #tpu.memory_space<vmem>>, vector<16x16x64xbf16>
    %48 = vector.shape_cast %47 : vector<16x16x64xbf16> to vector<256x64xbf16>
    %c2_55 = arith.constant 2 : index
    %c8_56 = arith.constant 8 : index
    %c0_57 = arith.constant 0 : index
    %49 = vector.load %arg11[%c2_55, %c8_56, %c0_57] : memref<18x32x64xbf16, #tpu.memory_space<vmem>>, vector<16x16x64xbf16>
    %50 = vector.shape_cast %49 : vector<16x16x64xbf16> to vector<256x64xbf16>
    %c2_58 = arith.constant 2 : index
    %c9_59 = arith.constant 9 : index
    %c0_60 = arith.constant 0 : index
    %51 = vector.load %arg11[%c2_58, %c9_59, %c0_60] : memref<18x32x64xbf16, #tpu.memory_space<vmem>>, vector<16x16x64xbf16>
    %52 = vector.shape_cast %51 : vector<16x16x64xbf16> to vector<256x64xbf16>
    %53 = tpu.concatenate %48, %50, %52 in 1 : vector<256x64xbf16>, vector<256x64xbf16>, vector<256x64xbf16> -> vector<256x192xbf16>
    %c2_61 = arith.constant 2 : index
    %c0_62 = arith.constant 0 : index
    %c0_63 = arith.constant 0 : index
    %54 = vector.load %arg4[%c2_61, %c0_62, %c0_63] : memref<3x192x128xbf16, #tpu.memory_space<vmem>>, vector<1x192x128xbf16>
    %55 = vector.shape_cast %54 : vector<1x192x128xbf16> to vector<192x128xbf16>
    %cst_64 = arith.constant dense<0.000000e+00> : vector<256x128xf32>
    %56 = tpu.matmul %53, %55, %cst_64 {dimension_numbers = #tpu.dot_dimension_numbers<[1], [0], [0], [1], [0, 0, 1, 1], [], []>} : vector<256x192xbf16>, vector<192x128xbf16>, vector<256x128xf32> -> vector<256x128xf32>
    %57 = arith.addf %46, %56 : vector<256x128xf32>
    %c0_65 = arith.constant 0 : index
    %c0_66 = arith.constant 0 : index
    %58 = vector.load %arg5[%c0_65, %c0_66] : memref<1x128xf32, #tpu.memory_space<vmem>>, vector<1x128xf32>
    %59 = vector.broadcast %58 : vector<1x128xf32> to vector<256x128xf32>
    %60 = arith.addf %57, %59 : vector<256x128xf32>
    %cst_67 = arith.constant 0.000000e+00 : f32
    %61 = vector.broadcast %cst_67 : f32 to vector<256x128xf32>
    %62 = arith.maximumf %60, %61 : vector<256x128xf32>
    %63 = tpu.transpose %62, [1, 0] : vector<256x128xf32> -> vector<128x256xf32>
    %64 = arith.truncf %63 : vector<128x256xf32> to vector<128x256xbf16>
    %c0_68 = arith.constant 0 : index
    %c0_69 = arith.constant 0 : index
    %c0_70 = arith.constant 0 : index
    %65 = vector.load %arg6[%c0_68, %c0_69, %c0_70] : memref<4x64x128xbf16, #tpu.memory_space<vmem>>, vector<1x64x128xbf16>
    %66 = vector.shape_cast %65 : vector<1x64x128xbf16> to vector<64x128xbf16>
    %cst_71 = arith.constant dense<0.000000e+00> : vector<64x256xf32>
    %67 = tpu.matmul %66, %64, %cst_71 {dimension_numbers = #tpu.dot_dimension_numbers<[1], [0], [0], [1], [0, 0, 1, 1], [], []>} : vector<64x128xbf16>, vector<128x256xbf16>, vector<64x256xf32> -> vector<64x256xf32>
    %c0_72 = arith.constant 0 : index
    %c0_73 = arith.constant 0 : index
    %68 = vector.load %arg7[%c0_72, %c0_73] : memref<64x1xf32, #tpu.memory_space<vmem>>, vector<64x1xf32>
    %69 = vector.broadcast %68 : vector<64x1xf32> to vector<64x256xf32>
    %70 = arith.addf %67, %69 : vector<64x256xf32>
    %cst_74 = arith.constant 0.000000e+00 : f32
    %71 = vector.broadcast %cst_74 : f32 to vector<64x256xf32>
    %72 = arith.maximumf %70, %71 : vector<64x256xf32>
    %c0_75 = arith.constant 0 : index
    %c0_76 = arith.constant 0 : index
    %73 = vector.load %arg8[%c0_75, %c0_76] : memref<9x64xbf16, #tpu.memory_space<vmem>>, vector<9x64xbf16>
    %74 = arith.truncf %72 : vector<64x256xf32> to vector<64x256xbf16>
    %cst_77 = arith.constant dense<0.000000e+00> : vector<9x256xf32>
    %75 = tpu.matmul %73, %74, %cst_77 {dimension_numbers = #tpu.dot_dimension_numbers<[1], [0], [0], [1], [0, 0, 1, 1], [], []>} : vector<9x64xbf16>, vector<64x256xbf16>, vector<9x256xf32> -> vector<9x256xf32>
    %c0_78 = arith.constant 0 : index
    %c0_79 = arith.constant 0 : index
    %c128 = arith.constant 128 : index
    %76 = vector.load %arg12[%c0_78, %c0_79, %c128] : memref<4x9x512xf32, #tpu.memory_space<vmem>>, vector<1x9x256xf32>
    %77 = vector.shape_cast %76 : vector<1x9x256xf32> to vector<9x256xf32>
    %78 = vector.shape_cast %75 : vector<9x256xf32> to vector<1x9x256xf32>
    tpu.vector_store %arg12[%c0_78, %c0_79, %c128], %78 {strides = array<i32>} : memref<4x9x512xf32, #tpu.memory_space<vmem>>, vector<1x9x256xf32>,
    %c1_80 = arith.constant 1 : index
    %c0_81 = arith.constant 0 : index
    %c0_82 = arith.constant 0 : index
    %79 = vector.load %arg6[%c1_80, %c0_81, %c0_82] : memref<4x64x128xbf16, #tpu.memory_space<vmem>>, vector<1x64x128xbf16>
    %80 = vector.shape_cast %79 : vector<1x64x128xbf16> to vector<64x128xbf16>
    %cst_83 = arith.constant dense<0.000000e+00> : vector<64x256xf32>
    %81 = tpu.matmul %80, %64, %cst_83 {dimension_numbers = #tpu.dot_dimension_numbers<[1], [0], [0], [1], [0, 0, 1, 1], [], []>} : vector<64x128xbf16>, vector<128x256xbf16>, vector<64x256xf32> -> vector<64x256xf32>
    %c0_84 = arith.constant 0 : index
    %c0_85 = arith.constant 0 : index
    %82 = vector.load %arg7[%c0_84, %c0_85] : memref<64x1xf32, #tpu.memory_space<vmem>>, vector<64x1xf32>
    %83 = vector.broadcast %82 : vector<64x1xf32> to vector<64x256xf32>
    %84 = arith.addf %81, %83 : vector<64x256xf32>
    %cst_86 = arith.constant 0.000000e+00 : f32
    %85 = vector.broadcast %cst_86 : f32 to vector<64x256xf32>
    %86 = arith.maximumf %84, %85 : vector<64x256xf32>
    %c0_87 = arith.constant 0 : index
    %c0_88 = arith.constant 0 : index
    %87 = vector.load %arg8[%c0_87, %c0_88] : memref<9x64xbf16, #tpu.memory_space<vmem>>, vector<9x64xbf16>
    %88 = arith.truncf %86 : vector<64x256xf32> to vector<64x256xbf16>
    %cst_89 = arith.constant dense<0.000000e+00> : vector<9x256xf32>
    %89 = tpu.matmul %87, %88, %cst_89 {dimension_numbers = #tpu.dot_dimension_numbers<[1], [0], [0], [1], [0, 0, 1, 1], [], []>} : vector<9x64xbf16>, vector<64x256xbf16>, vector<9x256xf32> -> vector<9x256xf32>
    %c1_90 = arith.constant 1 : index
    %c0_91 = arith.constant 0 : index
    %c128_92 = arith.constant 128 : index
    %90 = vector.load %arg12[%c1_90, %c0_91, %c128_92] : memref<4x9x512xf32, #tpu.memory_space<vmem>>, vector<1x9x256xf32>
    %91 = vector.shape_cast %90 : vector<1x9x256xf32> to vector<9x256xf32>
    %92 = vector.shape_cast %89 : vector<9x256xf32> to vector<1x9x256xf32>
    tpu.vector_store %arg12[%c1_90, %c0_91, %c128_92], %92 {strides = array<i32>} : memref<4x9x512xf32, #tpu.memory_space<vmem>>, vector<1x9x256xf32>,
    %c2_93 = arith.constant 2 : index
    %c0_94 = arith.constant 0 : index
    %c0_95 = arith.constant 0 : index
    %93 = vector.load %arg6[%c2_93, %c0_94, %c0_95] : memref<4x64x128xbf16, #tpu.memory_space<vmem>>, vector<1x64x128xbf16>
    %94 = vector.shape_cast %93 : vector<1x64x128xbf16> to vector<64x128xbf16>
    %cst_96 = arith.constant dense<0.000000e+00> : vector<64x256xf32>
    %95 = tpu.matmul %94, %64, %cst_96 {dimension_numbers = #tpu.dot_dimension_numbers<[1], [0], [0], [1], [0, 0, 1, 1], [], []>} : vector<64x128xbf16>, vector<128x256xbf16>, vector<64x256xf32> -> vector<64x256xf32>
    %c0_97 = arith.constant 0 : index
    %c0_98 = arith.constant 0 : index
    %96 = vector.load %arg7[%c0_97, %c0_98] : memref<64x1xf32, #tpu.memory_space<vmem>>, vector<64x1xf32>
    %97 = vector.broadcast %96 : vector<64x1xf32> to vector<64x256xf32>
    %98 = arith.addf %95, %97 : vector<64x256xf32>
    %cst_99 = arith.constant 0.000000e+00 : f32
    %99 = vector.broadcast %cst_99 : f32 to vector<64x256xf32>
    %100 = arith.maximumf %98, %99 : vector<64x256xf32>
    %c0_100 = arith.constant 0 : index
    %c0_101 = arith.constant 0 : index
    %101 = vector.load %arg8[%c0_100, %c0_101] : memref<9x64xbf16, #tpu.memory_space<vmem>>, vector<9x64xbf16>
    %102 = arith.truncf %100 : vector<64x256xf32> to vector<64x256xbf16>
    %cst_102 = arith.constant dense<0.000000e+00> : vector<9x256xf32>
    %103 = tpu.matmul %101, %102, %cst_102 {dimension_numbers = #tpu.dot_dimension_numbers<[1], [0], [0], [1], [0, 0, 1, 1], [], []>} : vector<9x64xbf16>, vector<64x256xbf16>, vector<9x256xf32> -> vector<9x256xf32>
    %c2_103 = arith.constant 2 : index
    %c0_104 = arith.constant 0 : index
    %c128_105 = arith.constant 128 : index
    %104 = vector.load %arg12[%c2_103, %c0_104, %c128_105] : memref<4x9x512xf32, #tpu.memory_space<vmem>>, vector<1x9x256xf32>
    %105 = vector.shape_cast %104 : vector<1x9x256xf32> to vector<9x256xf32>
    %106 = vector.shape_cast %103 : vector<9x256xf32> to vector<1x9x256xf32>
    tpu.vector_store %arg12[%c2_103, %c0_104, %c128_105], %106 {strides = array<i32>} : memref<4x9x512xf32, #tpu.memory_space<vmem>>, vector<1x9x256xf32>,
    %c3 = arith.constant 3 : index
    %c0_106 = arith.constant 0 : index
    %c0_107 = arith.constant 0 : index
    %107 = vector.load %arg6[%c3, %c0_106, %c0_107] : memref<4x64x128xbf16, #tpu.memory_space<vmem>>, vector<1x64x128xbf16>
    %108 = vector.shape_cast %107 : vector<1x64x128xbf16> to vector<64x128xbf16>
    %cst_108 = arith.constant dense<0.000000e+00> : vector<64x256xf32>
    %109 = tpu.matmul %108, %64, %cst_108 {dimension_numbers = #tpu.dot_dimension_numbers<[1], [0], [0], [1], [0, 0, 1, 1], [], []>} : vector<64x128xbf16>, vector<128x256xbf16>, vector<64x256xf32> -> vector<64x256xf32>
    %c0_109 = arith.constant 0 : index
    %c0_110 = arith.constant 0 : index
    %110 = vector.load %arg7[%c0_109, %c0_110] : memref<64x1xf32, #tpu.memory_space<vmem>>, vector<64x1xf32>
    %111 = vector.broadcast %110 : vector<64x1xf32> to vector<64x256xf32>
    %112 = arith.addf %109, %111 : vector<64x256xf32>
    %cst_111 = arith.constant 0.000000e+00 : f32
    %113 = vector.broadcast %cst_111 : f32 to vector<64x256xf32>
    %114 = arith.maximumf %112, %113 : vector<64x256xf32>
    %c0_112 = arith.constant 0 : index
    %c0_113 = arith.constant 0 : index
    %115 = vector.load %arg8[%c0_112, %c0_113] : memref<9x64xbf16, #tpu.memory_space<vmem>>, vector<9x64xbf16>
    %116 = arith.truncf %114 : vector<64x256xf32> to vector<64x256xbf16>
    %cst_114 = arith.constant dense<0.000000e+00> : vector<9x256xf32>
    %117 = tpu.matmul %115, %116, %cst_114 {dimension_numbers = #tpu.dot_dimension_numbers<[1], [0], [0], [1], [0, 0, 1, 1], [], []>} : vector<9x64xbf16>, vector<64x256xbf16>, vector<9x256xf32> -> vector<9x256xf32>
    %c3_115 = arith.constant 3 : index
    %c0_116 = arith.constant 0 : index
    %c128_117 = arith.constant 128 : index
    %118 = vector.load %arg12[%c3_115, %c0_116, %c128_117] : memref<4x9x512xf32, #tpu.memory_space<vmem>>, vector<1x9x256xf32>
    %119 = vector.shape_cast %118 : vector<1x9x256xf32> to vector<9x256xf32>
    %120 = vector.shape_cast %117 : vector<9x256xf32> to vector<1x9x256xf32>
    tpu.vector_store %arg12[%c3_115, %c0_116, %c128_117], %120 {strides = array<i32>} : memref<4x9x512xf32, #tpu.memory_space<vmem>>, vector<1x9x256xf32>,
    %121 = tpu.iota {dimensions = array<i32: 1>} : vector<1x256xi32>
    %c16_i32 = arith.constant 16 : i32
    %c0_i32 = arith.constant 0 : i32
    %122 = arith.cmpi eq, %c16_i32, %c0_i32 : i32
    %c1_i32 = arith.constant 1 : i32
    %123 = arith.select %122, %c1_i32, %c16_i32 : i32
    %124 = vector.broadcast %123 : i32 to vector<1x256xi32>
    %125 = arith.remsi %121, %124 : vector<1x256xi32>
    %c0_i32_118 = arith.constant 0 : i32
    %126 = vector.broadcast %c0_i32_118 : i32 to vector<1x256xi32>
    %127 = arith.cmpi ne, %125, %126 : vector<1x256xi32>
    %c0_i32_119 = arith.constant 0 : i32
    %128 = vector.broadcast %c0_i32_119 : i32 to vector<1x256xi32>
    %129 = arith.cmpi slt, %125, %128 : vector<1x256xi32>
    %c0_i32_120 = arith.constant 0 : i32
    %130 = arith.cmpi slt, %123, %c0_i32_120 : i32
    %131 = vector.broadcast %130 : i1 to vector<1x256xi1>
    %132 = vector.broadcast %131 : vector<1x256xi1> to vector<1x256xi1>
    %133 = arith.xori %129, %132 : vector<1x256xi1>
    %134 = arith.andi %133, %127 : vector<1x256xi1>
    %135 = vector.broadcast %123 : i32 to vector<1x256xi32>
    %136 = arith.addi %125, %135 : vector<1x256xi32>
    %137 = arith.select %134, %136, %125 : vector<1x256xi1>, vector<1x256xi32>
    %c1_i32_121 = arith.constant 1 : i32
    %138 = vector.broadcast %c1_i32_121 : i32 to vector<1x256xi32>
    %139 = arith.cmpi sge, %137, %138 : vector<1x256xi32>
    %140 = arith.extui %139 : vector<1x256xi1> to vector<1x256xi32>
    %141 = arith.sitofp %140 : vector<1x256xi32> to vector<1x256xf32>
    %c14_i32 = arith.constant 14 : i32
    %142 = vector.broadcast %c14_i32 : i32 to vector<1x256xi32>
    %143 = arith.cmpi sle, %137, %142 : vector<1x256xi32>
    %144 = arith.extui %143 : vector<1x256xi1> to vector<1x256xi32>
    %145 = arith.sitofp %144 : vector<1x256xi32> to vector<1x256xf32>
    %cst_122 = arith.constant 0.000000e+00 : f32
    %146 = vector.broadcast %cst_122 : f32 to vector<1x256xf32>
    %c3_123 = arith.constant 3 : index
    %c0_124 = arith.constant 0 : index
    %c111_125 = arith.constant 111 : index
    %147 = vector.load %arg12[%c3_123, %c0_124, %c111_125] : memref<4x9x512xf32, #tpu.memory_space<vmem>>, vector<1x1x256xf32>
    %148 = vector.shape_cast %147 : vector<1x1x256xf32> to vector<256xf32>
    %149 = vector.shape_cast %148 : vector<256xf32> to vector<1x256xf32>
    %150 = arith.mulf %149, %141 : vector<1x256xf32>
    %151 = arith.addf %146, %150 : vector<1x256xf32>
    %c2_126 = arith.constant 2 : index
    %c1_127 = arith.constant 1 : index
    %c112 = arith.constant 112 : index
    %152 = vector.load %arg12[%c2_126, %c1_127, %c112] : memref<4x9x512xf32, #tpu.memory_space<vmem>>, vector<1x1x256xf32>
    %153 = vector.shape_cast %152 : vector<1x1x256xf32> to vector<256xf32>
    %154 = vector.shape_cast %153 : vector<256xf32> to vector<1x256xf32>
    %155 = arith.addf %151, %154 : vector<1x256xf32>
    %c3_128 = arith.constant 3 : index
    %c2_129 = arith.constant 2 : index
    %c112_130 = arith.constant 112 : index
    %156 = vector.load %arg12[%c3_128, %c2_129, %c112_130] : memref<4x9x512xf32, #tpu.memory_space<vmem>>, vector<1x1x256xf32>
    %157 = vector.shape_cast %156 : vector<1x1x256xf32> to vector<256xf32>
    %158 = vector.shape_cast %157 : vector<256xf32> to vector<1x256xf32>
    %159 = arith.addf %155, %158 : vector<1x256xf32>
    %c1_131 = arith.constant 1 : index
    %c3_132 = arith.constant 3 : index
    %c127 = arith.constant 127 : index
    %160 = vector.load %arg12[%c1_131, %c3_132, %c127] : memref<4x9x512xf32, #tpu.memory_space<vmem>>, vector<1x1x256xf32>
    %161 = vector.shape_cast %160 : vector<1x1x256xf32> to vector<256xf32>
    %162 = vector.shape_cast %161 : vector<256xf32> to vector<1x256xf32>
    %163 = arith.mulf %162, %141 : vector<1x256xf32>
    %164 = arith.addf %159, %163 : vector<1x256xf32>
    %c0_133 = arith.constant 0 : index
    %c4 = arith.constant 4 : index
    %c128_134 = arith.constant 128 : index
    %165 = vector.load %arg12[%c0_133, %c4, %c128_134] : memref<4x9x512xf32, #tpu.memory_space<vmem>>, vector<1x1x256xf32>
    %166 = vector.shape_cast %165 : vector<1x1x256xf32> to vector<256xf32>
    %167 = vector.shape_cast %166 : vector<256xf32> to vector<1x256xf32>
    %168 = arith.addf %164, %167 : vector<1x256xf32>
    %c1_135 = arith.constant 1 : index
    %c5 = arith.constant 5 : index
    %c128_136 = arith.constant 128 : index
    %169 = vector.load %arg12[%c1_135, %c5, %c128_136] : memref<4x9x512xf32, #tpu.memory_space<vmem>>, vector<1x1x256xf32>
    %170 = vector.shape_cast %169 : vector<1x1x256xf32> to vector<256xf32>
    %171 = vector.shape_cast %170 : vector<256xf32> to vector<1x256xf32>
    %172 = arith.addf %168, %171 : vector<1x256xf32>
    %c3_137 = arith.constant 3 : index
    %c6 = arith.constant 6 : index
    %c127_138 = arith.constant 127 : index
    %173 = vector.load %arg12[%c3_137, %c6, %c127_138] : memref<4x9x512xf32, #tpu.memory_space<vmem>>, vector<1x1x256xf32>
    %174 = vector.shape_cast %173 : vector<1x1x256xf32> to vector<256xf32>
    %175 = vector.shape_cast %174 : vector<256xf32> to vector<1x256xf32>
    %176 = arith.mulf %175, %141 : vector<1x256xf32>
    %177 = arith.addf %172, %176 : vector<1x256xf32>
    %c2_139 = arith.constant 2 : index
    %c7_140 = arith.constant 7 : index
    %c128_141 = arith.constant 128 : index
    %178 = vector.load %arg12[%c2_139, %c7_140, %c128_141] : memref<4x9x512xf32, #tpu.memory_space<vmem>>, vector<1x1x256xf32>
    %179 = vector.shape_cast %178 : vector<1x1x256xf32> to vector<256xf32>
    %180 = vector.shape_cast %179 : vector<256xf32> to vector<1x256xf32>
    %181 = arith.addf %177, %180 : vector<1x256xf32>
    %c3_142 = arith.constant 3 : index
    %c8_143 = arith.constant 8 : index
    %c128_144 = arith.constant 128 : index
    %182 = vector.load %arg12[%c3_142, %c8_143, %c128_144] : memref<4x9x512xf32, #tpu.memory_space<vmem>>, vector<1x1x256xf32>
    %183 = vector.shape_cast %182 : vector<1x1x256xf32> to vector<256xf32>
    %184 = vector.shape_cast %183 : vector<256xf32> to vector<1x256xf32>
    %185 = arith.addf %181, %184 : vector<1x256xf32>
    %cst_145 = arith.constant 0.000000e+00 : f32
    %186 = vector.broadcast %cst_145 : f32 to vector<1x256xf32>
    %c2_146 = arith.constant 2 : index
    %c0_147 = arith.constant 0 : index
    %c112_148 = arith.constant 112 : index
    %187 = vector.load %arg12[%c2_146, %c0_147, %c112_148] : memref<4x9x512xf32, #tpu.memory_space<vmem>>, vector<1x1x256xf32>
    %188 = vector.shape_cast %187 : vector<1x1x256xf32> to vector<256xf32>
    %189 = vector.shape_cast %188 : vector<256xf32> to vector<1x256xf32>
    %190 = arith.addf %186, %189 : vector<1x256xf32>
    %c3_149 = arith.constant 3 : index
    %c1_150 = arith.constant 1 : index
    %c112_151 = arith.constant 112 : index
    %191 = vector.load %arg12[%c3_149, %c1_150, %c112_151] : memref<4x9x512xf32, #tpu.memory_space<vmem>>, vector<1x1x256xf32>
    %192 = vector.shape_cast %191 : vector<1x1x256xf32> to vector<256xf32>
    %193 = vector.shape_cast %192 : vector<256xf32> to vector<1x256xf32>
    %194 = arith.addf %190, %193 : vector<1x256xf32>
    %c2_152 = arith.constant 2 : index
    %c2_153 = arith.constant 2 : index
    %c113 = arith.constant 113 : index
    %195 = vector.load %arg12[%c2_152, %c2_153, %c113] : memref<4x9x512xf32, #tpu.memory_space<vmem>>, vector<1x1x256xf32>
    %196 = vector.shape_cast %195 : vector<1x1x256xf32> to vector<256xf32>
    %197 = vector.shape_cast %196 : vector<256xf32> to vector<1x256xf32>
    %198 = arith.mulf %197, %145 : vector<1x256xf32>
    %199 = arith.addf %194, %198 : vector<1x256xf32>
    %c0_154 = arith.constant 0 : index
    %c3_155 = arith.constant 3 : index
    %c128_156 = arith.constant 128 : index
    %200 = vector.load %arg12[%c0_154, %c3_155, %c128_156] : memref<4x9x512xf32, #tpu.memory_space<vmem>>, vector<1x1x256xf32>
    %201 = vector.shape_cast %200 : vector<1x1x256xf32> to vector<256xf32>
    %202 = vector.shape_cast %201 : vector<256xf32> to vector<1x256xf32>
    %203 = arith.addf %199, %202 : vector<1x256xf32>
    %c1_157 = arith.constant 1 : index
    %c4_158 = arith.constant 4 : index
    %c128_159 = arith.constant 128 : index
    %204 = vector.load %arg12[%c1_157, %c4_158, %c128_159] : memref<4x9x512xf32, #tpu.memory_space<vmem>>, vector<1x1x256xf32>
    %205 = vector.shape_cast %204 : vector<1x1x256xf32> to vector<256xf32>
    %206 = vector.shape_cast %205 : vector<256xf32> to vector<1x256xf32>
    %207 = arith.addf %203, %206 : vector<1x256xf32>
    %c0_160 = arith.constant 0 : index
    %c5_161 = arith.constant 5 : index
    %c129 = arith.constant 129 : index
    %208 = vector.load %arg12[%c0_160, %c5_161, %c129] : memref<4x9x512xf32, #tpu.memory_space<vmem>>, vector<1x1x256xf32>
    %209 = vector.shape_cast %208 : vector<1x1x256xf32> to vector<256xf32>
    %210 = vector.shape_cast %209 : vector<256xf32> to vector<1x256xf32>
    %211 = arith.mulf %210, %145 : vector<1x256xf32>
    %212 = arith.addf %207, %211 : vector<1x256xf32>
    %c2_162 = arith.constant 2 : index
    %c6_163 = arith.constant 6 : index
    %c128_164 = arith.constant 128 : index
    %213 = vector.load %arg12[%c2_162, %c6_163, %c128_164] : memref<4x9x512xf32, #tpu.memory_space<vmem>>, vector<1x1x256xf32>
    %214 = vector.shape_cast %213 : vector<1x1x256xf32> to vector<256xf32>
    %215 = vector.shape_cast %214 : vector<256xf32> to vector<1x256xf32>
    %216 = arith.addf %212, %215 : vector<1x256xf32>
    %c3_165 = arith.constant 3 : index
    %c7_166 = arith.constant 7 : index
    %c128_167 = arith.constant 128 : index
    %217 = vector.load %arg12[%c3_165, %c7_166, %c128_167] : memref<4x9x512xf32, #tpu.memory_space<vmem>>, vector<1x1x256xf32>
    %218 = vector.shape_cast %217 : vector<1x1x256xf32> to vector<256xf32>
    %219 = vector.shape_cast %218 : vector<256xf32> to vector<1x256xf32>
    %220 = arith.addf %216, %219 : vector<1x256xf32>
    %c2_168 = arith.constant 2 : index
    %c8_169 = arith.constant 8 : index
    %c129_170 = arith.constant 129 : index
    %221 = vector.load %arg12[%c2_168, %c8_169, %c129_170] : memref<4x9x512xf32, #tpu.memory_space<vmem>>, vector<1x1x256xf32>
    %222 = vector.shape_cast %221 : vector<1x1x256xf32> to vector<256xf32>
    %223 = vector.shape_cast %222 : vector<256xf32> to vector<1x256xf32>
    %224 = arith.mulf %223, %145 : vector<1x256xf32>
    %225 = arith.addf %220, %224 : vector<1x256xf32>
    %cst_171 = arith.constant 0.000000e+00 : f32
    %226 = vector.broadcast %cst_171 : f32 to vector<1x256xf32>
    %c1_172 = arith.constant 1 : index
    %c0_173 = arith.constant 0 : index
    %c127_174 = arith.constant 127 : index
    %227 = vector.load %arg12[%c1_172, %c0_173, %c127_174] : memref<4x9x512xf32, #tpu.memory_space<vmem>>, vector<1x1x256xf32>
    %228 = vector.shape_cast %227 : vector<1x1x256xf32> to vector<256xf32>
    %229 = vector.shape_cast %228 : vector<256xf32> to vector<1x256xf32>
    %230 = arith.mulf %229, %141 : vector<1x256xf32>
    %231 = arith.addf %226, %230 : vector<1x256xf32>
    %c0_175 = arith.constant 0 : index
    %c1_176 = arith.constant 1 : index
    %c128_177 = arith.constant 128 : index
    %232 = vector.load %arg12[%c0_175, %c1_176, %c128_177] : memref<4x9x512xf32, #tpu.memory_space<vmem>>, vector<1x1x256xf32>
    %233 = vector.shape_cast %232 : vector<1x1x256xf32> to vector<256xf32>
    %234 = vector.shape_cast %233 : vector<256xf32> to vector<1x256xf32>
    %235 = arith.addf %231, %234 : vector<1x256xf32>
    %c1_178 = arith.constant 1 : index
    %c2_179 = arith.constant 2 : index
    %c128_180 = arith.constant 128 : index
    %236 = vector.load %arg12[%c1_178, %c2_179, %c128_180] : memref<4x9x512xf32, #tpu.memory_space<vmem>>, vector<1x1x256xf32>
    %237 = vector.shape_cast %236 : vector<1x1x256xf32> to vector<256xf32>
    %238 = vector.shape_cast %237 : vector<256xf32> to vector<1x256xf32>
    %239 = arith.addf %235, %238 : vector<1x256xf32>
    %c3_181 = arith.constant 3 : index
    %c3_182 = arith.constant 3 : index
    %c127_183 = arith.constant 127 : index
    %240 = vector.load %arg12[%c3_181, %c3_182, %c127_183] : memref<4x9x512xf32, #tpu.memory_space<vmem>>, vector<1x1x256xf32>
    %241 = vector.shape_cast %240 : vector<1x1x256xf32> to vector<256xf32>
    %242 = vector.shape_cast %241 : vector<256xf32> to vector<1x256xf32>
    %243 = arith.mulf %242, %141 : vector<1x256xf32>
    %244 = arith.addf %239, %243 : vector<1x256xf32>
    %c2_184 = arith.constant 2 : index
    %c4_185 = arith.constant 4 : index
    %c128_186 = arith.constant 128 : index
    %245 = vector.load %arg12[%c2_184, %c4_185, %c128_186] : memref<4x9x512xf32, #tpu.memory_space<vmem>>, vector<1x1x256xf32>
    %246 = vector.shape_cast %245 : vector<1x1x256xf32> to vector<256xf32>
    %247 = vector.shape_cast %246 : vector<256xf32> to vector<1x256xf32>
    %248 = arith.addf %244, %247 : vector<1x256xf32>
    %c3_187 = arith.constant 3 : index
    %c5_188 = arith.constant 5 : index
    %c128_189 = arith.constant 128 : index
    %249 = vector.load %arg12[%c3_187, %c5_188, %c128_189] : memref<4x9x512xf32, #tpu.memory_space<vmem>>, vector<1x1x256xf32>
    %250 = vector.shape_cast %249 : vector<1x1x256xf32> to vector<256xf32>
    %251 = vector.shape_cast %250 : vector<256xf32> to vector<1x256xf32>
    %252 = arith.addf %248, %251 : vector<1x256xf32>
    %c1_190 = arith.constant 1 : index
    %c6_191 = arith.constant 6 : index
    %c143 = arith.constant 143 : index
    %253 = vector.load %arg12[%c1_190, %c6_191, %c143] : memref<4x9x512xf32, #tpu.memory_space<vmem>>, vector<1x1x256xf32>
    %254 = vector.shape_cast %253 : vector<1x1x256xf32> to vector<256xf32>
    %255 = vector.shape_cast %254 : vector<256xf32> to vector<1x256xf32>
    %256 = arith.mulf %255, %141 : vector<1x256xf32>
    %257 = arith.addf %252, %256 : vector<1x256xf32>
    %c0_192 = arith.constant 0 : index
    %c7_193 = arith.constant 7 : index
    %c144 = arith.constant 144 : index
    %258 = vector.load %arg12[%c0_192, %c7_193, %c144] : memref<4x9x512xf32, #tpu.memory_space<vmem>>, vector<1x1x256xf32>
    %259 = vector.shape_cast %258 : vector<1x1x256xf32> to vector<256xf32>
    %260 = vector.shape_cast %259 : vector<256xf32> to vector<1x256xf32>
    %261 = arith.addf %257, %260 : vector<1x256xf32>
    %c1_194 = arith.constant 1 : index
    %c8_195 = arith.constant 8 : index
    %c144_196 = arith.constant 144 : index
    %262 = vector.load %arg12[%c1_194, %c8_195, %c144_196] : memref<4x9x512xf32, #tpu.memory_space<vmem>>, vector<1x1x256xf32>
    %263 = vector.shape_cast %262 : vector<1x1x256xf32> to vector<256xf32>
    %264 = vector.shape_cast %263 : vector<256xf32> to vector<1x256xf32>
    %265 = arith.addf %261, %264 : vector<1x256xf32>
    %cst_197 = arith.constant 0.000000e+00 : f32
    %266 = vector.broadcast %cst_197 : f32 to vector<1x256xf32>
    %c0_198 = arith.constant 0 : index
    %c0_199 = arith.constant 0 : index
    %c128_200 = arith.constant 128 : index
    %267 = vector.load %arg12[%c0_198, %c0_199, %c128_200] : memref<4x9x512xf32, #tpu.memory_space<vmem>>, vector<1x1x256xf32>
    %268 = vector.shape_cast %267 : vector<1x1x256xf32> to vector<256xf32>
    %269 = vector.shape_cast %268 : vector<256xf32> to vector<1x256xf32>
    %270 = arith.addf %266, %269 : vector<1x256xf32>
    %c1_201 = arith.constant 1 : index
    %c1_202 = arith.constant 1 : index
    %c128_203 = arith.constant 128 : index
    %271 = vector.load %arg12[%c1_201, %c1_202, %c128_203] : memref<4x9x512xf32, #tpu.memory_space<vmem>>, vector<1x1x256xf32>
    %272 = vector.shape_cast %271 : vector<1x1x256xf32> to vector<256xf32>
    %273 = vector.shape_cast %272 : vector<256xf32> to vector<1x256xf32>
    %274 = arith.addf %270, %273 : vector<1x256xf32>
    %c0_204 = arith.constant 0 : index
    %c2_205 = arith.constant 2 : index
    %c129_206 = arith.constant 129 : index
    %275 = vector.load %arg12[%c0_204, %c2_205, %c129_206] : memref<4x9x512xf32, #tpu.memory_space<vmem>>, vector<1x1x256xf32>
    %276 = vector.shape_cast %275 : vector<1x1x256xf32> to vector<256xf32>
    %277 = vector.shape_cast %276 : vector<256xf32> to vector<1x256xf32>
    %278 = arith.mulf %277, %145 : vector<1x256xf32>
    %279 = arith.addf %274, %278 : vector<1x256xf32>
    %c2_207 = arith.constant 2 : index
    %c3_208 = arith.constant 3 : index
    %c128_209 = arith.constant 128 : index
    %280 = vector.load %arg12[%c2_207, %c3_208, %c128_209] : memref<4x9x512xf32, #tpu.memory_space<vmem>>, vector<1x1x256xf32>
    %281 = vector.shape_cast %280 : vector<1x1x256xf32> to vector<256xf32>
    %282 = vector.shape_cast %281 : vector<256xf32> to vector<1x256xf32>
    %283 = arith.addf %279, %282 : vector<1x256xf32>
    %c3_210 = arith.constant 3 : index
    %c4_211 = arith.constant 4 : index
    %c128_212 = arith.constant 128 : index
    %284 = vector.load %arg12[%c3_210, %c4_211, %c128_212] : memref<4x9x512xf32, #tpu.memory_space<vmem>>, vector<1x1x256xf32>
    %285 = vector.shape_cast %284 : vector<1x1x256xf32> to vector<256xf32>
    %286 = vector.shape_cast %285 : vector<256xf32> to vector<1x256xf32>
    %287 = arith.addf %283, %286 : vector<1x256xf32>
    %c2_213 = arith.constant 2 : index
    %c5_214 = arith.constant 5 : index
    %c129_215 = arith.constant 129 : index
    %288 = vector.load %arg12[%c2_213, %c5_214, %c129_215] : memref<4x9x512xf32, #tpu.memory_space<vmem>>, vector<1x1x256xf32>
    %289 = vector.shape_cast %288 : vector<1x1x256xf32> to vector<256xf32>
    %290 = vector.shape_cast %289 : vector<256xf32> to vector<1x256xf32>
    %291 = arith.mulf %290, %145 : vector<1x256xf32>
    %292 = arith.addf %287, %291 : vector<1x256xf32>
    %c0_216 = arith.constant 0 : index
    %c6_217 = arith.constant 6 : index
    %c144_218 = arith.constant 144 : index
    %293 = vector.load %arg12[%c0_216, %c6_217, %c144_218] : memref<4x9x512xf32, #tpu.memory_space<vmem>>, vector<1x1x256xf32>
    %294 = vector.shape_cast %293 : vector<1x1x256xf32> to vector<256xf32>
    %295 = vector.shape_cast %294 : vector<256xf32> to vector<1x256xf32>
    %296 = arith.addf %292, %295 : vector<1x256xf32>
    %c1_219 = arith.constant 1 : index
    %c7_220 = arith.constant 7 : index
    %c144_221 = arith.constant 144 : index
    %297 = vector.load %arg12[%c1_219, %c7_220, %c144_221] : memref<4x9x512xf32, #tpu.memory_space<vmem>>, vector<1x1x256xf32>
    %298 = vector.shape_cast %297 : vector<1x1x256xf32> to vector<256xf32>
    %299 = vector.shape_cast %298 : vector<256xf32> to vector<1x256xf32>
    %300 = arith.addf %296, %299 : vector<1x256xf32>
    %c0_222 = arith.constant 0 : index
    %c8_223 = arith.constant 8 : index
    %c145 = arith.constant 145 : index
    %301 = vector.load %arg12[%c0_222, %c8_223, %c145] : memref<4x9x512xf32, #tpu.memory_space<vmem>>, vector<1x1x256xf32>
    %302 = vector.shape_cast %301 : vector<1x1x256xf32> to vector<256xf32>
    %303 = vector.shape_cast %302 : vector<256xf32> to vector<1x256xf32>
    %304 = arith.mulf %303, %145 : vector<1x256xf32>
    %305 = arith.addf %300, %304 : vector<1x256xf32>
    %306 = tpu.concatenate %185, %225, %265, %305 in 0 : vector<1x256xf32>, vector<1x256xf32>, vector<1x256xf32>, vector<1x256xf32> -> vector<4x256xf32>
    %c0_224 = arith.constant 0 : index
    %c0_225 = arith.constant 0 : index
    %307 = vector.load %arg9[%c0_224, %c0_225] : memref<1x1xf32, #tpu.memory_space<vmem>>, vector<1x1xf32>
    %308 = vector.broadcast %307 : vector<1x1xf32> to vector<4x256xf32>
    %309 = arith.addf %306, %308 : vector<4x256xf32>
    %cst_226 = arith.constant 0.000000e+00 : f32
    %310 = vector.broadcast %cst_226 : f32 to vector<4x256xf32>
    %311 = arith.subf %310, %309 : vector<4x256xf32>
    %312 = math.exp %311 : vector<4x256xf32>
    %cst_227 = arith.constant 1.000000e+00 : f32
    %313 = vector.broadcast %cst_227 : f32 to vector<4x256xf32>
    %314 = arith.addf %313, %312 : vector<4x256xf32>
    %315 = tpu.reciprocal %314 {approx = true} : vector<4x256xf32> -> vector<4x256xf32>
    %c0_228 = arith.constant 0 : index
    %c0_229 = arith.constant 0 : index
    %c0_230 = arith.constant 0 : index
    %316 = vector.load %arg10[%c0_228, %c0_229, %c0_230] : memref<1x4x256xf32, #tpu.memory_space<vmem>>, vector<1x4x256xf32>
    %317 = vector.shape_cast %316 : vector<1x4x256xf32> to vector<4x256xf32>
    %318 = vector.shape_cast %315 : vector<4x256xf32> to vector<1x4x256xf32>
    tpu.vector_store %arg10[%c0_228, %c0_229, %c0_230], %318 {strides = array<i32>} : memref<1x4x256xf32, #tpu.memory_space<vmem>>, vector<1x4x256xf32>,
    return
  }
  func.func @transform_0(%arg0: i32) -> (i32, i32, i32) {
    %c0_i32 = arith.constant 0 : i32
    %c0_i32_0 = arith.constant 0 : i32
    %c0_i32_1 = arith.constant 0 : i32
    return %arg0, %c0_i32, %c0_i32_0 : i32, i32, i32
  }
  func.func @transform_1(%arg0: i32) -> (i32, i32) {
    %c0_i32 = arith.constant 0 : i32
    %c0_i32_0 = arith.constant 0 : i32
    %c0_i32_1 = arith.constant 0 : i32
    return %c0_i32, %c0_i32_0 : i32, i32
  }
  func.func @transform_2(%arg0: i32) -> (i32, i32) {
    %c0_i32 = arith.constant 0 : i32
    %c0_i32_0 = arith.constant 0 : i32
    %c0_i32_1 = arith.constant 0 : i32
    return %c0_i32, %c0_i32_0 : i32, i32
  }
  func.func @transform_3(%arg0: i32) -> (i32, i32, i32) {
    %c0_i32 = arith.constant 0 : i32
    %c0_i32_0 = arith.constant 0 : i32
    %c0_i32_1 = arith.constant 0 : i32
    %c0_i32_2 = arith.constant 0 : i32
    return %c0_i32, %c0_i32_0, %c0_i32_1 : i32, i32, i32
  }
  func.func @transform_4(%arg0: i32) -> (i32, i32) {
    %c0_i32 = arith.constant 0 : i32
    %c0_i32_0 = arith.constant 0 : i32
    %c0_i32_1 = arith.constant 0 : i32
    return %c0_i32, %c0_i32_0 : i32, i32
  }
  func.func @transform_5(%arg0: i32) -> (i32, i32, i32) {
    %c0_i32 = arith.constant 0 : i32
    %c0_i32_0 = arith.constant 0 : i32
    %c0_i32_1 = arith.constant 0 : i32
    %c0_i32_2 = arith.constant 0 : i32
    return %c0_i32, %c0_i32_0, %c0_i32_1 : i32, i32, i32
  }
  func.func @transform_6(%arg0: i32) -> (i32, i32) {
    %c0_i32 = arith.constant 0 : i32
    %c0_i32_0 = arith.constant 0 : i32
    %c0_i32_1 = arith.constant 0 : i32
    return %c0_i32, %c0_i32_0 : i32, i32
  }
  func.func @transform_7(%arg0: i32) -> (i32, i32) {
    %c0_i32 = arith.constant 0 : i32
    %c0_i32_0 = arith.constant 0 : i32
    %c0_i32_1 = arith.constant 0 : i32
    return %c0_i32, %c0_i32_0 : i32, i32
  }
  func.func @transform_8(%arg0: i32) -> (i32, i32) {
    %c0_i32 = arith.constant 0 : i32
    %c0_i32_0 = arith.constant 0 : i32
    %c0_i32_1 = arith.constant 0 : i32
    return %c0_i32, %c0_i32_0 : i32, i32
  }
  func.func @transform_9(%arg0: i32) -> (i32, i32, i32) {
    %c0_i32 = arith.constant 0 : i32
    %c0_i32_0 = arith.constant 0 : i32
    %c0_i32_1 = arith.constant 0 : i32
    return %arg0, %c0_i32, %c0_i32_0 : i32, i32, i32
  }
}

</mosaic_0001>

<bundles_post_ra>
// kernel: unet_forward.1
= control target key start
LH: loop header
LB: loop body
LE: loop exit
PB: predicated region body
PF: predicated region fallthrough
CT: control target
= control target key end

     0   :  { %s6576_s11 = smov 0   ;;  %s9125_s0 = inlined_call_operand.vmem [shape: bf16[2,256,9], index: 0, kind: input, shape index: {}]   ;;  %s9126_s1 = inlined_call_operand.vmem [shape: bf16[9,64], index: 1, kind: input, shape index: {}]   ;;  %s9127_s2 = inlined_call_operand.vmem [shape: f32[1,64], index: 2, kind: input, shape index: {}]   ;;  %s9128_s3 = inlined_call_operand.vmem [shape: bf16[3,192,128], index: 3, kind: input, shape index: {}]   ;;  %s9129_s4 = inlined_call_operand.vmem [shape: f32[1,128], index: 4, kind: input, shape index: {}]   ;;  %s9130_s5 = inlined_call_operand.vmem [shape: bf16[4,64,128], index: 5, kind: input, shape index: {}]   ;;  %s9131_s6 = inlined_call_operand.vmem [shape: f32[64,1], index: 6, kind: input, shape index: {}]   ;;  %s9132_s7 = inlined_call_operand.vmem [shape: bf16[9,64], index: 7, kind: input, shape index: {}]   ;;  %s9133_s8 = inlined_call_operand.<no memory space> [shape: f32[1,1], index: 8, kind: input, shape index: {}]   ;;  %s9134_s9 = inlined_call_operand.vmem [shape: f32[2,4,256], index: 9, kind: output, shape index: {}]  }
   0x1   :  { %v14_v0 = vstv %s9133_s8 }
   0x2   :  { %15 = vst [vmem:[#allocation4] sm:$0x1] %v14_v0 }
   0x3 LB: > { %s5949_s12 = sadd.s32 4294967295, %s6509_s11   ;;  %p5953_p0 = scmp.ge.s32.totalorder %s6509_s11, 1  ;;  %s6509_s11 = sphi %s6576_s11, %s21_s11  }
   0x4   : > { %p289_p1 = scmp.lt.s32.totalorder %s6509_s11, 3 }
   0x6   : > { %p290_p2 = pnand %p5953_p0, %p289_p1 }
   0x8   : > { %293 = sbr.rel (%p290_p2) target bundleno = 2192 (0x890), region = 56 }
   0xf   : > { %v6367_v1 = vld [vmem:[%s9126_s1] sm:$0x1f]   ;;  %vm651_vm0 = vcmask 1043456   ;;  %vm652_vm1 = vcmask 1044480   ;;  %p325_p3 = scmp.lt.s32.totalorder %s5949_s12, 1  ;;  %v6511_v2 = vmov 65535  }
  0x10   : > { %v653_v3 = vsel %vm651_vm0, 4294967295, %v6511_v2  ;;  %vm602_vm2 = vcmask 72704   ;;  %vm343_vm3 = vsmask.f32 4352  ;;  %vm406_vm4 = vcmask 520196   ;;  %v6384_v38 = vld [vmem:[%s9128_s3 + $0x60] sm:$0xff]  }
  0x11   : > { %v654_v4 = vsel %vm652_vm1, %v653_v3, 0  ;;  %s9380_s12 = smov (!%p325_p3, %s5949_s12), 1  ;;  %vm6629_vm5 = vmand %vm406_vm4, %vm343_vm3  ;;  %v408_v23 = vld [vmem:[#allocation2 + $0x18] sm:$0x10]  ;;  %vm337_vm6 = vsmask.f32 7950 }
  0x12   : > { %v656_v5 = vand.u32 %v6367_v1, %v654_v4  ;;  %s6180_s8 = sshll.u32 %s9380_s12, 7  ;;  %v409_v24 = vsel %vm6629_vm5, 0, %v408_v23  ;;  %vm356_vm7 = vcmask 519171   ;;  %v9210_v25 = vmov 0  ;;  %v358_v26 = vld [vmem:[#allocation2 + $0x10] sm:$0x8] }
  0x13   : > { %s6594_s17 = scalar_lea.vmem %s9125_s0, %s6180_s8  ;;  %410 = vst [vmem:[#allocation2 + $0x18] sm:$0x10] %v409_v24  ;;  %vm6635_vm8 = vmand %vm356_vm7, %vm337_vm6  ;;  %vm336_vm9 = vcmask 523267   ;;  %v339_v28 = vld [vmem:[#allocation2] sm:$0xf8]  ;;  %vm342_vm10 = vcmask 520192  }
  0x14   : > { %6199 = vmatprep.subr.bf16.mxu0 %v656_v5  ;;  %v6368_v6 = vld [vmem:[%s6594_s17] sm:$0xff]   ;;  %v6369_v7 = vld [vmem:[%s6594_s17 + $0x8] sm:$0xff]   ;;  %v6370_v8 = vld [vmem:[%s6594_s17 + $0x10] sm:$0xff]   ;;  %v9211_v25 = vsel %vm6635_vm8, 4294967295, %v9210_v25  ;;  %v359_v27 = vsel %vm6635_vm8, 0, %v358_v26  ;;  %v9213_v30 = vmov 0 }
  0x15   : > { %6200 = vmatpush3.bf16.msra.mxu0 %v656_v5  ;;  %6201 = vmatprep.mubr.msk.bf16.mxu0 %vm602_vm2, %v6368_v6  ;;  %v6371_v9 = vld [vmem:[%s6594_s17 + $0x18] sm:$0xff]   ;;  %v6372_v10 = vld [vmem:[%s6594_s17 + $0x20] sm:$0xff]   ;;  %v6373_v11 = vld [vmem:[%s6594_s17 + $0x28] sm:$0xff]   ;;  %9212 = vst [vmem:[#allocation5_spill] sm:$0xff] %v9211_v25  ;;  %v9216_v32 = vmov 0  ;;  %v9135_v36 = vmov 0  }
  0x16   : > { %v6374_v12 = vld [vmem:[%s6594_s17 + $0x30] sm:$0xff]   ;;  %v6375_v13 = vld [vmem:[%s6594_s17 + $0x38] sm:$0xff]   ;;  %v6376_v14 = vld [vmem:[%s6594_s17 + $0x40] sm:$0xff]   ;;  %360 = vst [vmem:[#allocation2 + $0x10] sm:$0x8] %v359_v27  ;;  %2689 = vmatprep.subr.bf16.mxu1 %v9135_v36  ;;  %2970 = vmatprep.subr.bf16.mxu0 %v9135_v36  ;;  %vm915_vm13 = vcmask 523268  }
  0x17   : > { %v6377_v15 = vld [vmem:[%s6594_s17 + $0x48] sm:$0xff]   ;;  %v6378_v16 = vld [vmem:[%s6594_s17 + $0x50] sm:$0xff]   ;;  %v6379_v17 = vld [vmem:[%s6594_s17 + $0x58] sm:$0xff]   ;;  %6365 = vset.pattern.permute.xlu1 %v9135_v36  ;;  %2690 = vmatpush1.bf16.msra.mxu1 %v6384_v38  ;;  %vm917_vm14 = vcmask 519168   ;;  %s6513_s24 = smov 64   ;;  %vm1671_vm1 = vcmask 523264  }
  0x18   : > { %6202 = vmatmul.mubr.msk.bf16.vlgmr.msra.gmra.mrb[0].mxu0 %vm602_vm2, %v6369_v7  ;;  %v6380_v18 = vld [vmem:[%s6594_s17 + $0x60] sm:$0xff]   ;;  %v6381_v19 = vld [vmem:[%s6594_s17 + $0x68] sm:$0xff]   ;;  %v6382_v20 = vld [vmem:[%s6594_s17 + $0x70] sm:$0xff]   ;;  %2691 = vmatprep.subr.bf16.mxu1 %v9135_v36  ;;  %vm1366_vm15 = vsmask.f32 3328  ;;  %s6516_s16 = smov 113  }
  0x19   : > { %6205 = vmatprep.mubr.msk.bf16.mxu0 %vm602_vm2, %v6370_v8  ;;  %v6383_v21 = vld [vmem:[%s6594_s17 + $0x78] sm:$0xff]   ;;  %v345_v29 = vld [vmem:[#allocation2 + $0x8] sm:$0x1f]  ;;  %vm6641_vm11 = vmand %vm336_vm9, %vm337_vm6  ;;  %s6517_s17 = smov 1   ;;  %s6518_s18 = smov 17   ;;  %vm466_vm6 = vcmask 138240  }
  0x1a   : > { %v9214_v30 = vsel %vm6641_vm11, 4294967295, %v9213_v30  ;;  %v340_v31 = vsel %vm6641_vm11, 0, %v339_v28  ;;  %vm6648_vm12 = vmand %vm342_vm10, %vm343_vm3  ;;  %v411_v34 = vld [vmem:[#allocation2 + $0x28] sm:$0x10]  ;;  %v361_v37 = vld [vmem:[#allocation2 + $0x20] sm:$0x8] }
  0x1b   : > { %9215 = vst [vmem:[#allocation6_spill] sm:$0xff] %v9214_v30  ;;  %v9217_v32 = vsel %vm6648_vm12, 4294967295, %v9216_v32  ;;  %341 = vst [vmem:[#allocation2] sm:$0xf8] %v340_v31  ;;  %v346_v33 = vsel %vm6648_vm12, 0, %v345_v29  ;;  %v412_v35 = vsel %vm6629_vm5, 0, %v411_v34 }
  0x1c   : > { %9218 = vst [vmem:[#allocation7_spill] sm:$0xff] %v9217_v32  ;;  %347 = vst [vmem:[#allocation2 + $0x8] sm:$0x1f] %v346_v33  ;;  %v362_v39 = vsel %vm6635_vm8, 0, %v361_v37  ;;  %v6385_v40 = vld [vmem:[%s9128_s3 + $0x68] sm:$0xff]   ;;  %v6386_v41 = vld [vmem:[%s9128_s3 + $0x70] sm:$0xff]  }
  0x1d   : > { %413 = vst [vmem:[#allocation2 + $0x28] sm:$0x10] %v412_v35  ;;  %363 = vst [vmem:[#allocation2 + $0x20] sm:$0x8] %v362_v39  ;;  %2692 = vmatpush1.bf16.msra.mxu1 %v6385_v40  ;;  %v6387_v42 = vld [vmem:[%s9128_s3 + $0x78] sm:$0xff]   ;;  %v6388_v43 = vld [vmem:[%s9128_s3 + $0x80] sm:$0xff]  }
  0x1e   : > { %2693 = vmatprep.subr.bf16.mxu1 %v9135_v36  ;;  %v414_v44 = vld [vmem:[#allocation2 + $0x38] sm:$0x10]  ;;  %v364_v45 = vld [vmem:[#allocation2 + $0x30] sm:$0x8]  ;;  %v417_v48 = vld [vmem:[#allocation2 + $0x48] sm:$0x10] }
  0x1f   : > { %v415_v46 = vsel %vm6629_vm5, 0, %v414_v44  ;;  %v365_v47 = vsel %vm6635_vm8, 0, %v364_v45  ;;  %v367_v49 = vld [vmem:[#allocation2 + $0x40] sm:$0x8]  ;;  %v418_v50 = vsel %vm6629_vm5, 0, %v417_v48  ;;  %v6389_v52 = vld [vmem:[%s9128_s3 + $0x88] sm:$0xff]  }
  0x20   : > { %6206 = vmatmul.mubr.msk.bf16.gmra.mrb[4].mxu0 %vm602_vm2, %v6371_v9  ;;  %416 = vst [vmem:[#allocation2 + $0x38] sm:$0x10] %v415_v46  ;;  %366 = vst [vmem:[#allocation2 + $0x30] sm:$0x8] %v365_v47  ;;  %v368_v51 = vsel %vm6635_vm8, 0, %v367_v49  ;;  %v6390_v53 = vld [vmem:[%s9128_s3 + $0x90] sm:$0xff]  }
  0x21   : > { %6209 = vmatprep.mubr.msk.bf16.mxu0 %vm602_vm2, %v6372_v10  ;;  %2694 = vmatpush1.bf16.msra.mxu1 %v6386_v41  ;;  %419 = vst [vmem:[#allocation2 + $0x48] sm:$0x10] %v418_v50  ;;  %369 = vst [vmem:[#allocation2 + $0x40] sm:$0x8] %v368_v51  ;;  %v6391_v54 = vld [vmem:[%s9128_s3 + $0x98] sm:$0xff]   ;;  %v6392_v55 = vld [vmem:[%s9128_s3 + $0xa0] sm:$0xff]  }
  0x22   : > { %2695 = vmatprep.subr.bf16.mxu1 %v9135_v36  ;;  %v420_v56 = vld [vmem:[#allocation2 + $0x58] sm:$0x10]  ;;  %v370_v57 = vld [vmem:[#allocation2 + $0x50] sm:$0x8]  ;;  %v423_v60 = vld [vmem:[#allocation2 + $0x68] sm:$0x10] }
  0x23   : > { %v421_v58 = vsel %vm6629_vm5, 0, %v420_v56  ;;  %v371_v59 = vsel %vm6635_vm8, 0, %v370_v57  ;;  %v373_v61 = vld [vmem:[#allocation2 + $0x60] sm:$0x8]  ;;  %v6711_v62 = vld [vmem:[%s9127_s2] ss:$0 sm:$0xff] }
  0x24   : > { %422 = vst [vmem:[#allocation2 + $0x58] sm:$0x10] %v421_v58  ;;  %372 = vst [vmem:[#allocation2 + $0x50] sm:$0x8] %v371_v59  ;;  %v424_v63 = vsel %vm6629_vm5, 0, %v423_v60  ;;  %v374_v0 = vsel %vm6635_vm8, 0, %v373_v61 }
  0x25   : > { %2696 = vmatpush1.bf16.msra.mxu1 %v6387_v42  ;;  %425 = vst [vmem:[#allocation2 + $0x68] sm:$0x10] %v424_v63  ;;  %375 = vst [vmem:[#allocation2 + $0x60] sm:$0x8] %v374_v0  ;;  %v6393_v2 = vld [vmem:[%s9128_s3 + $0xa8] sm:$0xff]   ;;  %v6394_v10 = vld [vmem:[%s9128_s3 + $0xb0] sm:$0xff]  }
  0x26   : > { %2697 = vmatprep.subr.bf16.mxu1 %v9135_v36  ;;  %v426_v34 = vld [vmem:[#allocation2 + $0x78] sm:$0x10]  ;;  %v376_v35 = vld [vmem:[#allocation2 + $0x70] sm:$0x8]  ;;  %v429_v40 = vld [vmem:[#allocation2 + $0x88] sm:$0x10] }
  0x27   : > { %v427_v38 = vsel %vm6629_vm5, 0, %v426_v34  ;;  %v377_v39 = vsel %vm6635_vm8, 0, %v376_v35  ;;  %v430_v42 = vsel %vm6629_vm5, 0, %v429_v40  ;;  %vm468_vm7 = vcmask 131072   ;;  %s6519_s30 = smov 15   ;;  %s6520_s10 = smov 127  }
  0x28   : > { %6210 = vmatmul.mubr.msk.bf16.gmra.mrb[8].mxu0 %vm602_vm2, %v6373_v11  ;;  %428 = vst [vmem:[#allocation2 + $0x78] sm:$0x10] %v427_v38  ;;  %378 = vst [vmem:[#allocation2 + $0x70] sm:$0x8] %v377_v39  ;;  %s6521_s13 = smov 112   ;;  %s6522_s14 = smov 111  }
  0x29   : > { %6213 = vmatprep.mubr.msk.bf16.mxu0 %vm602_vm2, %v6374_v12  ;;  %2698 = vmatpush1.bf16.msra.mxu1 %v6388_v43  ;;  %v379_v43 = vld [vmem:[#allocation2 + $0x80] sm:$0x8]  ;;  %431 = vst [vmem:[#allocation2 + $0x88] sm:$0x10] %v430_v42  ;;  %vm456_vm9 = vcmask 1048440   ;;  %vm5520_vm10 = vcmask 924672  }
  0x2a   : > { %2699 = vmatprep.subr.bf16.mxu1 %v9135_v36  ;;  %v380_v45 = vsel %vm6635_vm8, 0, %v379_v43  ;;  %v6397_v43 = vld [vmem:[%s9128_s3 + $0x8] sm:$0xff]   ;;  %s6181_s20 = sshll.u32 %s9380_s12, 3 }
  0x2b   : > { %381 = vst [vmem:[#allocation2 + $0x80] sm:$0x8] %v380_v45  ;;  %s334_s23 = scalar_lea.vmem %s9134_s9, %s6181_s20 }
  0x2d   : > { %2700 = vmatpush1.bf16.msra.mxu1 %v6389_v52 }
  0x2e   : > { %2701 = vmatprep.subr.bf16.mxu1 %v9135_v36 }
  0x30   : > { %6214 = vmatmul.mubr.msk.bf16.gmra.mrb[12].mxu0 %vm602_vm2, %v6375_v13 }
  0x31   : > { %6217 = vmatprep.mubr.msk.bf16.mxu0 %vm602_vm2, %v6376_v14  ;;  %2702 = vmatpush1.bf16.msra.mxu1 %v6390_v53 }
  0x32   : > { %2703 = vmatprep.subr.bf16.mxu1 %v9135_v36 }
  0x35   : > { %2704 = vmatpush1.bf16.msra.mxu1 %v6391_v54 }
  0x36   : > { %2705 = vmatprep.subr.bf16.mxu1 %v9135_v36 }
  0x38   : > { %6218 = vmatmul.mubr.msk.bf16.gmra.mrb[16].mxu0 %vm602_vm2, %v6377_v15 }
  0x39   : > { %6221 = vmatprep.mubr.msk.bf16.mxu0 %vm602_vm2, %v6378_v16  ;;  %2706 = vmatpush1.bf16.msra.mxu1 %v6392_v55 }
  0x3a   : > { %2707 = vmatprep.subr.bf16.mxu1 %v9135_v36 }
  0x3d   : > { %2708 = vmatpush1.bf16.msra.mxu1 %v6393_v2 }
  0x3e   : > { %2709 = vmatprep.subr.bf16.mxu1 %v9135_v36 }
  0x40   : > { %6222 = vmatmul.mubr.msk.bf16.gmra.mrb[20].mxu0 %vm602_vm2, %v6379_v17 }
  0x41   : > { %6225 = vmatprep.mubr.msk.bf16.mxu0 %vm602_vm2, %v6380_v18  ;;  %2710 = vmatpush1.bf16.msra.mxu1 %v6394_v10  ;;  %v6395_v18 = vld [vmem:[%s9128_s3 + $0xb8] sm:$0xff]  }
  0x42   : > { %2711 = vmatprep.subr.bf16.mxu1 %v9135_v36 }
  0x45   : > { %2712 = vmatpush1.bf16.msra.mxu1 %v6395_v18 }
  0x46   : > { %4061 = vmatprep.subr.bf16.mxu1 %v9135_v36 }
  0x48   : > { %6226 = vmatmul.mubr.msk.bf16.gmra.mrb[24].mxu0 %vm602_vm2, %v6381_v19 }
  0x49   : > { %6229 = vmatprep.mubr.msk.bf16.mxu0 %vm602_vm2, %v6382_v20 }
  0x50   : > { %6230 = vmatmul.mubr.msk.bf16.gmra.mrb[28].mxu0 %vm602_vm2, %v6383_v21 }
  0xeb   : > { %v6203_v1 = vpop.f32.mrb[0].mxu0 }
  0xec   : > { %v701_v3 = vadd.f32 %v6203_v1, %v6711_v62  ;;  %v692_v4 = vpop.f32.mrb[1].mxu0 }
  0xed   : > { %v693_v5 = vadd.f32 %v6711_v62, %v692_v4  ;;  %v6204_v6 = vpop.f32.mrb[2].mxu0 }
  0xee   : > { %v704_v7 = vadd.f32 %v6204_v6, %v6711_v62  ;;  %v695_v8 = vpop.f32.mrb[3].mxu0  ;;  %v821_v11 = vmax.f32 %v701_v3, 0.0 }
  0xef   : > { %v696_v9 = vadd.f32 %v6711_v62, %v695_v8  ;;  %v819_v13 = vmax.f32 %v693_v5, 0.0 }
  0xf0   : > { %v822_v12 = vmax.f32 %v704_v7, 0.0 }
  0xf1   : > { %v820_v14 = vmax.f32 %v696_v9, 0.0 }
  0xf2   : > { %v852_v15 = vpack.c.bf16 %v822_v12, %v821_v11 }
  0xf3   : > { %v851_v16 = vpack.c.bf16 %v820_v14, %v819_v13  ;;  %v6207_v17 = vpop.f32.mrb[4].mxu0 }
  0xf4   : > { %v884_v19 = vrot.slane %v852_v15, 4  ;;  %v717_v20 = vadd.f32 %v6207_v17, %v6711_v62  ;;  %v708_v21 = vpop.f32.mrb[5].mxu0 }
  0xf5   : > { %v883_v23 = vrot.slane %v851_v16, 4  ;;  %v709_v24 = vadd.f32 %v6711_v62, %v708_v21  ;;  %v6208_v26 = vpop.f32.mrb[6].mxu0 }
  0xf6   : > { %919 = vst.msk [vmem:[#allocation2 + $0x20] sm:$0xf0] %vm915_vm13, %v884_v19  ;;  %v825_v27 = vmax.f32 %v717_v20, 0.0  ;;  %v720_v28 = vadd.f32 %v6208_v26, %v6711_v62  ;;  %v711_v29 = vpop.f32.mrb[7].mxu0  ;;  %v6396_v26 = vld [vmem:[%s9128_s3] sm:$0xff]  }
  0xf7   : > { %920 = vst.msk [vmem:[#allocation2 + $0x28] sm:$0xf] %vm917_vm14, %v884_v19  ;;  %918 = vst.msk [vmem:[#allocation2 + $0x18] sm:$0xf] %vm917_vm14, %v883_v23  ;;  %v823_v31 = vmax.f32 %v709_v24, 0.0  ;;  %v712_v33 = vadd.f32 %v6711_v62, %v711_v29  ;;  %2971 = vmatpush1.bf16.msra.mxu0 %v6396_v26 }
  0xf8   : > { %916 = vst.msk [vmem:[#allocation2 + $0x10] sm:$0xf0] %vm915_vm13, %v883_v23  ;;  %v826_v37 = vmax.f32 %v720_v28, 0.0  ;;  %2972 = vmatprep.subr.bf16.mxu0 %v9135_v36 }
  0xf9   : > { %v824_v41 = vmax.f32 %v712_v33, 0.0 }
  0xfa   : > { %v854_v44 = vpack.c.bf16 %v826_v37, %v825_v27 }
  0xfb   : > { %v853_v46 = vpack.c.bf16 %v824_v41, %v823_v31  ;;  %v6211_v47 = vpop.f32.mrb[8].mxu0  ;;  %2973 = vmatpush1.bf16.msra.mxu0 %v6397_v43 }
  0xfc   : > { %v886_v48 = vrot.slane %v854_v44, 4  ;;  %v733_v49 = vadd.f32 %v6211_v47, %v6711_v62  ;;  %v724_v50 = vpop.f32.mrb[9].mxu0  ;;  %2974 = vmatprep.subr.bf16.mxu0 %v9135_v36 }
  0xfd   : > { %v885_v51 = vrot.slane %v853_v46, 4  ;;  %v725_v52 = vadd.f32 %v6711_v62, %v724_v50  ;;  %v6212_v53 = vpop.f32.mrb[10].mxu0  ;;  %v6765_v14 = vld [vmem:[#allocation2 + $0x20] sm:$0xf0] }
  0xfe   : > { %923 = vst.msk [vmem:[#allocation2 + $0x40] sm:$0xf0] %vm915_vm13, %v886_v48  ;;  %v829_v54 = vmax.f32 %v733_v49, 0.0  ;;  %v736_v55 = vadd.f32 %v6212_v53, %v6711_v62  ;;  %v727_v56 = vpop.f32.mrb[11].mxu0  ;;  %v6755_v57 = vld [vmem:[#allocation2 + $0x18] sm:$0xf] }
  0xff   : > { %924 = vst.msk [vmem:[#allocation2 + $0x48] sm:$0xf] %vm917_vm14, %v886_v48  ;;  %v2064_v58 = vld [vmem:[#allocation2 + $0x10] sm:$0xf0]  ;;  %922 = vst.msk [vmem:[#allocation2 + $0x38] sm:$0xf] %vm917_vm14, %v885_v51  ;;  %v728_v60 = vadd.f32 %v6711_v62, %v727_v56 }
 0x100   : > { %921 = vst.msk [vmem:[#allocation2 + $0x30] sm:$0xf0] %vm915_vm13, %v885_v51  ;;  %v827_v59 = vmax.f32 %v725_v52, 0.0  ;;  %v2160_v61 = vld [vmem:[#allocation2 + $0x18] sm:$0x1f]  ;;  %v830_v63 = vmax.f32 %v736_v55, 0.0 }
 0x101   : > { %v2112_v0 = vrot.slane %v2064_v58, 4  ;;  %v2113_v1 = vrot.slane %v6755_v57, 4  ;;  %v2177_v2 = vshrl.u32 %v2064_v58, 16  ;;  %v828_v3 = vmax.f32 %v728_v60, 0.0  ;;  %v6762_v9 = vld [vmem:[#allocation2 + $0x28] sm:$0xf] }
 0x102   : > { %v2180_v4 = vshll.u32 %v2064_v58, 16  ;;  %v856_v5 = vpack.c.bf16 %v830_v63, %v829_v54  ;;  %v2185_v8 = vshrl.u32 %v2160_v61, 16  ;;  %v2188_v13 = vshll.u32 %v2160_v61, 16  ;;  %v6398_v53 = vld [vmem:[%s9128_s3 + $0x10] sm:$0xff]  }
 0x103   : > { %v2114_v6 = vsel %vm651_vm0, %v2112_v0, %v2113_v1  ;;  %v2179_v7 = vrot.slane %v2177_v2, 4  ;;  %v855_v10 = vpack.c.bf16 %v828_v3, %v827_v59  ;;  %v6215_v11 = vpop.f32.mrb[12].mxu0  ;;  %v2115_v31 = vrot.slane %v6765_v14, 4  ;;  %2975 = vmatpush1.bf16.msra.mxu0 %v6398_v53  ;;  %v6400_v53 = vld [vmem:[%s9128_s3 + $0x20] sm:$0xff]  }
 0x104   : > { %2448 = vrot.lane.b32.xlu0 %v2114_v6, %s6513_s24  ;;  %v2182_v12 = vrot.slane %v2180_v4, 5  ;;  %v888_v15 = vrot.slane %v856_v5, 4  ;;  %v749_v16 = vadd.f32 %v6215_v11, %v6711_v62  ;;  %v740_v17 = vpop.f32.mrb[13].mxu0  ;;  %v2187_v18 = vrot.slane %v2185_v8, 4  ;;  %2976 = vmatprep.subr.bf16.mxu0 %v9135_v36 }
 0x105   : > { %v887_v19 = vrot.slane %v855_v10, 4  ;;  %v741_v20 = vadd.f32 %v6711_v62, %v740_v17  ;;  %v6216_v21 = vpop.f32.mrb[14].mxu0  ;;  %v2190_v24 = vrot.slane %v2188_v13, 5  ;;  %v2116_v33 = vrot.slane %v6762_v9, 4  ;;  %v6795_v48 = vld [vmem:[#allocation2 + $0x40] sm:$0xf0] }
 0x106   : > { %v2183_v23 = vor.u32 %v2182_v12, %v2179_v7  ;;  %927 = vst.msk [vmem:[#allocation2 + $0x60] sm:$0xf0] %vm915_vm13, %v888_v15  ;;  %v833_v27 = vmax.f32 %v749_v16, 0.0  ;;  %v752_v28 = vadd.f32 %v6216_v21, %v6711_v62  ;;  %v743_v29 = vpop.f32.mrb[15].mxu0  ;;  %v6777_v34 = vld [vmem:[#allocation2 + $0x38] sm:$0xf] }
 0x107   : > { %928 = vst.msk [vmem:[#allocation2 + $0x68] sm:$0xf] %vm917_vm14, %v888_v15  ;;  %926 = vst.msk [vmem:[#allocation2 + $0x58] sm:$0xf] %vm917_vm14, %v887_v19  ;;  %v831_v35 = vmax.f32 %v741_v20, 0.0  ;;  %v744_v37 = vadd.f32 %v6711_v62, %v743_v29  ;;  %v2191_v38 = vor.u32 %v2190_v24, %v2187_v18  ;;  %v2117_v41 = vsel %vm651_vm0, %v2115_v31, %v2116_v33  ;;  %v6399_v24 = vld [vmem:[%s9128_s3 + $0x18] sm:$0xff]  }
 0x108   : > { %925 = vst.msk [vmem:[#allocation2 + $0x50] sm:$0xf0] %vm915_vm13, %v887_v19  ;;  %v6782_v39 = vld [vmem:[#allocation2 + $0x30] sm:$0xf0]  ;;  %v834_v40 = vmax.f32 %v752_v28, 0.0  ;;  %2450 = vrot.lane.b32.xlu0 %v2117_v41, %s6513_s24  ;;  %v2119_v46 = vrot.slane %v6777_v34, 4  ;;  %2977 = vmatpush1.bf16.msra.mxu0 %v6399_v24 }
 0x109   : > { %v2118_v42 = vrot.slane %v6782_v39, 4  ;;  %v832_v44 = vmax.f32 %v744_v37, 0.0  ;;  %v2192_v45 = vsel %vm1366_vm15, %v2183_v23, %v2191_v38  ;;  %v6793_v47 = vld [vmem:[#allocation2 + $0x48] sm:$0xf]  ;;  %v2121_v58 = vrot.slane %v6795_v48, 4  ;;  %2978 = vmatprep.subr.bf16.mxu0 %v9135_v36 }
 0x10a   : > { %v858_v49 = vpack.c.bf16 %v834_v40, %v833_v27  ;;  %6028 = vmatprep.mubr.msk.bf16.mxu1 %vm1671_vm1, %v2192_v45  ;;  %v2122_v59 = vrot.slane %v6793_v47, 4  ;;  %v6834_v29 = vld [vmem:[#allocation2] sm:$0xf0]  ;;  %v6839_v40 = vld [vmem:[#allocation2 + $0x8] sm:$0xf]  ;;  %v1801_v41 = vshrl.u32 %v6755_v57, 16 }
 0x10b   : > { %v857_v50 = vpack.c.bf16 %v832_v44, %v831_v35  ;;  %v2120_v51 = vsel %vm651_vm0, %v2118_v42, %v2119_v46  ;;  %v6219_v52 = vpop.f32.mrb[16].mxu0  ;;  %v1804_v42 = vshll.u32 %v6755_v57, 16 }
 0x10c   : > { %v890_v54 = vrot.slane %v858_v49, 4  ;;  %2452 = vrot.lane.b32.xlu1 %v2120_v51, %s6513_s24  ;;  %v765_v55 = vadd.f32 %v6219_v52, %v6711_v62  ;;  %v756_v56 = vpop.f32.mrb[17].mxu0  ;;  %v2123_v5 = vsel %vm651_vm0, %v2121_v58, %v2122_v59  ;;  %2979 = vmatpush1.bf16.msra.mxu0 %v6400_v53 }
 0x10d   : > { %v889_v60 = vrot.slane %v857_v50, 4  ;;  %v757_v61 = vadd.f32 %v6711_v62, %v756_v56  ;;  %v6220_v63 = vpop.f32.mrb[18].mxu0  ;;  %v2069_v1 = vld [vmem:[#allocation2 + $0x60] sm:$0xf0]  ;;  %v1302_v56 = vrot.slane %v6834_v29, 4  ;;  %2980 = vmatprep.subr.bf16.mxu0 %v9135_v36 }
 0x10e   : > { %v6808_v0 = vld [vmem:[#allocation2 + $0x68] sm:$0xf]  ;;  %931 = vst.msk [vmem:[#allocation2 + $0x80] sm:$0xf0] %vm915_vm13, %v890_v54  ;;  %v837_v2 = vmax.f32 %v765_v55, 0.0  ;;  %v768_v3 = vadd.f32 %v6220_v63, %v6711_v62  ;;  %v759_v4 = vpop.f32.mrb[19].mxu0 }
 0x10f   : > { %932 = vst.msk [vmem:[#allocation2 + $0x88] sm:$0xf] %vm917_vm14, %v890_v54  ;;  %v6814_v6 = vld [vmem:[#allocation2 + $0x58] sm:$0xf]  ;;  %930 = vst.msk [vmem:[#allocation2 + $0x78] sm:$0xf] %vm917_vm14, %v889_v60  ;;  %v760_v8 = vadd.f32 %v6711_v62, %v759_v4 }
 0x110   : > { %929 = vst.msk [vmem:[#allocation2 + $0x70] sm:$0xf0] %vm915_vm13, %v889_v60  ;;  %v835_v7 = vmax.f32 %v757_v61, 0.0  ;;  %v2127_v10 = vrot.slane %v2069_v1, 4  ;;  %v6819_v11 = vld [vmem:[#allocation2 + $0x50] sm:$0xf0]  ;;  %2454 = vrot.lane.b32.xlu1 %v2123_v5, %s6513_s24 }
 0x111   : > { %v838_v12 = vmax.f32 %v768_v3, 0.0  ;;  %v2128_v13 = vrot.slane %v6808_v0, 4  ;;  %v836_v15 = vmax.f32 %v760_v8, 0.0  ;;  %v2124_v16 = vrot.slane %v6819_v11, 4  ;;  %v6401_v63 = vld [vmem:[%s9128_s3 + $0x28] sm:$0xff]  }
 0x112   : > { %v2125_v17 = vrot.slane %v6814_v6, 4  ;;  %v1835_v1 = vshrl.u32 %v6777_v34, 16  ;;  %v1303_v4 = vrot.slane %v6839_v40, 4  ;;  %v6871_v5 = vrot.slane %v1801_v41, 3  ;;  %2981 = vmatpush1.bf16.msra.mxu0 %v6401_v63  ;;  %v7042_v63 = vld [vmem:[#allocation2 + $0x68] sm:$0xf] }
 0x113   : > { %v860_v18 = vpack.c.bf16 %v838_v12, %v837_v2  ;;  %v2129_v19 = vsel %vm651_vm0, %v2127_v10, %v2128_v13  ;;  %v859_v20 = vpack.c.bf16 %v836_v15, %v835_v7  ;;  %v6223_v23 = vpop.f32.mrb[20].mxu0  ;;  %v6873_v7 = vrot.slane %v1804_v42, 4  ;;  %2982 = vmatprep.subr.bf16.mxu0 %v9135_v36  ;;  %9232 = vst [vmem:[#allocation21_spill] sm:$0xff] %v7042_v63 }
 0x114   : > { %v2126_v21 = vsel %vm651_vm0, %v2124_v16, %v2125_v17  ;;  %2458 = vrot.lane.b32.xlu1 %v2129_v19, %s6513_s24  ;;  %v781_v27 = vadd.f32 %v6223_v23, %v6711_v62  ;;  %v772_v28 = vpop.f32.mrb[21].mxu0  ;;  %v1838_v15 = vshll.u32 %v6777_v34, 16  ;;  %v6402_v19 = vld [vmem:[%s9128_s3 + $0x30] sm:$0xff]  }
 0x115   : > { %v892_v26 = vrot.slane %v860_v18, 4  ;;  %2456 = vrot.lane.b32.xlu0 %v2126_v21, %s6513_s24  ;;  %v891_v31 = vrot.slane %v859_v20, 4  ;;  %v773_v33 = vadd.f32 %v6711_v62, %v772_v28  ;;  %v6224_v35 = vpop.f32.mrb[22].mxu0  ;;  %v2071_v38 = vld [vmem:[#allocation2 + $0x80] sm:$0xf0] }
 0x116   : > { %v6837_v37 = vld [vmem:[#allocation2 + $0x88] sm:$0xf]  ;;  %v841_v43 = vmax.f32 %v781_v27, 0.0  ;;  %v784_v44 = vadd.f32 %v6224_v35, %v6711_v62  ;;  %v775_v45 = vpop.f32.mrb[23].mxu0  ;;  %v6846_v46 = vld [vmem:[#allocation2 + $0x78] sm:$0xf]  ;;  %2983 = vmatpush1.bf16.msra.mxu0 %v6402_v19 }
 0x117   : > { %935 = vst.msk [vmem:[#allocation2 + $0xa0] sm:$0xf0] %vm915_vm13, %v892_v26  ;;  %933 = vst.msk [vmem:[#allocation2 + $0x90] sm:$0xf0] %vm915_vm13, %v891_v31  ;;  %v839_v49 = vmax.f32 %v773_v33, 0.0  ;;  %v776_v50 = vadd.f32 %v6711_v62, %v775_v45  ;;  %v2133_v57 = vrot.slane %v2071_v38, 4  ;;  %2984 = vmatprep.subr.bf16.mxu0 %v9135_v36 }
 0x118   : > { %936 = vst.msk [vmem:[#allocation2 + $0xa8] sm:$0xf] %vm917_vm14, %v892_v26  ;;  %934 = vst.msk [vmem:[#allocation2 + $0x98] sm:$0xf] %vm917_vm14, %v891_v31  ;;  %v2134_v51 = vrot.slane %v6837_v37, 4  ;;  %v842_v54 = vmax.f32 %v784_v44, 0.0 }
 0x119   : > { %v6853_v52 = vld [vmem:[#allocation2 + $0x70] sm:$0xf0]  ;;  %v840_v58 = vmax.f32 %v776_v50, 0.0  ;;  %v2131_v60 = vrot.slane %v6846_v46, 4  ;;  %v6887_v27 = vrot.slane %v1835_v1, 3  ;;  %v6901_v45 = vrot.slane %v1838_v15, 4 }
 0x11a   : > { %v2130_v55 = vrot.slane %v6853_v52, 4  ;;  %v2135_v59 = vsel %vm651_vm0, %v2133_v57, %v2134_v51  ;;  %v862_v2 = vpack.c.bf16 %v842_v54, %v841_v43  ;;  %v7021_v19 = vld [vmem:[#allocation2 + $0x58] sm:$0xf]  ;;  %v3442_v32 = vld [vmem:[#allocation2 + $0x80] sm:$0xf0] }
 0x11b   : > { %2462 = vrot.lane.b32.xlu1 %v2135_v59, %s6513_s24  ;;  %v861_v8 = vpack.c.bf16 %v840_v58, %v839_v49  ;;  %v6227_v12 = vpop.f32.mrb[24].mxu0  ;;  %v6908_v58 = vld [vmem:[#allocation2 + $0x28] sm:$0xf]  ;;  %v6403_v59 = vld [vmem:[%s9128_s3 + $0x38] sm:$0xff]   ;;  %9230 = vst [vmem:[#allocation19_spill] sm:$0xff] %v7021_v19 }
 0x11c   : > { %v2132_v10 = vsel %vm651_vm0, %v2130_v55, %v2131_v60  ;;  %v894_v16 = vrot.slane %v862_v2, 4  ;;  %v797_v17 = vadd.f32 %v6227_v12, %v6711_v62  ;;  %v788_v18 = vpop.f32.mrb[25].mxu0  ;;  %2985 = vmatpush1.bf16.msra.mxu0 %v6403_v59  ;;  %v3494_v12 = vrot.slane %v7021_v19, 4  ;;  %v1260_v34 = vld [vmem:[#allocation2 + $0x70] sm:$0xf0] }
 0x11d   : > { %2460 = vrot.lane.b32.xlu0 %v2132_v10, %s6513_s24  ;;  %v893_v20 = vrot.slane %v861_v8, 4  ;;  %v789_v21 = vadd.f32 %v6711_v62, %v788_v18  ;;  %v6228_v23 = vpop.f32.mrb[26].mxu0  ;;  %v6917_v8 = vld [vmem:[#allocation2 + $0x20] sm:$0xf0]  ;;  %v6923_v18 = vld [vmem:[#allocation2 + $0x38] sm:$0xf]  ;;  %2986 = vmatprep.subr.bf16.mxu0 %v9135_v36 }
 0x11e   : > { %v2073_v26 = vld [vmem:[#allocation2 + $0xa0] sm:$0xf0]  ;;  %939 = vst.msk [vmem:[#allocation2 + $0xc0] sm:$0xf0] %vm915_vm13, %v894_v16  ;;  %v845_v28 = vmax.f32 %v797_v17, 0.0  ;;  %v800_v31 = vadd.f32 %v6228_v23, %v6711_v62  ;;  %v791_v33 = vpop.f32.mrb[27].mxu0 }
 0x11f   : > { %v6884_v24 = vld [vmem:[#allocation2 + $0xa8] sm:$0xf]  ;;  %940 = vst.msk [vmem:[#allocation2 + $0xc8] sm:$0xf] %vm917_vm14, %v894_v16  ;;  %v6892_v35 = vld [vmem:[#allocation2 + $0x98] sm:$0xf]  ;;  %v792_v41 = vadd.f32 %v6711_v62, %v791_v33 }
 0x120   : > { %9219 = vst [vmem:[#allocation8_spill] sm:$0xff] %v6884_v24  ;;  %9220 = vst [vmem:[#allocation9_spill] sm:$0xff] %v6892_v35  ;;  %v843_v38 = vmax.f32 %v789_v21, 0.0  ;;  %v2139_v42 = vrot.slane %v2073_v26, 4  ;;  %v2140_v43 = vrot.slane %v6884_v24, 4  ;;  %v846_v50 = vmax.f32 %v800_v31, 0.0 }
 0x121   : > { %937 = vst.msk [vmem:[#allocation2 + $0xb0] sm:$0xf0] %vm915_vm13, %v893_v20  ;;  %v6899_v44 = vld [vmem:[#allocation2 + $0x90] sm:$0xf0]  ;;  %v844_v53 = vmax.f32 %v792_v41, 0.0  ;;  %v2137_v55 = vrot.slane %v6892_v35, 4 }
 0x122   : > { %938 = vst.msk [vmem:[#allocation2 + $0xb8] sm:$0xf] %vm917_vm14, %v893_v20  ;;  %v2136_v57 = vrot.slane %v6899_v44, 4  ;;  %v2141_v54 = vsel %vm651_vm0, %v2139_v42, %v2140_v43  ;;  %v864_v2 = vpack.c.bf16 %v846_v50, %v845_v28  ;;  %9221 = vst [vmem:[#allocation10_spill] sm:$0xff] %v6923_v18  ;;  %v6404_v28 = vld [vmem:[%s9128_s3 + $0x40] sm:$0xff]   ;;  %v6940_v43 = vsel %vm651_vm0, %v1302_v56, %v1303_v4 }
 0x123   : > { %2466 = vrot.lane.b32.xlu1 %v2141_v54, %s6513_s24  ;;  %v863_v15 = vpack.c.bf16 %v844_v53, %v843_v38  ;;  %v6231_v17 = vpop.f32.mrb[28].mxu0  ;;  %v6942_v50 = vld [vmem:[#allocation2 + $0x30] sm:$0xf0]  ;;  %v3484_v29 = vrot.slane %v6917_v8, 4  ;;  %v6958_v8 = vld [vmem:[#allocation2 + $0x18] sm:$0xf]  ;;  %2987 = vmatpush1.bf16.msra.mxu0 %v6404_v28 }
 0x124   : > { %v2138_v16 = vsel %vm651_vm0, %v2136_v57, %v2137_v55  ;;  %v896_v20 = vrot.slane %v864_v2, 4  ;;  %v813_v21 = vadd.f32 %v6231_v17, %v6711_v62  ;;  %v804_v23 = vpop.f32.mrb[29].mxu0  ;;  %9224 = vst [vmem:[#allocation13_spill] sm:$0xff] %v6958_v8  ;;  %2988 = vmatprep.subr.bf16.mxu0 %v9135_v36  ;;  %v3497_v19 = vrot.slane %v7042_v63, 4  ;;  %v3443_v63 = vld [vmem:[#allocation2 + $0x90] sm:$0xf0] }
 0x125   : > { %2464 = vrot.lane.b32.xlu0 %v2138_v16, %s6513_s24  ;;  %v895_v31 = vrot.slane %v863_v15, 4  ;;  %v805_v33 = vadd.f32 %v6711_v62, %v804_v23  ;;  %v6232_v38 = vpop.f32.mrb[30].mxu0  ;;  %v2075_v42 = vld [vmem:[#allocation2 + $0xc0] sm:$0xf0]  ;;  %v6976_v23 = vld [vmem:[#allocation2 + $0x48] sm:$0xf] }
 0x126   : > { %v6933_v41 = vld [vmem:[#allocation2 + $0xc8] sm:$0xf]  ;;  %943 = vst.msk [vmem:[#allocation2 + $0xe0] sm:$0xf0] %vm915_vm13, %v896_v20  ;;  %v849_v57 = vmax.f32 %v813_v21, 0.0  ;;  %v816_v53 = vadd.f32 %v6232_v38, %v6711_v62  ;;  %v807_v54 = vpop.f32.mrb[31].mxu0 }
 0x127   : > { %9222 = vst [vmem:[#allocation11_spill] sm:$0xff] %v6933_v41  ;;  %944 = vst.msk [vmem:[#allocation2 + $0xe8] sm:$0xf] %vm917_vm14, %v896_v20  ;;  %v847_v56 = vmax.f32 %v805_v33, 0.0  ;;  %v808_v4 = vadd.f32 %v6711_v62, %v807_v54  ;;  %v2145_v59 = vrot.slane %v2075_v42, 4  ;;  %v2146_v15 = vrot.slane %v6933_v41, 4 }
 0x128   : > { %941 = vst.msk [vmem:[#allocation2 + $0xd0] sm:$0xf0] %vm915_vm13, %v895_v31  ;;  %v2074_v16 = vld [vmem:[#allocation2 + $0xb0] sm:$0xf0]  ;;  %v850_v17 = vmax.f32 %v816_v53, 0.0  ;;  %v3485_v21 = vrot.slane %v6908_v58, 4 }
 0x129   : > { %v6947_v55 = vld [vmem:[#allocation2 + $0xb8] sm:$0xf]  ;;  %942 = vst.msk [vmem:[#allocation2 + $0xd8] sm:$0xf] %vm917_vm14, %v895_v31  ;;  %v2142_v20 = vrot.slane %v2074_v16, 4  ;;  %v848_v38 = vmax.f32 %v808_v4, 0.0  ;;  %v2147_v3 = vsel %vm651_vm0, %v2145_v59, %v2146_v15 }
 0x12a   : > { %9223 = vst [vmem:[#allocation12_spill] sm:$0xff] %v6947_v55  ;;  %v2143_v31 = vrot.slane %v6947_v55, 4  ;;  %v6963_v62 = vld [vmem:[#allocation2 + $0x10] sm:$0xf0]  ;;  %v6405_v42 = vld [vmem:[%s9128_s3 + $0x48] sm:$0xff]   ;;  %v866_v16 = vpack.c.bf16 %v850_v17, %v849_v57  ;;  %2470 = vrot.lane.b32.xlu1 %v2147_v3, %s6513_s24  ;;  %v3487_v4 = vrot.slane %v6942_v50, 4  ;;  %v6991_v26 = vsel %vm651_vm0, %v3484_v29, %v3485_v21 }
 0x12b   : > { %9225 = vst [vmem:[#allocation14_spill] sm:$0xff] %v6963_v62  ;;  %v865_v15 = vpack.c.bf16 %v848_v38, %v847_v56  ;;  %v3488_v33 = vrot.slane %v6923_v18, 4  ;;  %9226 = vst [vmem:[#allocation15_spill] sm:$0xff] %v6976_v23  ;;  %v1305_v3 = vrot.slane %v6963_v62, 4  ;;  %v1306_v50 = vrot.slane %v6958_v8, 4  ;;  %2989 = vmatpush1.bf16.msra.mxu0 %v6405_v42  ;;  %v6406_v54 = vld [vmem:[%s9128_s3 + $0x50] sm:$0xff]  }
 0x12c   : > { %v2144_v28 = vsel %vm651_vm0, %v2142_v20, %v2143_v31  ;;  %v898_v2 = vrot.slane %v866_v16, 4  ;;  %v6982_v57 = vld [vmem:[#allocation2 + $0x40] sm:$0xf0]  ;;  %v6984_v17 = vld [vmem:[#allocation2 + $0x28] sm:$0xf]  ;;  %2990 = vmatprep.subr.bf16.mxu0 %v9135_v36 }
 0x12d   : > { %2468 = vrot.lane.b32.xlu0 %v2144_v28, %s6513_s24  ;;  %9227 = vst [vmem:[#allocation16_spill] sm:$0xff] %v6984_v17  ;;  %v6986_v56 = vld [vmem:[#allocation2 + $0x20] sm:$0xf0]  ;;  %v897_v20 = vrot.slane %v865_v15, 4  ;;  %v7019_v1 = vsel %vm651_vm0, %v1305_v3, %v1306_v50  ;;  %v1309_v59 = vrot.slane %v6984_v17, 4 }
 0x12e   : > { %v6988_v38 = vld [vmem:[#allocation2 + $0xe8] sm:$0xf]  ;;  %v2077_v31 = vld [vmem:[#allocation2 + $0xe0] sm:$0xf0]  ;;  %947 = vst.msk [vmem:[#allocation2 + $0x100] sm:$0xf0] %vm915_vm13, %v898_v2 }
 0x12f   : > { %9228 = vst [vmem:[#allocation17_spill] sm:$0xff] %v6988_v38  ;;  %948 = vst.msk [vmem:[#allocation2 + $0x108] sm:$0xf] %vm917_vm14, %v898_v2  ;;  %v2151_v15 = vrot.slane %v2077_v31, 4  ;;  %v2152_v53 = vrot.slane %v6988_v38, 4  ;;  %v7012_v2 = vsel %vm651_vm0, %v3487_v4, %v3488_v33  ;;  %v3490_v33 = vrot.slane %v6982_v57, 4  ;;  %2991 = vmatpush1.bf16.msra.mxu0 %v6406_v54 }
 0x130   : > { %v7003_v29 = vld [vmem:[#allocation2 + $0xd8] sm:$0xf]  ;;  %945 = vst.msk [vmem:[#allocation2 + $0xf0] sm:$0xf0] %vm915_vm13, %v897_v20  ;;  %v2076_v42 = vld [vmem:[#allocation2 + $0xd0] sm:$0xf0]  ;;  %2992 = vmatprep.subr.bf16.mxu0 %v9135_v36 }
 0x131   : > { %9229 = vst [vmem:[#allocation18_spill] sm:$0xff] %v7003_v29  ;;  %946 = vst.msk [vmem:[#allocation2 + $0xf8] sm:$0xf] %vm917_vm14, %v897_v20  ;;  %v2149_v28 = vrot.slane %v7003_v29, 4  ;;  %v2153_v61 = vsel %vm651_vm0, %v2151_v15, %v2152_v53  ;;  %v2148_v10 = vrot.slane %v2076_v42, 4  ;;  %v3491_v4 = vrot.slane %v6976_v23, 4 }
 0x132   : > { %v3439_v20 = vld [vmem:[#allocation2 + $0x50] sm:$0xf0]  ;;  %2474 = vrot.lane.b32.xlu1 %v2153_v61, %s6513_s24  ;;  %v1308_v31 = vrot.slane %v6986_v56, 4  ;;  %v7028_v21 = vld [vmem:[#allocation2 + $0x38] sm:$0xf]  ;;  %vm5443_vm13 = vcmask 916480  }
 0x133   : > { %9231 = vst [vmem:[#allocation20_spill] sm:$0xff] %v7028_v21  ;;  %v6407_v53 = vld [vmem:[%s9128_s3 + $0x58] sm:$0xff]   ;;  %v2150_v57 = vsel %vm651_vm0, %v2148_v10, %v2149_v28  ;;  %v1256_v15 = vld [vmem:[#allocation2 + $0x30] sm:$0xf0]  ;;  %v3493_v42 = vrot.slane %v3439_v20, 4  ;;  %v7054_v60 = vsel %vm651_vm0, %v3490_v33, %v3491_v4  ;;  %v1312_v61 = vrot.slane %v7028_v21, 4 }
 0x134   : > { %2472 = vrot.lane.b32.xlu0 %v2150_v57, %s6513_s24  ;;  %v3440_v3 = vld [vmem:[#allocation2 + $0x60] sm:$0xf0]  ;;  %v7048_v36 = vld [vmem:[#allocation2 + $0x48] sm:$0xf]  ;;  %v7057_v16 = vsel %vm651_vm0, %v1308_v31, %v1309_v59  ;;  %v7060_v50 = vld [vmem:[#allocation2 + $0x78] sm:$0xf]  ;;  %2993 = vmatpush1.bf16.msra.mxu0 %v6407_v53 }
 0x135   : > { %9233 = vst [vmem:[#allocation22_spill] sm:$0xff] %v7048_v36  ;;  %v1257_v57 = vld [vmem:[#allocation2 + $0x40] sm:$0xf0]  ;;  %9235 = vst [vmem:[#allocation24_spill] sm:$0xff] %v7060_v50  ;;  %v3441_v10 = vld [vmem:[#allocation2 + $0x70] sm:$0xf0]  ;;  %v7069_v59 = vsel %vm651_vm0, %v3493_v42, %v3494_v12 }
 0x136   : > { %v7051_v54 = vld [vmem:[#allocation2 + $0x108] sm:$0xf]  ;;  %v2079_v20 = vld [vmem:[#allocation2 + $0x100] sm:$0xf0]  ;;  %v1311_v31 = vrot.slane %v1256_v15, 4  ;;  %v3496_v13 = vrot.slane %v3440_v3, 4 }
 0x137   : > { %9234 = vst [vmem:[#allocation23_spill] sm:$0xff] %v7051_v54  ;;  %v2157_v28 = vrot.slane %v2079_v20, 4  ;;  %v2158_v51 = vrot.slane %v7051_v54, 4  ;;  %v2078_v33 = vld [vmem:[#allocation2 + $0xf0] sm:$0xf0]  ;;  %v1314_v12 = vrot.slane %v1257_v57, 4 }
 0x138   : > { %v7063_v49 = vld [vmem:[#allocation2 + $0xf8] sm:$0xf]  ;;  %v2154_v20 = vrot.slane %v2078_v33, 4  ;;  %v1258_v56 = vld [vmem:[#allocation2 + $0x50] sm:$0xf0]  ;;  %v1315_v15 = vrot.slane %v7048_v36, 4  ;;  %v7090_v57 = vsel %vm651_vm0, %v1311_v31, %v1312_v61 }
 0x139   : > { %9236 = vst [vmem:[#allocation25_spill] sm:$0xff] %v7063_v49  ;;  %v2155_v4 = vrot.slane %v7063_v49, 4  ;;  %v2159_v53 = vsel %vm651_vm0, %v2157_v28, %v2158_v51  ;;  %v7074_v23 = vld [vmem:[#allocation2 + $0x58] sm:$0xf]  ;;  %v7080_v42 = vld [vmem:[#allocation2 + $0x88] sm:$0xf] }
 0x13a   : > { %9237 = vst [vmem:[#allocation26_spill] sm:$0xff] %v7074_v23  ;;  %2478 = vrot.lane.b32.xlu1 %v2159_v53, %s6513_s24  ;;  %9238 = vst [vmem:[#allocation27_spill] sm:$0xff] %v7080_v42  ;;  %v3499_v28 = vrot.slane %v3441_v10, 4  ;;  %v3500_v33 = vrot.slane %v7060_v50, 4  ;;  %v7092_v18 = vld [vmem:[#allocation2 + $0x68] sm:$0xf]  ;;  %v7103_v61 = vsel %vm651_vm0, %v1314_v12, %v1315_v15 }
 0x13b   : > { %v2156_v3 = vsel %vm651_vm0, %v2154_v20, %v2155_v4  ;;  %9239 = vst [vmem:[#allocation28_spill] sm:$0xff] %v7092_v18  ;;  %v1259_v51 = vld [vmem:[#allocation2 + $0x60] sm:$0xf0]  ;;  %v7095_v4 = vsel %vm651_vm0, %v3496_v13, %v3497_v19  ;;  %v3147_v53 = vld [vmem:[#allocation2 + $0x98] sm:$0xf]  ;;  %v1318_v13 = vrot.slane %v7074_v23, 4 }
 0x13c   : > { %2476 = vrot.lane.b32.xlu0 %v2156_v3, %s6513_s24  ;;  %v1317_v3 = vrot.slane %v1258_v56, 4  ;;  %v7107_v19 = vld [vmem:[#allocation2 + $0x78] sm:$0xf]  ;;  %v7110_v20 = vsel %vm651_vm0, %v3499_v28, %v3500_v33  ;;  %v3149_v38 = vld [vmem:[#allocation2 + $0xa8] sm:$0xf]  ;;  %v3502_v33 = vrot.slane %v3442_v32, 4 }
 0x13d   : > { %9240 = vst [vmem:[#allocation29_spill] sm:$0xff] %v7107_v19  ;;  %v3444_v12 = vld [vmem:[#allocation2 + $0xa0] sm:$0xf0]  ;;  %v7115_v15 = vld [vmem:[#allocation2 + $0x88] sm:$0xf]  ;;  %v3503_v10 = vrot.slane %v7080_v42, 4 }
 0x13e   : > { %3820 = vrot.lane.b32.xlu1 %v6991_v26, %s6513_s24  ;;  %9241 = vst [vmem:[#allocation30_spill] sm:$0xff] %v7115_v15  ;;  %v1261_v50 = vld [vmem:[#allocation2 + $0x80] sm:$0xf0]  ;;  %v1320_v26 = vrot.slane %v1259_v51, 4  ;;  %v1321_v23 = vrot.slane %v7092_v18, 4  ;;  %v3505_v28 = vrot.slane %v3443_v63, 4 }
 0x13f   : > { %v3151_v29 = vld [vmem:[#allocation2 + $0xb8] sm:$0xf]  ;;  %v3445_v36 = vld [vmem:[#allocation2 + $0xb0] sm:$0xf0]  ;;  %v3506_v32 = vrot.slane %v3147_v53, 4  ;;  %v1323_v42 = vrot.slane %v1260_v34, 4  ;;  %v7142_v30 = vsel %vm651_vm0, %v3502_v33, %v3503_v10 }
 0x140   : > { %1639 = vrot.lane.b32.xlu0 %v6940_v43, %s6513_s24  ;;  %v7129_v43 = vsel %vm651_vm0, %v1317_v3, %v1318_v13  ;;  %v7131_v31 = vld [vmem:[#allocation2 + $0x98] sm:$0xf]  ;;  %v1324_v54 = vrot.slane %v7107_v19, 4  ;;  %v1262_v41 = vld [vmem:[#allocation2 + $0x90] sm:$0xf0]  ;;  %v3508_v56 = vrot.slane %v3444_v12, 4  ;;  %v7145_v34 = vsel %vm651_vm0, %v1320_v26, %v1321_v23 }
 0x141   : > { %9242 = vst [vmem:[#allocation31_spill] sm:$0xff] %v7131_v31  ;;  %v1326_v49 = vrot.slane %v1261_v50, 4  ;;  %v1327_v3 = vrot.slane %v7115_v15, 4  ;;  %v3153_v63 = vld [vmem:[#allocation2 + $0xc8] sm:$0xf]  ;;  %v7152_v50 = vsel %vm651_vm0, %v3505_v28, %v3506_v32  ;;  %v3511_v55 = vrot.slane %v3445_v36, 4 }
 0x142   : > { %3822 = vrot.lane.b32.xlu1 %v7012_v2, %s6513_s24  ;;  %v3509_v2 = vrot.slane %v3149_v38, 4  ;;  %v3446_v53 = vld [vmem:[#allocation2 + $0xc0] sm:$0xf0]  ;;  %v7139_v13 = vld [vmem:[#allocation2 + $0xa8] sm:$0xf]  ;;  %v3512_v10 = vrot.slane %v3151_v29, 4  ;;  %v7158_v26 = vsel %vm651_vm0, %v1323_v42, %v1324_v54 }
 0x143   : > { %9243 = vst [vmem:[#allocation32_spill] sm:$0xff] %v7139_v13  ;;  %v1263_v21 = vld [vmem:[#allocation2 + $0xa0] sm:$0xf0]  ;;  %v3155_v12 = vld [vmem:[#allocation2 + $0xd8] sm:$0xf]  ;;  %v1329_v51 = vrot.slane %v1262_v41, 4  ;;  %v7168_v36 = vsel %vm651_vm0, %v1326_v49, %v1327_v3 }
 0x144   : > { %1641 = vrot.lane.b32.xlu0 %v7019_v1, %s6513_s24  ;;  %v3447_v38 = vld [vmem:[#allocation2 + $0xd0] sm:$0xf0]  ;;  %v7155_v33 = vld [vmem:[#allocation2 + $0xb8] sm:$0xf]  ;;  %v1330_v19 = vrot.slane %v7131_v31, 4  ;;  %v3514_v41 = vrot.slane %v3446_v53, 4 }
 0x145   : > { %9244 = vst [vmem:[#allocation33_spill] sm:$0xff] %v7155_v33  ;;  %v1264_v23 = vld [vmem:[#allocation2 + $0xb0] sm:$0xf0]  ;;  %v3157_v24 = vld [vmem:[#allocation2 + $0xe8] sm:$0xf]  ;;  %v3515_v32 = vrot.slane %v3153_v63, 4 }
 0x146   : > { %3824 = vrot.lane.b32.xlu1 %v7054_v60, %s6513_s24  ;;  %v7165_v60 = vsel %vm651_vm0, %v3508_v56, %v3509_v2  ;;  %v3448_v42 = vld [vmem:[#allocation2 + $0xe0] sm:$0xf0]  ;;  %v7172_v28 = vld [vmem:[#allocation2 + $0xc8] sm:$0xf]  ;;  %v1332_v1 = vrot.slane %v1263_v21, 4  ;;  %v1333_v18 = vrot.slane %v7139_v13, 4  ;;  %v7182_v54 = vsel %vm651_vm0, %v1329_v51, %v1330_v19 }
 0x147   : > { %9245 = vst [vmem:[#allocation34_spill] sm:$0xff] %v7172_v28  ;;  %v1265_v15 = vld [vmem:[#allocation2 + $0xc0] sm:$0xf0]  ;;  %v3517_v56 = vrot.slane %v3447_v38, 4  ;;  %v3518_v2 = vrot.slane %v3155_v12, 4  ;;  %v1335_v21 = vrot.slane %v1264_v23, 4  ;;  %v7190_v12 = vsel %vm651_vm0, %v3514_v41, %v3515_v32 }
 0x148   : > { %1643 = vrot.lane.b32.xlu0 %v7057_v16, %s6513_s24  ;;  %v7178_v16 = vsel %vm651_vm0, %v3511_v55, %v3512_v10  ;;  %v3159_v3 = vld [vmem:[#allocation2 + $0xf8] sm:$0xf]  ;;  %v1336_v53 = vrot.slane %v7155_v33, 4  ;;  %v1760_v29 = vld [vmem:[#allocation2 + $0x10] sm:$0xf8]  ;;  %v3521_v55 = vrot.slane %v3157_v24, 4  ;;  %v7193_v19 = vsel %vm651_vm0, %v1332_v1, %v1333_v18 }
 0x149   : > { %v1338_v10 = vrot.slane %v1265_v15, 4  ;;  %v1339_v49 = vrot.slane %v7172_v28, 4  ;;  %v3449_v38 = vld [vmem:[#allocation2 + $0xf0] sm:$0xf0]  ;;  %v7197_v63 = vld [vmem:[#allocation2 + $0xd8] sm:$0xf]  ;;  %v7202_v24 = vsel %vm651_vm0, %v3517_v56, %v3518_v2 }
 0x14a   : > { %3826 = vrot.lane.b32.xlu1 %v7069_v59, %s6513_s24  ;;  %v3520_v59 = vrot.slane %v3448_v42, 4  ;;  %9246 = vst [vmem:[#allocation35_spill] sm:$0xff] %v7197_v63  ;;  %v1266_v13 = vld [vmem:[#allocation2 + $0xd0] sm:$0xf0]  ;;  %v3161_v15 = vld [vmem:[#allocation2 + $0x108] sm:$0xf]  ;;  %v7206_v1 = vsel %vm651_vm0, %v1335_v21, %v1336_v53 }
 0x14b   : > { %v1793_v42 = vshrl.u32 %v1760_v29, 16  ;;  %v1796_v41 = vshll.u32 %v1760_v29, 16  ;;  %v2161_v18 = vld [vmem:[#allocation2 + $0x28] sm:$0x1f]  ;;  %v3523_v23 = vrot.slane %v3449_v38, 4  ;;  %v3524_v51 = vrot.slane %v3159_v3, 4 }
 0x14c   : > { %1645 = vrot.lane.b32.xlu0 %v7090_v57, %s6513_s24  ;;  %v3450_v33 = vld [vmem:[#allocation2 + $0x100] sm:$0xf0]  ;;  %v7215_v56 = vsel %vm651_vm0, %v1338_v10, %v1339_v49  ;;  %v1341_v2 = vrot.slane %v1266_v13, 4  ;;  %v1342_v29 = vrot.slane %v7197_v63, 4  ;;  %v7218_v57 = vld [vmem:[#allocation2 + $0xe8] sm:$0xf] }
 0x14d   : > { %9247 = vst [vmem:[#allocation36_spill] sm:$0xff] %v7218_v57  ;;  %v1762_v21 = vld [vmem:[#allocation2 + $0x20] sm:$0xf8]  ;;  %v2194_v38 = vshrl.u32 %v6765_v14, 16  ;;  %v2197_v3 = vshll.u32 %v6765_v14, 16  ;;  %v2202_v32 = vshrl.u32 %v2161_v18, 16  ;;  %v7229_v10 = vsel %vm651_vm0, %v3523_v23, %v3524_v51 }
 0x14e   : > { %3828 = vrot.lane.b32.xlu1 %v7095_v4, %s6513_s24  ;;  %v7212_v4 = vsel %vm651_vm0, %v3520_v59, %v3521_v55  ;;  %v1267_v53 = vld [vmem:[#allocation2 + $0xe0] sm:$0xf0]  ;;  %v2205_v28 = vshll.u32 %v2161_v18, 16  ;;  %v1795_v13 = vrot.slane %v1793_v42, 3  ;;  %v1798_v59 = vrot.slane %v1796_v41, 4 }
 0x14f   : > { %v7226_v55 = vld [vmem:[#allocation2 + $0xf8] sm:$0xf]  ;;  %v3526_v31 = vrot.slane %v3450_v33, 4  ;;  %v3527_v17 = vrot.slane %v3161_v15, 4  ;;  %v1268_v35 = vld [vmem:[#allocation2 + $0xf0] sm:$0xf0] }
 0x150   : > { %1647 = vrot.lane.b32.xlu0 %v7103_v61, %s6513_s24  ;;  %9248 = vst [vmem:[#allocation37_spill] sm:$0xff] %v7226_v55  ;;  %v1810_v14 = vshrl.u32 %v1762_v21, 16  ;;  %v1344_v18 = vrot.slane %v1267_v53, 4  ;;  %v1345_v49 = vrot.slane %v7218_v57, 4  ;;  %v1813_v42 = vshll.u32 %v1762_v21, 16 }
 0x151   : > { %v2196_v41 = vrot.slane %v2194_v38, 4  ;;  %v2199_v61 = vrot.slane %v2197_v3, 5  ;;  %v2204_v63 = vrot.slane %v2202_v32, 4  ;;  %v2207_v8 = vrot.slane %v2205_v28, 5  ;;  %v2162_v51 = vld [vmem:[#allocation2 + $0x38] sm:$0x1f] }
 0x152   : > { %3830 = vrot.lane.b32.xlu1 %v7110_v20, %s6513_s24  ;;  %v7234_v20 = vsel %vm651_vm0, %v1341_v2, %v1342_v29  ;;  %v1799_v33 = vor.u32 %v1798_v59, %v1795_v13  ;;  %v1347_v15 = vrot.slane %v1268_v35, 4  ;;  %v1812_v2 = vrot.slane %v1810_v14, 3  ;;  %v1764_v32 = vld [vmem:[#allocation2 + $0x30] sm:$0xf8] }
 0x153   : > { %v1815_v29 = vrot.slane %v1813_v42, 4  ;;  %v9249_v53 = vshrl.u32 %v6762_v9, 16  ;;  %v9250_v21 = vshll.u32 %v6762_v9, 16  ;;  %v2219_v35 = vshrl.u32 %v2162_v51, 16  ;;  %v2163_v9 = vld [vmem:[#allocation2 + $0x48] sm:$0x1f] }
 0x154   : > { %1649 = vrot.lane.b32.xlu0 %v7129_v43, %s6513_s24  ;;  %v1348_v43 = vrot.slane %v7226_v55, 4  ;;  %v2222_v3 = vshll.u32 %v2162_v51, 16  ;;  %v7252_v13 = vsel %vm651_vm0, %v1344_v18, %v1345_v49  ;;  %v2200_v59 = vor.u32 %v2199_v61, %v2196_v41  ;;  %v1766_v51 = vld [vmem:[#allocation2 + $0x40] sm:$0xf8] }
 0x155   : > { %v1820_v25 = vrot.slane %v9249_v53, 3  ;;  %v1823_v38 = vrot.slane %v9250_v21, 4  ;;  %v2208_v14 = vor.u32 %v2207_v8, %v2204_v63  ;;  %v1827_v21 = vshrl.u32 %v1764_v32, 16 }
 0x156   : > { %3832 = vrot.lane.b32.xlu1 %v7142_v30, %s6513_s24  ;;  %v7248_v30 = vsel %vm651_vm0, %v3526_v31, %v3527_v17  ;;  %v9252_v17 = vshll.u32 %v6782_v39, 16  ;;  %v1830_v28 = vshll.u32 %v1764_v32, 16  ;;  %v9253_v49 = vor.u32 %v6873_v7, %v6871_v5 }
 0x157   : > { %v7268_v63 = vsel %vm651_vm0, %v1347_v15, %v1348_v43  ;;  %v1816_v61 = vor.u32 %v1815_v29, %v1812_v2  ;;  %v2221_v18 = vrot.slane %v2219_v35, 4  ;;  %v2228_v41 = vshrl.u32 %v6795_v48, 16  ;;  %v1768_v35 = vld [vmem:[#allocation2 + $0x50] sm:$0xf8] }
 0x158   : > { %1651 = vrot.lane.b32.xlu0 %v7145_v34, %s6513_s24  ;;  %v9251_v34 = vshrl.u32 %v6782_v39, 16  ;;  %v2216_v31 = vrot.slane %v9252_v17, 5  ;;  %v7265_v8 = vsel %vm343_vm3, %v1799_v33, %v9253_v49  ;;  %v2224_v39 = vrot.slane %v2222_v3, 5 }
 0x159   : > { %v2231_v32 = vshll.u32 %v6795_v48, 16  ;;  %v2236_v17 = vshrl.u32 %v2163_v9, 16  ;;  %v2239_v5 = vshll.u32 %v2163_v9, 16  ;;  %v1844_v7 = vshrl.u32 %v1766_v51, 16 }
 0x15a   : > { %3834 = vrot.lane.b32.xlu1 %v7152_v50, %s6513_s24  ;;  %v2213_v53 = vrot.slane %v9251_v34, 4  ;;  %v1824_v50 = vor.u32 %v1823_v38, %v1820_v25  ;;  %v2164_v34 = vld [vmem:[#allocation2 + $0x58] sm:$0x1f]  ;;  %v1847_v33 = vshll.u32 %v1766_v51, 16  ;;  %v7277_v15 = vsel %vm1366_vm15, %v2200_v59, %v2208_v14 }
 0x15b   : > { %v7279_v43 = vrot.slane %v1827_v21, 3  ;;  %v2245_v2 = vshrl.u32 %v6819_v11, 16  ;;  %v2248_v48 = vshll.u32 %v6819_v11, 16  ;;  %v2253_v29 = vshrl.u32 %v2164_v34, 16 }
 0x15c   : > { %1653 = vrot.lane.b32.xlu0 %v7158_v26, %s6513_s24  ;;  %v2217_v25 = vor.u32 %v2216_v31, %v2213_v53  ;;  %v7281_v26 = vrot.slane %v1830_v28, 4  ;;  %v2256_v38 = vshll.u32 %v2164_v34, 16  ;;  %v2225_v3 = vor.u32 %v2224_v39, %v2221_v18 }
 0x15d   : > { %v7290_v59 = vrot.slane %v2228_v41, 4  ;;  %v7292_v14 = vrot.slane %v2231_v32, 5  ;;  %v7294_v28 = vrot.slane %v2236_v17, 4  ;;  %v7296_v9 = vrot.slane %v2239_v5, 5  ;;  %v1770_v32 = vld [vmem:[#allocation2 + $0x60] sm:$0xf8] }
 0x15e   : > { %3836 = vrot.lane.b32.xlu1 %v7165_v60, %s6513_s24  ;;  %v7288_v60 = vsel %vm343_vm3, %v1816_v61, %v1824_v50  ;;  %v7298_v53 = vrot.slane %v1844_v7, 3  ;;  %v7300_v11 = vrot.slane %v1847_v33, 4  ;;  %v9255_v31 = vshrl.u32 %v6793_v47, 16  ;;  %v2165_v50 = vld [vmem:[#allocation2 + $0x68] sm:$0x1f] }
 0x15f   : > { %9254 = vst [vmem:[#allocation38_spill] sm:$0xff] %v7288_v60  ;;  %v9256_v51 = vshll.u32 %v6793_v47, 16  ;;  %v1861_v61 = vshrl.u32 %v1768_v35, 16  ;;  %v7314_v18 = vrot.slane %v2245_v2, 4  ;;  %v7316_v39 = vrot.slane %v2248_v48, 5 }
 0x160   : > { %1655 = vrot.lane.b32.xlu0 %v7168_v36, %s6513_s24  ;;  %v7308_v21 = vrot.slane %v9255_v31, 3  ;;  %v7318_v41 = vrot.slane %v2253_v29, 4  ;;  %v7325_v34 = vsel %vm1366_vm15, %v2217_v25, %v2225_v3  ;;  %v1864_v17 = vshll.u32 %v1768_v35, 16  ;;  %v6452_v5 = vld [vmem:[#allocation2 + $0x60] sm:$0xf0] }
 0x161   : > { %v7312_v49 = vrot.slane %v9256_v51, 4  ;;  %9257 = vst [vmem:[#allocation39_spill] sm:$0xff] %v7325_v34  ;;  %v2262_v7 = vshrl.u32 %v6452_v5, 16  ;;  %v2265_v48 = vshll.u32 %v6452_v5, 16  ;;  %v2270_v29 = vshrl.u32 %v2165_v50, 16 }
 0x162   : > { %3838 = vrot.lane.b32.xlu1 %v7178_v16, %s6513_s24  ;;  %v7320_v16 = vrot.slane %v2256_v38, 5  ;;  %v7337_v25 = vrot.slane %v1861_v61, 3  ;;  %v2273_v38 = vshll.u32 %v2165_v50, 16  ;;  %v1878_v35 = vshrl.u32 %v1770_v32, 16  ;;  %v2166_v3 = vld [vmem:[#allocation2 + $0x78] sm:$0x1f] }
 0x163   : > { %v2251_v31 = vor.u32 %v7316_v39, %v7314_v18  ;;  %v9258_v5 = vshrl.u32 %v6814_v6, 16  ;;  %v1881_v23 = vshll.u32 %v1770_v32, 16  ;;  %v1866_v61 = vrot.slane %v1864_v17, 4  ;;  %v1774_v60 = vld [vmem:[#allocation2 + $0x80] sm:$0xf8] }
 0x164   : > { %1657 = vrot.lane.b32.xlu0 %v7182_v54, %s6513_s24  ;;  %v2259_v51 = vor.u32 %v7320_v16, %v7318_v41  ;;  %v9259_v50 = vshll.u32 %v6814_v6, 16  ;;  %v7351_v54 = vrot.slane %v2262_v7, 4  ;;  %v2279_v18 = vshrl.u32 %v6853_v52, 16 }
 0x165   : > { %v7345_v42 = vrot.slane %v9258_v5, 3  ;;  %v2267_v39 = vrot.slane %v2265_v48, 5  ;;  %v2272_v47 = vrot.slane %v2270_v29, 4  ;;  %v2282_v41 = vshll.u32 %v6853_v52, 16 }
 0x166   : > { %3840 = vrot.lane.b32.xlu1 %v7190_v12, %s6513_s24  ;;  %v1772_v12 = vld [vmem:[#allocation2 + $0x70] sm:$0xf8]  ;;  %v1874_v2 = vrot.slane %v9259_v50, 4  ;;  %v2287_v16 = vshrl.u32 %v2166_v3, 16  ;;  %v2275_v32 = vrot.slane %v2273_v38, 5  ;;  %v1880_v5 = vrot.slane %v1878_v35, 3 }
 0x167   : > { %v2290_v33 = vshll.u32 %v2166_v3, 16  ;;  %v1883_v17 = vrot.slane %v1881_v23, 4  ;;  %v9260_v6 = vshrl.u32 %v6808_v0, 16  ;;  %v9261_v7 = vshll.u32 %v6808_v0, 16 }
 0x168   : > { %1659 = vrot.lane.b32.xlu0 %v7193_v19, %s6513_s24  ;;  %v1895_v19 = vshrl.u32 %v1772_v12, 16  ;;  %v1898_v55 = vshll.u32 %v1772_v12, 16  ;;  %v2281_v52 = vrot.slane %v2279_v18, 4  ;;  %v2284_v48 = vrot.slane %v2282_v41, 5  ;;  %v6453_v12 = vld [vmem:[#allocation2 + $0x80] sm:$0xf0] }
 0x169   : > { %v1888_v50 = vrot.slane %v9260_v6, 3  ;;  %v1891_v36 = vrot.slane %v9261_v7, 4  ;;  %v2289_v29 = vrot.slane %v2287_v16, 4  ;;  %v2292_v57 = vrot.slane %v2290_v33, 5 }
 0x16a   : > { %3842 = vrot.lane.b32.xlu1 %v7202_v24, %s6513_s24  ;;  %v2167_v24 = vld [vmem:[#allocation2 + $0x88] sm:$0x1f]  ;;  %v1897_v38 = vrot.slane %v1895_v19, 3  ;;  %v1900_v35 = vrot.slane %v1898_v55, 4  ;;  %v9262_v3 = vshrl.u32 %v6846_v46, 16  ;;  %v9263_v34 = vshll.u32 %v6846_v46, 16 }
 0x16b   : > { %v1867_v0 = vor.u32 %v1866_v61, %v7337_v25  ;;  %v2296_v18 = vshrl.u32 %v6453_v12, 16  ;;  %v2299_v33 = vshll.u32 %v6453_v12, 16  ;;  %v2268_v41 = vor.u32 %v2267_v39, %v7351_v54  ;;  %v949_v39 = vld [vmem:[#allocation2] sm:$0xf8]  ;;  %v6454_v12 = vld [vmem:[#allocation2 + $0x90] sm:$0xf0] }
 0x16c   : > { %1661 = vrot.lane.b32.xlu0 %v7206_v1, %s6513_s24  ;;  %v1905_v23 = vrot.slane %v9262_v3, 3  ;;  %v1908_v6 = vrot.slane %v9263_v34, 4  ;;  %v1875_v1 = vor.u32 %v1874_v2, %v7345_v42  ;;  %v2276_v55 = vor.u32 %v2275_v32, %v2272_v47  ;;  %v432_v42 = vld [vmem:[#allocation2 + $0x98] sm:$0x10]  ;;  %v6408_v32 = vld [vmem:[%s9128_s3 + $0xc0] sm:$0xff]  }
 0x16d   : > { %v2304_v16 = vshrl.u32 %v2167_v24, 16  ;;  %v2307_v19 = vshll.u32 %v2167_v24, 16  ;;  %v1884_v46 = vor.u32 %v1883_v17, %v1880_v5  ;;  %v1892_v34 = vor.u32 %v1891_v36, %v1888_v50  ;;  %v1350_v24 = vld [vmem:[#allocation2 + $0x8] sm:$0x1f] }
 0x16e   : > { %3844 = vrot.lane.b32.xlu1 %v7212_v4, %s6513_s24  ;;  %v1912_v7 = vshrl.u32 %v1774_v60, 16  ;;  %v1915_v3 = vshll.u32 %v1774_v60, 16  ;;  %v2285_v4 = vor.u32 %v2284_v48, %v2281_v52  ;;  %v2293_v62 = vor.u32 %v2292_v57, %v2289_v29 }
 0x16f   : > { %v1901_v25 = vor.u32 %v1900_v35, %v1897_v38  ;;  %v1909_v61 = vor.u32 %v1908_v6, %v1905_v23  ;;  %v9264_v47 = vor.u32 %v6901_v45, %v6887_v27  ;;  %v9265_v2 = vor.u32 %v7281_v26, %v7279_v43 }
 0x170   : > { %1663 = vrot.lane.b32.xlu0 %v7215_v56, %s6513_s24  ;;  %v9266_v60 = vor.u32 %v7296_v9, %v7294_v28  ;;  %v9267_v57 = vor.u32 %v7292_v14, %v7290_v59  ;;  %v7394_v54 = vrot.slane %v2296_v18, 4  ;;  %v9268_v27 = vor.u32 %v7312_v49, %v7308_v21  ;;  %v3132_v28 = vld [vmem:[#allocation2 + $0x20] sm:$0xf8] }
 0x171   : > { %v7383_v56 = vsel %vm343_vm3, %v9265_v2, %v9264_v47  ;;  %v9269_v45 = vor.u32 %v7300_v11, %v7298_v53  ;;  %v7408_v26 = vsel %vm1366_vm15, %v2251_v31, %v2259_v51  ;;  %v7410_v59 = vrot.slane %v2304_v16, 4 }
 0x172   : > { %3846 = vrot.lane.b32.xlu1 %v7229_v10, %s6513_s24  ;;  %v7392_v36 = vsel %vm1366_vm15, %v9267_v57, %v9266_v60  ;;  %v7396_v10 = vrot.slane %v2299_v33, 5  ;;  %v7412_v14 = vrot.slane %v2307_v19, 5  ;;  %v7417_v9 = vsel %vm343_vm3, %v1867_v0, %v1875_v1 }
 0x173   : > { %v7405_v43 = vsel %vm343_vm3, %v9269_v45, %v9268_v27  ;;  %v7419_v21 = vrot.slane %v1912_v7, 3  ;;  %v7421_v53 = vrot.slane %v1915_v3, 4  ;;  %v433_v11 = vsel %vm6629_vm5, 0, %v432_v42  ;;  %v1351_v7 = vld [vmem:[#allocation2 + $0x18] sm:$0x1f] }
 0x174   : > { %1665 = vrot.lane.b32.xlu0 %v7234_v20, %s6513_s24  ;;  %v7426_v49 = vsel %vm1366_vm15, %v2268_v41, %v2276_v55  ;;  %v7429_v31 = vsel %vm343_vm3, %v1884_v46, %v1892_v34  ;;  %v7432_v51 = vsel %vm1366_vm15, %v2285_v4, %v2293_v62  ;;  %v7435_v20 = vsel %vm343_vm3, %v1901_v25, %v1909_v61  ;;  %v6455_v41 = vld [vmem:[#allocation2] sm:$0xf0]  ;;  %v382_v42 = vld [vmem:[#allocation2 + $0x90] sm:$0x8] }
 0x175   : > { %434 = vst [vmem:[#allocation2 + $0x98] sm:$0x10] %v433_v11  ;;  %v2302_v17 = vor.u32 %v7396_v10, %v7394_v54  ;;  %v9270_v50 = vshrl.u32 %v6837_v37, 16  ;;  %v9271_v52 = vshll.u32 %v6837_v37, 16  ;;  %v3165_v29 = vshrl.u32 %v3132_v28, 16 }
 0x176   : > { %v2449_v5 = vpop.permute.xlu0 %2448  ;;  %3848 = vrot.lane.b32.xlu1 %v7248_v30, %s6513_s24  ;;  %v2310_v35 = vor.u32 %v7412_v14, %v7410_v59  ;;  %v3168_v30 = vshll.u32 %v3132_v28, 16  ;;  %v9272_v23 = vshrl.u32 %v6908_v58, 16  ;;  %v1918_v37 = vor.u32 %v7421_v53, %v7419_v21 }
 0x177   : > { %v7446_v62 = vrot.slane %v9270_v50, 3  ;;  %v7450_v48 = vrot.slane %v9271_v52, 4  ;;  %v2482_v38 = vsel %vm1671_vm1, %v7265_v8, %v2449_v5  ;;  %v9273_v0 = vshll.u32 %v6908_v58, 16  ;;  %v9277_v52 = vld [vmem:[#allocation14_spill] sm:$0xff] }
 0x178   : > { %v7458_v6 = vrot.slane %v9272_v23, 3  ;;  %2722 = vmatmul.mubr.bf16.vlgmr.msra.gmra.mrb[0].mxu1 %v2482_v38  ;;  %1667 = vrot.lane.b32.xlu0 %v7252_v13, %s6513_s24  ;;  %v2313_v8 = vshrl.u32 %v6899_v44, 16  ;;  %v2316_v18 = vshll.u32 %v6454_v12, 16  ;;  %v982_v33 = vshrl.u32 %v949_v39, 16  ;;  %v6409_v13 = vld [vmem:[%s9128_s3 + $0xc8] sm:$0xff]   ;;  %v6410_v38 = vld [vmem:[%s9128_s3 + $0xd0] sm:$0xff]  }
 0x179   : > { %v7466_v1 = vrot.slane %v9273_v0, 4  ;;  %6029 = vmatprep.mubr.msk.bf16.mxu1 %vm1671_vm1, %v7277_v15  ;;  %v1368_v55 = vshrl.u32 %v6455_v41, 16  ;;  %v1371_v16 = vshll.u32 %v6455_v41, 16  ;;  %v1376_v19 = vshrl.u32 %v1350_v24, 16  ;;  %4062 = vmatpush1.bf16.msra.mxu1 %v6408_v32  ;;  %v9278_v23 = vld [vmem:[#allocation38_spill] sm:$0xff] }
 0x17a   : > { %v1926_v58 = vor.u32 %v7450_v48, %v7446_v62  ;;  %v7476_v46 = vrot.slane %v3165_v29, 3  ;;  %v985_v44 = vshll.u32 %v949_v39, 16  ;;  %v1379_v34 = vshll.u32 %v1350_v24, 16  ;;  %v2451_v47 = vpop.permute.xlu0 %2450  ;;  %v435_v24 = vld [vmem:[#allocation2 + $0xa8] sm:$0x10]  ;;  %v6412_v62 = vld [vmem:[%s9128_s3 + $0xe0] sm:$0xff]  }
 0x17b   : > { %v9274_v3 = vmov 0   ;;  %v7479_v15 = vrot.slane %v3168_v30, 4  ;;  %v1370_v4 = vrot.slane %v1368_v55, 4  ;;  %v1373_v25 = vrot.slane %v1371_v16, 5 }
 0x17c   : > { %4063 = vmatprep.subr.bf16.mxu1 %v9274_v3  ;;  %v1378_v61 = vrot.slane %v1376_v19, 4  ;;  %1669 = vrot.lane.b32.xlu0 %v7268_v63, %s6513_s24  ;;  %v2168_v2 = vld [vmem:[#allocation2 + $0x98] sm:$0x1f]  ;;  %v7483_v60 = vrot.slane %v2313_v8, 4  ;;  %v7485_v57 = vrot.slane %v2316_v18, 5  ;;  %v9275_v27 = vshrl.u32 %v6839_v40, 16 }
 0x17d   : > { %v1381_v59 = vrot.slane %v1379_v34, 5  ;;  %v2321_v14 = vshrl.u32 %v2168_v2, 16  ;;  %v2324_v28 = vshll.u32 %v2168_v2, 16  ;;  %v984_v11 = vrot.slane %v982_v33, 3  ;;  %4064 = vmatpush1.bf16.msra.mxu1 %v6409_v13  ;;  %v951_v33 = vld [vmem:[#allocation2 + $0x10] sm:$0xf8] }
 0x17e   : > { %v7489_v45 = vrot.slane %v9275_v27, 3  ;;  %v1374_v39 = vor.u32 %v1373_v25, %v1370_v4  ;;  %v987_v32 = vrot.slane %v985_v44, 4  ;;  %v9276_v5 = vshll.u32 %v6839_v40, 16  ;;  %4065 = vmatprep.subr.bf16.mxu1 %v9274_v3  ;;  %v2453_v30 = vpop.permute.xlu1 %2452  ;;  %v9280_v13 = vld [vmem:[#allocation39_spill] sm:$0xff]  ;;  %v6456_v2 = vld [vmem:[#allocation2 + $0xa0] sm:$0xf0] }
 0x17f   : > { %v1382_v63 = vor.u32 %v1381_v59, %v1378_v61  ;;  %v1385_v29 = vshrl.u32 %v9277_v52, 16  ;;  %v2486_v0 = vsel %vm1671_vm1, %v9278_v23, %v2451_v47  ;;  %v1388_v8 = vshll.u32 %v9277_v52, 16  ;;  %v385_v27 = vld [vmem:[#allocation2 + $0xa0] sm:$0x8] }
 0x180   : > { %v995_v50 = vrot.slane %v9276_v5, 4  ;;  %v1393_v12 = vshrl.u32 %v1351_v7, 16  ;;  %v383_v40 = vsel %vm6635_vm8, 0, %v382_v42  ;;  %2730 = vmatmul.mubr.bf16.gmra.mrb[4].mxu1 %v2486_v0  ;;  %v2323_v41 = vrot.slane %v2321_v14, 4 }
 0x181   : > { %v2326_v55 = vrot.slane %v2324_v28, 5  ;;  %v1383_v16 = vsel %vm1366_vm15, %v1374_v39, %v1382_v63  ;;  %v1396_v19 = vshll.u32 %v1351_v7, 16  ;;  %384 = vst [vmem:[#allocation2 + $0x90] sm:$0x8] %v383_v40  ;;  %6030 = vmatprep.mubr.msk.bf16.mxu1 %vm1671_vm1, %v9280_v13  ;;  %v7510_v44 = vsel %vm1366_vm15, %v2302_v17, %v2310_v35  ;;  %4066 = vmatpush1.bf16.msra.mxu1 %v6410_v38  ;;  %v6411_v17 = vld [vmem:[%s9128_s3 + $0xd8] sm:$0xff]   ;;  %v9281_v28 = vld [vmem:[#allocation13_spill] sm:$0xff] }
 0x182   : > { %v3171_v34 = vor.u32 %v7479_v15, %v7476_v46  ;;  %v3179_v4 = vor.u32 %v7466_v1, %v7458_v6  ;;  %6056 = vmatprep.mubr.msk.bf16.mxu0 %vm1671_vm1, %v1383_v16  ;;  %v436_v7 = vsel %vm6629_vm5, 0, %v435_v24  ;;  %v2319_v25 = vor.u32 %v7485_v57, %v7483_v60  ;;  %4067 = vmatprep.subr.bf16.mxu1 %v9274_v3  ;;  %v2455_v15 = vpop.permute.xlu1 %2454  ;;  %v9284_v63 = vld [vmem:[#allocation9_spill] sm:$0xff] }
 0x183   : > { %v988_v61 = vor.u32 %v987_v32, %v984_v11  ;;  %437 = vst [vmem:[#allocation2 + $0xa8] sm:$0x10] %v436_v7  ;;  %v999_v54 = vshrl.u32 %v951_v33, 16  ;;  %v1002_v10 = vshll.u32 %v951_v33, 16  ;;  %v996_v35 = vor.u32 %v995_v50, %v7489_v45  ;;  %v6457_v40 = vld [vmem:[#allocation2 + $0x20] sm:$0xf0] }
 0x184   : > { %v1387_v6 = vrot.slane %v1385_v29, 4  ;;  %v1390_v1 = vrot.slane %v1388_v8, 5  ;;  %v1395_v46 = vrot.slane %v1393_v12, 4  ;;  %v2327_v42 = vor.u32 %v2326_v55, %v2323_v41 }
 0x185   : > { %v1398_v47 = vrot.slane %v1396_v19, 5  ;;  %v2330_v60 = vshrl.u32 %v6456_v2, 16  ;;  %v2333_v57 = vshll.u32 %v6456_v2, 16  ;;  %v1001_v59 = vrot.slane %v999_v54, 3  ;;  %4068 = vmatpush1.bf16.msra.mxu1 %v6411_v17  ;;  %v438_v19 = vld [vmem:[#allocation2 + $0xb8] sm:$0x10] }
 0x186   : > { %v1004_v14 = vrot.slane %v1002_v10, 4  ;;  %v9282_v11 = vshrl.u32 %v9281_v28, 16  ;;  %v9283_v32 = vshll.u32 %v9281_v28, 16  ;;  %v7537_v5 = vsel %vm343_vm3, %v1918_v37, %v1926_v58  ;;  %v1352_v58 = vld [vmem:[#allocation2 + $0x28] sm:$0x1f]  ;;  %4069 = vmatprep.subr.bf16.mxu1 %v9274_v3  ;;  %v2459_v13 = vpop.permute.xlu1 %2458 }
 0x187   : > { %v7540_v50 = vsel %vm343_vm3, %v3171_v34, %v3179_v4  ;;  %v9285_v52 = vshrl.u32 %v9284_v63, 16  ;;  %v9286_v24 = vshll.u32 %v9284_v63, 16  ;;  %v2490_v21 = vsel %vm1671_vm1, %v7383_v56, %v2453_v30  ;;  %v2457_v34 = vpop.permute.xlu0 %2456 }
 0x188   : > { %v1009_v39 = vrot.slane %v9282_v11, 3  ;;  %v1012_v45 = vrot.slane %v9283_v32, 4  ;;  %v7556_v53 = vsel %vm343_vm3, %v988_v61, %v996_v35  ;;  %v1391_v48 = vor.u32 %v1390_v1, %v1387_v6  ;;  %v1776_v37 = vld [vmem:[#allocation2 + $0x90] sm:$0xf8]  ;;  %2738 = vmatmul.mubr.bf16.gmra.mrb[8].mxu1 %v2490_v21  ;;  %v953_v6 = vld [vmem:[#allocation2 + $0x20] sm:$0xf8] }
 0x189   : > { %v7544_v29 = vrot.slane %v9285_v52, 3  ;;  %v7548_v38 = vrot.slane %v9286_v24, 4  ;;  %v386_v23 = vsel %vm6635_vm8, 0, %v385_v27  ;;  %v1399_v0 = vor.u32 %v1398_v47, %v1395_v46  ;;  %6031 = vmatprep.mubr.msk.bf16.mxu1 %vm1671_vm1, %v7392_v36  ;;  %4070 = vmatpush1.bf16.msra.mxu1 %v6412_v62  ;;  %v6413_v36 = vld [vmem:[%s9128_s3 + $0xe8] sm:$0xff]   ;;  %v6458_v52 = vld [vmem:[#allocation2 + $0xb0] sm:$0xf0] }
 0x18a   : > { %v7561_v8 = vrot.slane %v2330_v60, 4  ;;  %v7563_v12 = vrot.slane %v2333_v57, 5  ;;  %v1402_v33 = vshrl.u32 %v6457_v40, 16  ;;  %387 = vst [vmem:[#allocation2 + $0xa0] sm:$0x8] %v386_v23  ;;  %v7568_v56 = vsel %vm1366_vm15, %v2319_v25, %v2327_v42  ;;  %4071 = vmatprep.subr.bf16.mxu1 %v9274_v3 }
 0x18b   : > { %v2169_v30 = vld [vmem:[#allocation2 + $0xa8] sm:$0x1f]  ;;  %v1005_v41 = vor.u32 %v1004_v14, %v1001_v59  ;;  %v1013_v55 = vor.u32 %v1012_v45, %v1009_v39  ;;  %v1405_v16 = vshll.u32 %v6457_v40, 16  ;;  %v1929_v4 = vshrl.u32 %v1776_v37, 16 }
 0x18c   : > { %v1943_v7 = vor.u32 %v7548_v38, %v7544_v29  ;;  %v1410_v61 = vshrl.u32 %v1352_v58, 16  ;;  %v1413_v54 = vshll.u32 %v1352_v58, 16  ;;  %v2494_v25 = vsel %vm1671_vm1, %v7405_v43, %v2455_v15 }
 0x18d   : > { %v1932_v10 = vshll.u32 %v1776_v37, 16  ;;  %v2338_v17 = vshrl.u32 %v2169_v30, 16  ;;  %v2341_v35 = vshll.u32 %v2169_v30, 16  ;;  %v7579_v1 = vsel %vm1366_vm15, %v1391_v48, %v1399_v0  ;;  %4072 = vmatpush1.bf16.msra.mxu1 %v6413_v36  ;;  %v9287_v37 = vld [vmem:[#allocation16_spill] sm:$0xff]  ;;  %v6459_v36 = vld [vmem:[#allocation2 + $0x30] sm:$0xf0] }
 0x18e   : > { %v2336_v46 = vor.u32 %v7563_v12, %v7561_v8  ;;  %v1404_v42 = vrot.slane %v1402_v33, 4  ;;  %v439_v47 = vsel %vm6629_vm5, 0, %v438_v19  ;;  %v7587_v2 = vsel %vm1671_vm1, %v7417_v9, %v2457_v34  ;;  %v6414_v9 = vld [vmem:[%s9128_s3 + $0xf0] sm:$0xff]   ;;  %4073 = vmatprep.subr.bf16.mxu1 %v9274_v3  ;;  %v6417_v8 = vld [vmem:[%s9128_s3 + $0x108] sm:$0xff]  }
 0x18f   : > { %v7591_v43 = vsel %vm1671_vm1, %v7429_v31, %v2459_v13  ;;  %v7594_v15 = vsel %vm343_vm3, %v1005_v41, %v1013_v55  ;;  %v1407_v60 = vrot.slane %v1405_v16, 5  ;;  %440 = vst [vmem:[#allocation2 + $0xb8] sm:$0x10] %v439_v47  ;;  %v7596_v57 = vrot.slane %v1929_v4, 3  ;;  %v388_v33 = vld [vmem:[#allocation2 + $0xb0] sm:$0x8] }
 0x190   : > { %v1412_v27 = vrot.slane %v1410_v61, 4  ;;  %v1415_v59 = vrot.slane %v1413_v54, 5  ;;  %v1016_v14 = vshrl.u32 %v953_v6, 16  ;;  %v1934_v28 = vrot.slane %v1932_v10, 4  ;;  %2746 = vmatmul.mubr.bf16.gmra.mrb[12].mxu1 %v2494_v25  ;;  %v9290_v55 = vld [vmem:[#allocation8_spill] sm:$0xff] }
 0x191   : > { %v7601_v11 = vrot.slane %v2338_v17, 4  ;;  %v2343_v31 = vrot.slane %v2341_v35, 5  ;;  %v1778_v39 = vld [vmem:[#allocation2 + $0xa0] sm:$0xf8]  ;;  %v1019_v32 = vshll.u32 %v953_v6, 16  ;;  %v2347_v24 = vshrl.u32 %v6458_v52, 16  ;;  %6032 = vmatprep.mubr.msk.bf16.mxu1 %vm1671_vm1, %v7408_v26  ;;  %4074 = vmatpush1.bf16.msra.mxu1 %v6414_v9 }
 0x192   : > { %v1946_v45 = vshrl.u32 %v1778_v39, 16  ;;  %v1949_v63 = vshll.u32 %v1778_v39, 16  ;;  %v2350_v62 = vshll.u32 %v6458_v52, 16  ;;  %v1018_v21 = vrot.slane %v1016_v14, 3  ;;  %v1353_v4 = vld [vmem:[#allocation2 + $0x38] sm:$0x1f]  ;;  %4075 = vmatprep.subr.bf16.mxu1 %v9274_v3 }
 0x193   : > { %v1021_v48 = vrot.slane %v1019_v32, 4  ;;  %v9288_v58 = vshrl.u32 %v9287_v37, 16  ;;  %v9289_v0 = vshll.u32 %v9287_v37, 16  ;;  %v1408_v30 = vor.u32 %v1407_v60, %v1404_v42  ;;  %v6415_v26 = vld [vmem:[%s9128_s3 + $0xf8] sm:$0xff]   ;;  %v2463_v60 = vpop.permute.xlu1 %2462  ;;  %v441_v32 = vld [vmem:[#allocation2 + $0xc8] sm:$0x10] }
 0x194   : > { %v1416_v41 = vor.u32 %v1415_v59, %v1412_v27  ;;  %v9291_v16 = vshrl.u32 %v9290_v55, 16  ;;  %v9292_v13 = vshll.u32 %v9290_v55, 16  ;;  %v1948_v61 = vrot.slane %v1946_v45, 3  ;;  %v2461_v27 = vpop.permute.xlu0 %2460  ;;  %v391_v55 = vld [vmem:[#allocation2 + $0xc0] sm:$0x8] }
 0x195   : > { %v1026_v23 = vrot.slane %v9288_v58, 3  ;;  %v1029_v40 = vrot.slane %v9289_v0, 4  ;;  %v1951_v54 = vrot.slane %v1949_v63, 4  ;;  %v1419_v25 = vshrl.u32 %v6459_v36, 16  ;;  %4076 = vmatpush1.bf16.msra.mxu1 %v6415_v26  ;;  %v6461_v26 = vld [vmem:[#allocation2 + $0x40] sm:$0xf0] }
 0x196   : > { %v1956_v19 = vrot.slane %v9291_v16, 3  ;;  %v1959_v34 = vrot.slane %v9292_v13, 4  ;;  %v1422_v10 = vshll.u32 %v6459_v36, 16  ;;  %v1935_v17 = vor.u32 %v1934_v28, %v7596_v57  ;;  %v2170_v6 = vld [vmem:[#allocation2 + $0xb8] sm:$0x1f]  ;;  %4077 = vmatprep.subr.bf16.mxu1 %v9274_v3 }
 0x197   : > { %v2344_v35 = vor.u32 %v2343_v31, %v7601_v11  ;;  %v7620_v42 = vrot.slane %v2347_v24, 4  ;;  %v389_v47 = vsel %vm6635_vm8, 0, %v388_v33  ;;  %v7624_v59 = vrot.slane %v2350_v62, 5  ;;  %v6416_v31 = vld [vmem:[%s9128_s3 + $0x100] sm:$0xff]  }
 0x198   : > { %v1022_v14 = vor.u32 %v1021_v48, %v1018_v21  ;;  %v1030_v9 = vor.u32 %v1029_v40, %v1026_v23  ;;  %v1427_v39 = vshrl.u32 %v1353_v4, 16  ;;  %390 = vst [vmem:[#allocation2 + $0xb0] sm:$0x8] %v389_v47  ;;  %v7627_v45 = vsel %vm1366_vm15, %v1408_v30, %v1416_v41  ;;  %2754 = vmatmul.mubr.bf16.gmra.mrb[16].mxu1 %v7587_v2  ;;  %v955_v23 = vld [vmem:[#allocation2 + $0x30] sm:$0xf8] }
 0x199   : > { %v2355_v57 = vshrl.u32 %v2170_v6, 16  ;;  %v2358_v28 = vshll.u32 %v2170_v6, 16  ;;  %v1430_v11 = vshll.u32 %v1353_v4, 16  ;;  %v1952_v63 = vor.u32 %v1951_v54, %v1948_v61  ;;  %6033 = vmatprep.mubr.msk.bf16.mxu1 %vm1671_vm1, %v7426_v49  ;;  %v6460_v33 = vld [vmem:[#allocation2 + $0xc0] sm:$0xf0]  ;;  %4078 = vmatpush1.bf16.msra.mxu1 %v6416_v31 }
 0x19a   : > { %v1960_v52 = vor.u32 %v1959_v34, %v1956_v19  ;;  %v7632_v24 = vrot.slane %v1419_v25, 4  ;;  %v7634_v62 = vrot.slane %v1422_v10, 5  ;;  %v7640_v21 = vsel %vm1671_vm1, %v7435_v20, %v2461_v27  ;;  %4079 = vmatprep.subr.bf16.mxu1 %v9274_v3  ;;  %v9293_v19 = vld [vmem:[#allocation12_spill] sm:$0xff]  ;;  %v1354_v6 = vld [vmem:[#allocation2 + $0x48] sm:$0x1f] }
 0x19b   : > { %v7644_v48 = vsel %vm1671_vm1, %v7537_v5, %v2463_v60  ;;  %v1944_v37 = vsel %vm343_vm3, %v1935_v17, %v1943_v7  ;;  %v442_v58 = vsel %vm6629_vm5, 0, %v441_v32  ;;  %v7658_v20 = vsel %vm1366_vm15, %v2336_v46, %v2344_v35  ;;  %v2467_v7 = vpop.permute.xlu1 %2466 }
 0x19c   : > { %v2353_v5 = vor.u32 %v7624_v59, %v7620_v42  ;;  %v7663_v29 = vsel %vm343_vm3, %v1022_v14, %v1030_v9  ;;  %v1429_v38 = vrot.slane %v1427_v39, 4  ;;  %443 = vst [vmem:[#allocation2 + $0xc8] sm:$0x10] %v442_v58  ;;  %v2357_v2 = vrot.slane %v2355_v57, 4  ;;  %v2465_v42 = vpop.permute.xlu0 %2464  ;;  %v9296_v59 = vld [vmem:[#allocation20_spill] sm:$0xff]  ;;  %v6418_v39 = vld [vmem:[%s9128_s3 + $0x110] sm:$0xff]  }
 0x19d   : > { %v2360_v0 = vrot.slane %v2358_v28, 5  ;;  %v1432_v40 = vrot.slane %v1430_v11, 5  ;;  %v2364_v49 = vshrl.u32 %v6460_v33, 16  ;;  %v1961_v12 = vsel %vm343_vm3, %v1952_v63, %v1960_v52  ;;  %4080 = vmatpush1.bf16.msra.mxu1 %v6417_v8  ;;  %v444_v63 = vld [vmem:[#allocation2 + $0xd8] sm:$0x10] }
 0x19e   : > { %v1425_v46 = vor.u32 %v7634_v62, %v7632_v24  ;;  %v2367_v30 = vshll.u32 %v6460_v33, 16  ;;  %v1033_v41 = vshrl.u32 %v955_v23, 16  ;;  %v9294_v13 = vshrl.u32 %v9293_v19, 16  ;;  %4081 = vmatprep.subr.bf16.mxu1 %v9274_v3 }
 0x19f   : > { %v1780_v16 = vld [vmem:[#allocation2 + $0xb0] sm:$0xf8]  ;;  %v1036_v4 = vshll.u32 %v955_v23, 16  ;;  %v1436_v61 = vshrl.u32 %v6461_v26, 16  ;;  %v1439_v54 = vshll.u32 %v6461_v26, 16  ;;  %v7677_v36 = vsel %vm1671_vm1, %v1961_v12, %v2467_v7 }
 0x1a0   : > { %v7674_v34 = vrot.slane %v9294_v13, 3  ;;  %v1963_v25 = vshrl.u32 %v1780_v16, 16  ;;  %v1966_v10 = vshll.u32 %v1780_v16, 16  ;;  %v9295_v17 = vshll.u32 %v9293_v19, 16  ;;  %2762 = vmatmul.mubr.bf16.gmra.mrb[20].mxu1 %v7591_v43  ;;  %v9299_v13 = vld [vmem:[#allocation11_spill] sm:$0xff] }
 0x1a1   : > { %v2361_v47 = vor.u32 %v2360_v0, %v2357_v2  ;;  %v1433_v60 = vor.u32 %v1432_v40, %v1429_v38  ;;  %v7683_v27 = vrot.slane %v2364_v49, 4  ;;  %v9297_v14 = vshrl.u32 %v9296_v59, 16  ;;  %6034 = vmatprep.mubr.msk.bf16.mxu1 %vm1671_vm1, %v7432_v51  ;;  %v957_v0 = vld [vmem:[#allocation2 + $0x40] sm:$0xf8]  ;;  %4082 = vmatpush1.bf16.msra.mxu1 %v6418_v39  ;;  %v6419_v51 = vld [vmem:[%s9128_s3 + $0x118] sm:$0xff]  }
 0x1a2   : > { %v7681_v35 = vrot.slane %v9295_v17, 4  ;;  %v7692_v32 = vrot.slane %v2367_v30, 5  ;;  %v7694_v57 = vrot.slane %v1033_v41, 3  ;;  %v9298_v28 = vshll.u32 %v9296_v59, 16  ;;  %4083 = vmatprep.subr.bf16.mxu1 %v9274_v3  ;;  %v7747_v59 = vpop.permute.xlu1 %2470 }
 0x1a3   : > { %v7687_v9 = vrot.slane %v9297_v14, 3  ;;  %v392_v31 = vsel %vm6635_vm8, 0, %v391_v55  ;;  %v2171_v52 = vld [vmem:[#allocation2 + $0xc8] sm:$0x1f]  ;;  %v7704_v24 = vrot.slane %v1036_v4, 4  ;;  %v7706_v62 = vrot.slane %v1436_v61, 4 }
 0x1a4   : > { %v7698_v11 = vrot.slane %v9298_v28, 4  ;;  %v7708_v58 = vrot.slane %v1439_v54, 5  ;;  %v1444_v23 = vshrl.u32 %v1354_v6, 16  ;;  %393 = vst [vmem:[#allocation2 + $0xc0] sm:$0x8] %v392_v31  ;;  %v7713_v38 = vsel %vm1671_vm1, %v1944_v37, %v2465_v42  ;;  %v9302_v31 = vld [vmem:[#allocation22_spill] sm:$0xff] }
 0x1a5   : > { %v1965_v7 = vrot.slane %v1963_v25, 3  ;;  %v1968_v2 = vrot.slane %v1966_v10, 4  ;;  %v1977_v43 = vor.u32 %v7681_v35, %v7674_v34  ;;  %v7718_v40 = vsel %vm1366_vm15, %v1425_v46, %v1433_v60  ;;  %v1355_v25 = vld [vmem:[#allocation2 + $0x58] sm:$0x1f]  ;;  %v2469_v10 = vpop.permute.xlu0 %2468  ;;  %v394_v60 = vld [vmem:[#allocation2 + $0xd0] sm:$0x8]  ;;  %4084 = vmatpush1.bf16.msra.mxu1 %v6419_v51 }
 0x1a6   : > { %v2372_v33 = vshrl.u32 %v2171_v52, 16  ;;  %v1447_v49 = vshll.u32 %v1354_v6, 16  ;;  %v445_v8 = vsel %vm6629_vm5, 0, %v444_v63  ;;  %v7726_v37 = vsel %vm1366_vm15, %v2353_v5, %v2361_v47  ;;  %v6462_v6 = vld [vmem:[#allocation2 + $0xd0] sm:$0xf0] }
 0x1a7   : > { %v2375_v30 = vshll.u32 %v2171_v52, 16  ;;  %v1047_v46 = vor.u32 %v7698_v11, %v7687_v9  ;;  %446 = vst [vmem:[#allocation2 + $0xd8] sm:$0x10] %v445_v8  ;;  %v1039_v41 = vor.u32 %v7704_v24, %v7694_v57  ;;  %v1442_v55 = vor.u32 %v7708_v58, %v7706_v62 }
 0x1a8   : > { %v7737_v16 = vrot.slane %v1444_v23, 4  ;;  %v1050_v5 = vshrl.u32 %v957_v0, 16  ;;  %v1969_v19 = vor.u32 %v1968_v2, %v1965_v7  ;;  %v9300_v34 = vshrl.u32 %v9299_v13, 16  ;;  %2770 = vmatmul.mubr.bf16.gmra.mrb[24].mxu1 %v7640_v21 }
 0x1a9   : > { %v9301_v26 = vshll.u32 %v9299_v13, 16  ;;  %v1053_v54 = vshll.u32 %v957_v0, 16  ;;  %v2374_v17 = vrot.slane %v2372_v33, 4  ;;  %v1449_v35 = vrot.slane %v1447_v49, 5  ;;  %v6463_v49 = vld [vmem:[#allocation2 + $0x50] sm:$0xf0]  ;;  %6035 = vmatprep.mubr.msk.bf16.mxu1 %vm1671_vm1, %v7510_v44 }
 0x1aa   : > { %v7741_v4 = vrot.slane %v9300_v34, 3  ;;  %v2381_v42 = vshrl.u32 %v6462_v6, 16  ;;  %v2384_v47 = vshll.u32 %v6462_v6, 16  ;;  %v2377_v14 = vrot.slane %v2375_v30, 5  ;;  %v447_v34 = vld [vmem:[#allocation2 + $0xe8] sm:$0x10] }
 0x1ab   : > { %v7745_v61 = vrot.slane %v9301_v26, 4  ;;  %v1782_v39 = vld [vmem:[#allocation2 + $0xc0] sm:$0xf8]  ;;  %v1052_v28 = vrot.slane %v1050_v5, 3  ;;  %v9303_v63 = vshrl.u32 %v9302_v31, 16  ;;  %v9304_v23 = vshll.u32 %v9302_v31, 16  ;;  %v7759_v26 = vpop.permute.xlu0 %2472 }
 0x1ac   : > { %v1980_v2 = vshrl.u32 %v1782_v39, 16  ;;  %v1983_v0 = vshll.u32 %v1782_v39, 16  ;;  %v1055_v33 = vrot.slane %v1053_v54, 4  ;;  %v1453_v8 = vshrl.u32 %v6463_v49, 16 }
 0x1ad   : > { %v1060_v52 = vrot.slane %v9303_v63, 3  ;;  %v1063_v7 = vrot.slane %v9304_v23, 4  ;;  %v1978_v51 = vsel %vm343_vm3, %v1969_v19, %v1977_v43  ;;  %v1994_v30 = vor.u32 %v7745_v61, %v7741_v4  ;;  %v7763_v63 = vpop.permute.xlu1 %2474 }
 0x1ae   : > { %v1456_v5 = vshll.u32 %v6463_v49, 16  ;;  %v1461_v13 = vshrl.u32 %v1355_v25, 16  ;;  %v1982_v6 = vrot.slane %v1980_v2, 3  ;;  %v1985_v21 = vrot.slane %v1983_v0, 4  ;;  %v2172_v31 = vld [vmem:[#allocation2 + $0xd8] sm:$0x1f] }
 0x1af   : > { %v1464_v39 = vshll.u32 %v1355_v25, 16  ;;  %v395_v54 = vsel %vm6635_vm8, 0, %v394_v60  ;;  %v2378_v44 = vor.u32 %v2377_v14, %v2374_v17  ;;  %v1450_v43 = vor.u32 %v1449_v35, %v7737_v16  ;;  %v959_v2 = vld [vmem:[#allocation2 + $0x50] sm:$0xf8]  ;;  %v7778_v16 = vpop.permute.xlu0 %2476 }
 0x1b0   : > { %v7766_v19 = vrot.slane %v2381_v42, 4  ;;  %v7768_v4 = vrot.slane %v2384_v47, 5  ;;  %396 = vst [vmem:[#allocation2 + $0xd0] sm:$0x8] %v395_v54  ;;  %v1056_v61 = vor.u32 %v1055_v33, %v1052_v28  ;;  %v1064_v23 = vor.u32 %v1063_v7, %v1060_v52  ;;  %v9305_v47 = vld [vmem:[#allocation18_spill] sm:$0xff]  ;;  %2778 = vmatmul.mubr.bf16.gmra.mrb[28].mxu1 %v7644_v48 }
 0x1b1   : > { %v7770_v49 = vrot.slane %v1453_v8, 4  ;;  %v448_v25 = vsel %vm6629_vm5, 0, %v447_v34  ;;  %v2389_v0 = vshrl.u32 %v2172_v31, 16  ;;  %v2392_v60 = vshll.u32 %v2172_v31, 16  ;;  %v7788_v33 = vpop.permute.xlu1 %2478  ;;  %6036 = vmatprep.mubr.msk.bf16.mxu1 %vm1671_vm1, %v7568_v56  ;;  %v1356_v56 = vld [vmem:[#allocation2 + $0x68] sm:$0x1f] }
 0x1b2   : > { %v7774_v12 = vrot.slane %v1456_v5, 5  ;;  %v7776_v17 = vrot.slane %v1461_v13, 4  ;;  %449 = vst [vmem:[#allocation2 + $0xe8] sm:$0x10] %v448_v25  ;;  %v1986_v35 = vor.u32 %v1985_v21, %v1982_v6  ;;  %v1466_v42 = vrot.slane %v1464_v39, 5 }
 0x1b3   : > { %v9306_v14 = vshrl.u32 %v9305_v47, 16  ;;  %v9307_v52 = vshll.u32 %v9305_v47, 16  ;;  %v7791_v8 = vsel %vm1671_vm1, %v1978_v51, %v2469_v10  ;;  %v7800_v5 = vsel %vm343_vm3, %v1039_v41, %v1047_v46  ;;  %v1640_v46 = vpop.permute.xlu0 %1639 }
 0x1b4   : > { %v7806_v13 = vsel %vm1366_vm15, %v1442_v55, %v1450_v43  ;;  %v1067_v34 = vshrl.u32 %v959_v2, 16  ;;  %v9308_v10 = vor.u32 %v7692_v32, %v7683_v27  ;;  %v2387_v57 = vor.u32 %v7768_v4, %v7766_v19  ;;  %v6464_v27 = vld [vmem:[#allocation2 + $0xe0] sm:$0xf0] }
 0x1b5   : > { %v7782_v28 = vrot.slane %v9306_v14, 3  ;;  %v7786_v7 = vrot.slane %v9307_v52, 4  ;;  %v7818_v11 = vsel %vm343_vm3, %v1056_v61, %v1064_v23  ;;  %v1070_v24 = vshll.u32 %v959_v2, 16  ;;  %v9309_v23 = vld [vmem:[#allocation26_spill] sm:$0xff]  ;;  %v450_v14 = vld [vmem:[#allocation2 + $0xf8] sm:$0x10] }
 0x1b6   : > { %v7813_v9 = vsel %vm1366_vm15, %v9308_v10, %v2378_v44  ;;  %v7822_v62 = vrot.slane %v2389_v0, 4  ;;  %v7824_v58 = vrot.slane %v2392_v60, 5  ;;  %v1459_v48 = vor.u32 %v7774_v12, %v7770_v49  ;;  %v397_v12 = vld [vmem:[#allocation2 + $0xe0] sm:$0x8]  ;;  %v6465_v0 = vld [vmem:[#allocation2 + $0x60] sm:$0xf0] }
 0x1b7   : > { %v2398_v32 = vshrl.u32 %v6464_v27, 16  ;;  %v1995_v41 = vsel %vm343_vm3, %v1986_v35, %v1994_v30  ;;  %v1467_v55 = vor.u32 %v1466_v42, %v7776_v17  ;;  %v1784_v51 = vld [vmem:[#allocation2 + $0xd0] sm:$0xf8]  ;;  %v2011_v6 = vor.u32 %v7786_v7, %v7782_v28  ;;  %v3821_v17 = vpop.permute.xlu1 %3820  ;;  %v1642_v28 = vpop.permute.xlu0 %1641 }
 0x1b8   : > { %v2401_v21 = vshll.u32 %v6464_v27, 16  ;;  %v1674_v31 = vsel %vm1671_vm1, %v7556_v53, %v1640_v46  ;;  %v1997_v39 = vshrl.u32 %v1784_v51, 16  ;;  %v2000_v54 = vshll.u32 %v1784_v51, 16  ;;  %2786 = vmatmul.mubr.bf16.gmra.mrb[32].mxu1 %v7713_v38 }
 0x1b9   : > { %v1069_v44 = vrot.slane %v1067_v34, 3  ;;  %3003 = vmatmul.mubr.bf16.vlgmr.msra.gmra.mrb[32].mxu0 %v1674_v31  ;;  %v2173_v43 = vld [vmem:[#allocation2 + $0xe8] sm:$0x1f]  ;;  %v1072_v61 = vrot.slane %v1070_v24, 4  ;;  %v9310_v30 = vshrl.u32 %v9309_v23, 16  ;;  %v9311_v25 = vshll.u32 %v9309_v23, 16  ;;  %6037 = vmatprep.mubr.msk.bf16.mxu1 %vm1671_vm1, %v7658_v20 }
 0x1ba   : > { %v1470_v60 = vshrl.u32 %v6465_v0, 16  ;;  %6057 = vmatprep.mubr.msk.bf16.mxu0 %vm1671_vm1, %v7579_v1  ;;  %v1999_v53 = vrot.slane %v1997_v39, 3  ;;  %v2002_v35 = vrot.slane %v2000_v54, 4  ;;  %v1473_v42 = vshll.u32 %v6465_v0, 16 }
 0x1bb   : > { %v1077_v49 = vrot.slane %v9310_v30, 3  ;;  %v1080_v2 = vrot.slane %v9311_v25, 4  ;;  %v1478_v47 = vshrl.u32 %v1356_v56, 16  ;;  %v2406_v52 = vshrl.u32 %v2173_v43, 16 }
 0x1bc   : > { %v2409_v7 = vshll.u32 %v2173_v43, 16  ;;  %v1481_v34 = vshll.u32 %v1356_v56, 16  ;;  %v398_v10 = vsel %vm6635_vm8, 0, %v397_v12  ;;  %v7844_v24 = vsel %vm1671_vm1, %v1995_v41, %v7747_v59 }
 0x1bd   : > { %v2395_v27 = vor.u32 %v7824_v58, %v7822_v62  ;;  %v7848_v1 = vrot.slane %v2398_v32, 4  ;;  %v7850_v46 = vrot.slane %v2401_v21, 5  ;;  %399 = vst [vmem:[#allocation2 + $0xe0] sm:$0x8] %v398_v10  ;;  %v7854_v51 = vsel %vm1671_vm1, %v7540_v50, %v3821_v17  ;;  %v961_v21 = vld [vmem:[#allocation2 + $0x60] sm:$0xf8]  ;;  %v1644_v50 = vpop.permute.xlu0 %1643 }
 0x1be   : > { %v7858_v56 = vsel %vm1366_vm15, %v1459_v48, %v1467_v55  ;;  %v1081_v31 = vor.u32 %v1080_v2, %v1077_v49  ;;  %v451_v59 = vsel %vm6629_vm5, 0, %v450_v14  ;;  %v2003_v62 = vor.u32 %v2002_v35, %v1999_v53  ;;  %v9312_v55 = vld [vmem:[#allocation17_spill] sm:$0xff]  ;;  %v400_v49 = vld [vmem:[#allocation2 + $0xf0] sm:$0x8]  ;;  %v1357_v14 = vld [vmem:[#allocation2 + $0x78] sm:$0x1f] }
 0x1bf   : > { %v1073_v58 = vor.u32 %v1072_v61, %v1069_v44  ;;  %v1472_v32 = vrot.slane %v1470_v60, 4  ;;  %v1475_v41 = vrot.slane %v1473_v42, 5  ;;  %452 = vst [vmem:[#allocation2 + $0xf8] sm:$0x10] %v451_v59  ;;  %v2408_v39 = vrot.slane %v2406_v52, 4 }
 0x1c0   : > { %v2411_v54 = vrot.slane %v2409_v7, 5  ;;  %v1480_v38 = vrot.slane %v1478_v47, 4  ;;  %v1483_v12 = vrot.slane %v1481_v34, 5  ;;  %v1678_v48 = vsel %vm1671_vm1, %v7594_v15, %v1642_v28  ;;  %v6466_v44 = vld [vmem:[#allocation2 + $0xf0] sm:$0xf0]  ;;  %2794 = vmatmul.mubr.bf16.gmra.mrb[36].mxu1 %v7677_v36 }
 0x1c1   : > { %v9313_v43 = vshrl.u32 %v9312_v55, 16  ;;  %v9314_v20 = vshll.u32 %v9312_v55, 16  ;;  %v2415_v61 = vshrl.u32 %v6466_v44, 16  ;;  %3011 = vmatmul.mubr.bf16.gmra.mrb[36].mxu0 %v1678_v48  ;;  %v7878_v25 = vsel %vm1366_vm15, %v2387_v57, %v2395_v27  ;;  %v1646_v42 = vpop.permute.xlu0 %1645  ;;  %v9315_v27 = vld [vmem:[#allocation28_spill] sm:$0xff]  ;;  %6038 = vmatprep.mubr.msk.bf16.mxu1 %vm1671_vm1, %v7726_v37 }
 0x1c2   : > { %v2404_v15 = vor.u32 %v7850_v46, %v7848_v1  ;;  %v2418_v2 = vshll.u32 %v6466_v44, 16  ;;  %v1084_v0 = vshrl.u32 %v961_v21, 16  ;;  %6058 = vmatprep.mubr.msk.bf16.mxu0 %vm1671_vm1, %v7627_v45  ;;  %v2012_v60 = vsel %vm343_vm3, %v2003_v62, %v2011_v6  ;;  %v963_v44 = vld [vmem:[#allocation2 + $0x70] sm:$0xf8] }
 0x1c3   : > { %v7868_v23 = vrot.slane %v9313_v43, 3  ;;  %v7872_v30 = vrot.slane %v9314_v20, 4  ;;  %v7886_v17 = vsel %vm343_vm3, %v1073_v58, %v1081_v31  ;;  %v1476_v53 = vor.u32 %v1475_v41, %v1472_v32  ;;  %v6467_v58 = vld [vmem:[#allocation2 + $0x70] sm:$0xf0] }
 0x1c4   : > { %v1087_v35 = vshll.u32 %v961_v21, 16  ;;  %v7890_v19 = vsel %vm1671_vm1, %v2012_v60, %v7759_v26  ;;  %v2412_v4 = vor.u32 %v2411_v54, %v2408_v39  ;;  %v1484_v57 = vor.u32 %v1483_v12, %v1480_v38  ;;  %v1786_v47 = vld [vmem:[#allocation2 + $0xe0] sm:$0xf8]  ;;  %v453_v21 = vld [vmem:[#allocation2 + $0x108] sm:$0x10] }
 0x1c5   : > { %v401_v28 = vsel %vm6635_vm8, 0, %v400_v49  ;;  %v2014_v45 = vshrl.u32 %v1786_v47, 16  ;;  %v2017_v52 = vshll.u32 %v1786_v47, 16  ;;  %v2028_v6 = vor.u32 %v7872_v30, %v7868_v23  ;;  %v7915_v39 = vpop.permute.xlu0 %1647 }
 0x1c6   : > { %v7896_v7 = vrot.slane %v2415_v61, 4  ;;  %402 = vst [vmem:[#allocation2 + $0xf0] sm:$0x8] %v401_v28  ;;  %v2174_v34 = vld [vmem:[#allocation2 + $0xf8] sm:$0x1f]  ;;  %v7899_v26 = vrot.slane %v2418_v2, 5  ;;  %v1682_v54 = vsel %vm1671_vm1, %v7663_v29, %v1644_v50  ;;  %v7920_v55 = vsel %vm1366_vm15, %v2404_v15, %v2412_v4 }
 0x1c7   : > { %v7901_v10 = vrot.slane %v1084_v0, 3  ;;  %v9316_v1 = vshrl.u32 %v9315_v27, 16  ;;  %v9317_v31 = vshll.u32 %v9315_v27, 16  ;;  %v7913_v62 = vrot.slane %v1087_v35, 4  ;;  %v9318_v4 = vld [vmem:[#allocation25_spill] sm:$0xff] }
 0x1c8   : > { %v1487_v36 = vshrl.u32 %v6467_v58, 16  ;;  %v1490_v32 = vshll.u32 %v6467_v58, 16  ;;  %v1495_v41 = vshrl.u32 %v1357_v14, 16  ;;  %v2016_v38 = vrot.slane %v2014_v45, 3  ;;  %2802 = vmatmul.mubr.bf16.gmra.mrb[40].mxu1 %v7791_v8 }
 0x1c9   : > { %v7905_v46 = vrot.slane %v9316_v1, 3  ;;  %v7909_v59 = vrot.slane %v9317_v31, 4  ;;  %v2019_v12 = vrot.slane %v2017_v52, 4  ;;  %v1498_v48 = vshll.u32 %v1357_v14, 16  ;;  %3019 = vmatmul.mubr.bf16.gmra.mrb[40].mxu0 %v1682_v54  ;;  %6039 = vmatprep.mubr.msk.bf16.mxu1 %vm1671_vm1, %v7813_v9 }
 0x1ca   : > { %v7923_v37 = vsel %vm1366_vm15, %v1476_v53, %v1484_v57  ;;  %v2423_v43 = vshrl.u32 %v2174_v34, 16  ;;  %v2426_v20 = vshll.u32 %v2174_v34, 16  ;;  %v1686_v61 = vsel %vm1671_vm1, %v7800_v5, %v1646_v42  ;;  %6059 = vmatprep.mubr.msk.bf16.mxu0 %vm1671_vm1, %v7718_v40  ;;  %v1650_v5 = vpop.permute.xlu0 %1649 }
 0x1cb   : > { %v2421_v49 = vor.u32 %v7899_v26, %v7896_v7  ;;  %v1098_v29 = vor.u32 %v7909_v59, %v7905_v46  ;;  %v454_v50 = vsel %vm6629_vm5, 0, %v453_v21  ;;  %v1090_v15 = vor.u32 %v7913_v62, %v7901_v10  ;;  %v6468_v10 = vld [vmem:[#allocation2 + $0x100] sm:$0xf0]  ;;  %v1358_v21 = vld [vmem:[#allocation2 + $0x88] sm:$0x1f] }
 0x1cc   : > { %v1489_v2 = vrot.slane %v1487_v36, 4  ;;  %v1492_v0 = vrot.slane %v1490_v32, 5  ;;  %v1497_v60 = vrot.slane %v1495_v41, 4  ;;  %455 = vst [vmem:[#allocation2 + $0x108] sm:$0x10] %v454_v50  ;;  %v2020_v53 = vor.u32 %v2019_v12, %v2016_v38  ;;  %v9321_v62 = vld [vmem:[#allocation29_spill] sm:$0xff] }
 0x1cd   : > { %v1500_v35 = vrot.slane %v1498_v48, 5  ;;  %v1788_v42 = vld [vmem:[#allocation2 + $0xf0] sm:$0xf8]  ;;  %v9319_v57 = vshrl.u32 %v9318_v4, 16  ;;  %v1101_v14 = vshrl.u32 %v963_v44, 16  ;;  %v2425_v22 = vrot.slane %v2423_v43, 4 }
 0x1ce   : > { %v2428_v28 = vrot.slane %v2426_v20, 5  ;;  %v2031_v45 = vshrl.u32 %v1788_v42, 16  ;;  %v2034_v52 = vshll.u32 %v1788_v42, 16  ;;  %v9320_v40 = vshll.u32 %v9318_v4, 16  ;;  %v1652_v8 = vpop.permute.xlu0 %1651  ;;  %v6469_v12 = vld [vmem:[#allocation2 + $0x80] sm:$0xf0] }
 0x1cf   : > { %v2041_v47 = vrot.slane %v9319_v57, 3  ;;  %v2432_v27 = vshrl.u32 %v6468_v10, 16  ;;  %v2435_v1 = vshll.u32 %v6468_v10, 16  ;;  %v1104_v46 = vshll.u32 %v963_v44, 16  ;;  %v403_v20 = vld [vmem:[#allocation2 + $0x100] sm:$0x8] }
 0x1d0   : > { %v2044_v34 = vrot.slane %v9320_v40, 4  ;;  %v2033_v31 = vrot.slane %v2031_v45, 3  ;;  %v2036_v59 = vrot.slane %v2034_v52, 4  ;;  %v9322_v58 = vshrl.u32 %v9321_v62, 16  ;;  %2810 = vmatmul.mubr.bf16.gmra.mrb[44].mxu1 %v7844_v24  ;;  %v3532_v26 = vld [vmem:[#allocation2 + $0x28] sm:$0x1f] }
 0x1d1   : > { %v9323_v32 = vshll.u32 %v9321_v62, 16  ;;  %v1103_v54 = vrot.slane %v1101_v14, 3  ;;  %v1106_v38 = vrot.slane %v1104_v46, 4  ;;  %v1504_v48 = vshrl.u32 %v6469_v12, 16  ;;  %3027 = vmatmul.mubr.bf16.gmra.mrb[44].mxu0 %v1686_v61  ;;  %6040 = vmatprep.mubr.msk.bf16.mxu1 %vm1671_vm1, %v7878_v25 }
 0x1d2   : > { %v1111_v36 = vrot.slane %v9322_v58, 3  ;;  %v1507_v43 = vshll.u32 %v6469_v12, 16  ;;  %v2029_v9 = vsel %vm343_vm3, %v2020_v53, %v2028_v6  ;;  %v2429_v44 = vor.u32 %v2428_v28, %v2425_v22  ;;  %6060 = vmatprep.mubr.msk.bf16.mxu0 %vm1671_vm1, %v7806_v13 }
 0x1d3   : > { %v1114_v41 = vrot.slane %v9323_v32, 4  ;;  %v1493_v50 = vor.u32 %v1492_v0, %v1489_v2  ;;  %v1501_v42 = vor.u32 %v1500_v35, %v1497_v60  ;;  %v2045_v4 = vor.u32 %v2044_v34, %v2041_v47  ;;  %v2175_v57 = vld [vmem:[#allocation2 + $0x108] sm:$0x1f]  ;;  %v1654_v35 = vpop.permute.xlu0 %1653  ;;  %v9324_v34 = vld [vmem:[#allocation23_spill] sm:$0xff] }
 0x1d4   : > { %v7952_v45 = vrot.slane %v2432_v27, 4  ;;  %v1512_v52 = vshrl.u32 %v1358_v21, 16  ;;  %v1515_v14 = vshll.u32 %v1358_v21, 16  ;;  %v2037_v40 = vor.u32 %v2036_v59, %v2033_v31  ;;  %v1359_v32 = vld [vmem:[#allocation2 + $0x98] sm:$0x1f] }
 0x1d5   : > { %v7956_v10 = vrot.slane %v2435_v1, 5  ;;  %v1115_v46 = vor.u32 %v1114_v41, %v1111_v36  ;;  %v404_v23 = vsel %vm6635_vm8, 0, %v403_v20  ;;  %v2440_v30 = vshrl.u32 %v2175_v57, 16 }
 0x1d6   : > { %v1107_v6 = vor.u32 %v1106_v38, %v1103_v54  ;;  %v1506_v2 = vrot.slane %v1504_v48, 4  ;;  %v1509_v61 = vrot.slane %v1507_v43, 5  ;;  %405 = vst [vmem:[#allocation2 + $0x100] sm:$0x8] %v404_v23  ;;  %v1690_v0 = vsel %vm1671_vm1, %v7818_v11, %v7915_v39  ;;  %v965_v11 = vld [vmem:[#allocation2 + $0x80] sm:$0xf8] }
 0x1d7   : > { %v7965_v60 = vsel %vm1671_vm1, %v2029_v9, %v7763_v63  ;;  %v1099_v13 = vsel %vm343_vm3, %v1090_v15, %v1098_v29  ;;  %v2443_v53 = vshll.u32 %v2175_v57, 16  ;;  %v7971_v18 = vsel %vm1671_vm1, %v7886_v17, %v1650_v5  ;;  %v9326_v54 = vld [vmem:[#allocation30_spill] sm:$0xff] }
 0x1d8   : > { %v7974_v47 = vsel %vm1366_vm15, %v1493_v50, %v1501_v42  ;;  %v1514_v22 = vrot.slane %v1512_v52, 4  ;;  %v1517_v28 = vrot.slane %v1515_v14, 5  ;;  %v7982_v63 = vsel %vm1366_vm15, %v2421_v49, %v2429_v44  ;;  %v6471_v44 = vld [vmem:[#allocation2 + $0x90] sm:$0xf0]  ;;  %2818 = vmatmul.mubr.bf16.gmra.mrb[48].mxu1 %v7890_v19  ;;  %v352_v19 = vld [vmem:[#allocation2 + $0x118] sm:$0x1f] }
 0x1d9   : > { %v7985_v24 = vsel %vm1671_vm1, %v1099_v13, %v1652_v8  ;;  %v2046_v17 = vsel %vm343_vm3, %v2037_v40, %v2045_v4  ;;  %v2438_v39 = vor.u32 %v7956_v10, %v7952_v45  ;;  %v7994_v15 = vrot.slane %v2440_v30, 4  ;;  %3035 = vmatmul.mubr.bf16.gmra.mrb[48].mxu0 %v1690_v0  ;;  %6041 = vmatprep.mubr.msk.bf16.mxu1 %vm1671_vm1, %v7920_v55 }
 0x1da   : > { %v7992_v29 = vsel %vm1671_vm1, %v2046_v17, %v7778_v16  ;;  %v1116_v25 = vsel %vm343_vm3, %v1107_v6, %v1115_v46  ;;  %v1510_v7 = vor.u32 %v1509_v61, %v1506_v2  ;;  %v7997_v49 = vrot.slane %v2443_v53, 5  ;;  %v6470_v16 = vld [vmem:[#allocation2 + $0x20] sm:$0xf0]  ;;  %6061 = vmatprep.mubr.msk.bf16.mxu0 %vm1671_vm1, %v7858_v56  ;;  %v3533_v6 = vld [vmem:[#allocation2 + $0x38] sm:$0x1f] }
 0x1db   : > { %v8000_v5 = vsel %vm1671_vm1, %v1116_v25, %v1654_v35  ;;  %v9325_v27 = vshrl.u32 %v9324_v34, 16  ;;  %v1118_v31 = vshrl.u32 %v965_v11, 16  ;;  %v1518_v59 = vor.u32 %v1517_v28, %v1514_v22  ;;  %v349_v53 = vld [vmem:[#allocation2 + $0x110] sm:$0xf8] }
 0x1dc   : > { %v3549_v62 = vshrl.u32 %v6470_v16, 16  ;;  %v3552_v58 = vshll.u32 %v6470_v16, 16  ;;  %v1121_v36 = vshll.u32 %v965_v11, 16  ;;  %v3557_v21 = vshrl.u32 %v3532_v26, 16 }
 0x1dd   : > { %v8004_v1 = vrot.slane %v9325_v27, 3  ;;  %v1790_v41 = vld [vmem:[#allocation2 + $0x100] sm:$0xf8]  ;;  %v3560_v8 = vshll.u32 %v3532_v26, 16  ;;  %v9327_v38 = vshrl.u32 %v9326_v54, 16  ;;  %v9328_v48 = vshll.u32 %v9326_v54, 16 }
 0x1de   : > { %v2048_v20 = vshrl.u32 %v1790_v41, 16  ;;  %v2051_v9 = vshll.u32 %v1790_v41, 16  ;;  %v1521_v50 = vshrl.u32 %v6471_v44, 16  ;;  %v1524_v42 = vshll.u32 %v6471_v44, 16  ;;  %v1656_v41 = vpop.permute.xlu0 %1655 }
 0x1df   : > { %v1128_v12 = vrot.slane %v9327_v38, 3  ;;  %v1131_v43 = vrot.slane %v9328_v48, 4  ;;  %v2446_v4 = vor.u32 %v7997_v49, %v7994_v15  ;;  %v9329_v57 = vshll.u32 %v9324_v34, 16  ;;  %v6472_v15 = vld [vmem:[#allocation2 + $0x30] sm:$0xf0] }
 0x1e0   : > { %v1120_v52 = vrot.slane %v1118_v31, 3  ;;  %v1123_v14 = vrot.slane %v1121_v36, 4  ;;  %v8018_v40 = vsel %vm1366_vm15, %v1510_v7, %v1518_v59  ;;  %v3551_v46 = vrot.slane %v3549_v62, 4  ;;  %v967_v49 = vld [vmem:[#allocation2 + $0x90] sm:$0xf8]  ;;  %2826 = vmatmul.mubr.bf16.gmra.mrb[52].mxu1 %v7965_v60  ;;  %v9335_v36 = vld [vmem:[#allocation10_spill] sm:$0xff] }
 0x1e1   : > { %v2061_v56 = vrot.slane %v9329_v57, 4  ;;  %v1529_v23 = vshrl.u32 %v1359_v32, 16  ;;  %v1532_v30 = vshll.u32 %v1359_v32, 16  ;;  %v3554_v2 = vrot.slane %v3552_v58, 5  ;;  %3043 = vmatmul.mubr.bf16.gmra.mrb[52].mxu0 %v7971_v18  ;;  %6042 = vmatprep.mubr.msk.bf16.mxu1 %vm1671_vm1, %v7982_v63 }
 0x1e2   : > { %v3559_v61 = vrot.slane %v3557_v21, 4  ;;  %v3562_v0 = vrot.slane %v3560_v8, 5  ;;  %v1132_v13 = vor.u32 %v1131_v43, %v1128_v12  ;;  %v2050_v35 = vrot.slane %v2048_v20, 3  ;;  %6062 = vmatprep.mubr.msk.bf16.mxu0 %vm1671_vm1, %v7923_v37 }
 0x1e3   : > { %v2053_v22 = vrot.slane %v2051_v9, 4  ;;  %v1523_v28 = vrot.slane %v1521_v50, 4  ;;  %v1526_v11 = vrot.slane %v1524_v42, 5  ;;  %v1124_v17 = vor.u32 %v1123_v14, %v1120_v52  ;;  %v9332_v9 = vld [vmem:[#allocation31_spill] sm:$0xff] }
 0x1e4   : > { %v3566_v25 = vshrl.u32 %v6472_v15, 16  ;;  %v3569_v7 = vshll.u32 %v6472_v15, 16  ;;  %v3574_v26 = vshrl.u32 %v3533_v6, 16  ;;  %v1531_v34 = vrot.slane %v1529_v23, 4 }
 0x1e5   : > { %v1534_v55 = vrot.slane %v1532_v30, 5  ;;  %v3577_v27 = vshll.u32 %v3533_v6, 16  ;;  %v350_v59 = vsel %vm6641_vm11, 0, %v349_v53  ;;  %v2062_v16 = vor.u32 %v2061_v56, %v8004_v1  ;;  %v3134_v1 = vld [vmem:[#allocation2 + $0x30] sm:$0xf8] }
 0x1e6   : > { %v3555_v62 = vor.u32 %v3554_v2, %v3551_v46  ;;  %v3563_v58 = vor.u32 %v3562_v0, %v3559_v61  ;;  %351 = vst [vmem:[#allocation2 + $0x110] sm:$0xf8] %v350_v59  ;;  %v353_v32 = vsel %vm6648_vm12, 0, %v352_v19  ;;  %v2054_v21 = vor.u32 %v2053_v22, %v2050_v35  ;;  %v1360_v56 = vld [vmem:[#allocation2 + $0xa8] sm:$0x1f] }
 0x1e7   : > { %v1527_v18 = vor.u32 %v1526_v11, %v1523_v28  ;;  %354 = vst [vmem:[#allocation2 + $0x118] sm:$0x1f] %v353_v32  ;;  %v1135_v8 = vshrl.u32 %v967_v49, 16  ;;  %v1138_v54 = vshll.u32 %v967_v49, 16  ;;  %v1133_v38 = vsel %vm343_vm3, %v1124_v17, %v1132_v13  ;;  %v6473_v46 = vld [vmem:[#allocation2 + $0xa0] sm:$0xf0] }
 0x1e8   : > { %v8031_v12 = vrot.slane %v3566_v25, 4  ;;  %v8033_v48 = vrot.slane %v3569_v7, 5  ;;  %v8035_v37 = vrot.slane %v3574_v26, 4  ;;  %v1535_v43 = vor.u32 %v1534_v55, %v1531_v34  ;;  %v969_v22 = vld [vmem:[#allocation2 + $0xa0] sm:$0xf8]  ;;  %2834 = vmatmul.mubr.bf16.gmra.mrb[56].mxu1 %v7992_v29 }
 0x1e9   : > { %v8038_v20 = vrot.slane %v3577_v27, 5  ;;  %v9333_v44 = vshrl.u32 %v9332_v9, 16  ;;  %v9334_v42 = vshll.u32 %v9332_v9, 16  ;;  %v2447_v60 = vsel %vm1366_vm15, %v2438_v39, %v2446_v4  ;;  %3051 = vmatmul.mubr.bf16.gmra.mrb[56].mxu0 %v7985_v24  ;;  %v6474_v17 = vld [vmem:[#allocation2 + $0x40] sm:$0xf0] }
 0x1ea   : > { %v8055_v52 = vsel %vm1366_vm15, %v3555_v62, %v3563_v58  ;;  %v8058_v14 = vsel %vm1671_vm1, %v1133_v38, %v1656_v41  ;;  %v1538_v23 = vshrl.u32 %v6473_v46, 16  ;;  %v2063_v30 = vsel %vm343_vm3, %v2054_v21, %v2062_v16  ;;  %6063 = vmatprep.mubr.msk.bf16.mxu0 %vm1671_vm1, %v7974_v47  ;;  %6043 = vmatprep.mubr.msk.bf16.mxu1 %vm1671_vm1, %v2447_v60 }
 0x1eb   : > { %v8042_v50 = vrot.slane %v9333_v44, 3  ;;  %v8046_v57 = vrot.slane %v9334_v42, 4  ;;  %v1137_v6 = vrot.slane %v1135_v8, 3  ;;  %v1140_v2 = vrot.slane %v1138_v54, 4  ;;  %v1361_v54 = vld [vmem:[#allocation2 + $0xb8] sm:$0x1f] }
 0x1ec   : > { %v1541_v61 = vshll.u32 %v6473_v46, 16  ;;  %v8063_v63 = vsel %vm1671_vm1, %v2063_v30, %v7788_v33  ;;  %v1546_v45 = vshrl.u32 %v1360_v56, 16  ;;  %v1549_v10 = vshll.u32 %v1360_v56, 16  ;;  %v3534_v33 = vld [vmem:[#allocation2 + $0x48] sm:$0x1f] }
 0x1ed   : > { %v3182_v39 = vshrl.u32 %v3134_v1, 16  ;;  %v8067_v4 = vsel %vm1366_vm15, %v1527_v18, %v1535_v43  ;;  %v3572_v0 = vor.u32 %v8033_v48, %v8031_v12  ;;  %v3580_v13 = vor.u32 %v8038_v20, %v8035_v37  ;;  %v3451_v53 = vld [vmem:[#allocation2 + $0x110] sm:$0xf0]  ;;  %v9338_v48 = vld [vmem:[#allocation32_spill] sm:$0xff]  ;;  %v3136_v43 = vld [vmem:[#allocation2 + $0x40] sm:$0xf8] }
 0x1ee   : > { %v1149_v35 = vor.u32 %v8046_v57, %v8042_v50  ;;  %v3163_v28 = vld [vmem:[#allocation2 + $0x118] sm:$0xf]  ;;  %v3529_v24 = vrot.slane %v3451_v53, 4  ;;  %v8077_v11 = vrot.slane %v1538_v23, 4  ;;  %v3185_v19 = vshll.u32 %v3134_v1, 16 }
 0x1ef   : > { %v3583_v15 = vshrl.u32 %v6474_v17, 16  ;;  %v3530_v25 = vrot.slane %v3163_v28, 4  ;;  %v1141_v7 = vor.u32 %v1140_v2, %v1137_v6  ;;  %v8079_v26 = vrot.slane %v1541_v61, 5  ;;  %v6475_v42 = vld [vmem:[#allocation2 + $0xb0] sm:$0xf0] }
 0x1f0   : > { %v3586_v49 = vshll.u32 %v6474_v17, 16  ;;  %v8081_v34 = vrot.slane %v1546_v45, 4  ;;  %v8083_v55 = vrot.slane %v1549_v10, 5  ;;  %v8085_v27 = vrot.slane %v3182_v39, 3  ;;  %2842 = vmatmul.mubr.bf16.gmra.mrb[60].mxu1 %v8063_v63 }
 0x1f1   : > { %v3591_v31 = vshrl.u32 %v3534_v33, 16  ;;  %v3531_v47 = vsel %vm651_vm0, %v3529_v24, %v3530_v25  ;;  %v3594_v59 = vshll.u32 %v3534_v33, 16  ;;  %v1152_v16 = vshrl.u32 %v969_v22, 16  ;;  %3059 = vmatmul.mubr.bf16.gmra.mrb[60].mxu0 %v8000_v5  ;;  %6108 = vmatprep.mubr.msk.bf16.mxu1 %vm1671_vm1, %v8055_v52 }
 0x1f2   : > { %v1155_v62 = vshll.u32 %v969_v22, 16  ;;  %3850 = vrot.lane.b32.xlu1 %v3531_v47, %s6513_s24  ;;  %v3187_v58 = vrot.slane %v3185_v19, 4  ;;  %v9336_v32 = vshrl.u32 %v9335_v36, 16  ;;  %v9337_v21 = vshll.u32 %v9335_v36, 16  ;;  %6064 = vmatprep.mubr.msk.bf16.mxu0 %vm1671_vm1, %v8018_v40  ;;  %v971_v22 = vld [vmem:[#allocation2 + $0xb0] sm:$0xf8] }
 0x1f3   : > { %v8095_v8 = vrot.slane %v3583_v15, 4  ;;  %v3588_v29 = vrot.slane %v3586_v49, 5  ;;  %v3593_v38 = vrot.slane %v3591_v31, 4  ;;  %v3596_v12 = vrot.slane %v3594_v59, 5  ;;  %v6476_v19 = vld [vmem:[#allocation2 + $0x50] sm:$0xf0]  ;;  %v3823_v49 = vpop.permute.xlu1 %3822 }
 0x1f4   : > { %v3192_v41 = vrot.slane %v9336_v32, 3  ;;  %v3195_v18 = vrot.slane %v9337_v21, 4  ;;  %v9339_v37 = vshrl.u32 %v9338_v48, 16  ;;  %v1154_v20 = vrot.slane %v1152_v16, 3 }
 0x1f5   : > { %v1157_v9 = vrot.slane %v1155_v62, 4  ;;  %v9340_v44 = vshll.u32 %v9338_v48, 16  ;;  %v1555_v57 = vshrl.u32 %v6475_v42, 16  ;;  %v8103_v56 = vsel %vm1366_vm15, %v3572_v0, %v3580_v13  ;;  %v3535_v0 = vld [vmem:[#allocation2 + $0x58] sm:$0x1f] }
 0x1f6   : > { %v1162_v1 = vrot.slane %v9339_v37, 3  ;;  %v1558_v60 = vshll.u32 %v6475_v42, 16  ;;  %v1563_v46 = vshrl.u32 %v1361_v54, 16  ;;  %v1566_v23 = vshll.u32 %v1361_v54, 16 }
 0x1f7   : > { %v1165_v50 = vrot.slane %v9340_v44, 4  ;;  %v1150_v30 = vsel %vm343_vm3, %v1141_v7, %v1149_v35  ;;  %v1544_v6 = vor.u32 %v8079_v26, %v8077_v11  ;;  %v1552_v2 = vor.u32 %v8083_v55, %v8081_v34  ;;  %v1658_v35 = vpop.permute.xlu0 %1657  ;;  %v9341_v55 = vld [vmem:[#allocation15_spill] sm:$0xff] }
 0x1f8   : > { %v3199_v61 = vshrl.u32 %v3136_v43, 16  ;;  %v3188_v5 = vor.u32 %v3187_v58, %v8085_v27  ;;  %v3196_v45 = vor.u32 %v3195_v18, %v3192_v41  ;;  %v3589_v10 = vor.u32 %v3588_v29, %v8095_v8  ;;  %v3138_v18 = vld [vmem:[#allocation2 + $0x50] sm:$0xf8]  ;;  %4094 = vmatmul.mubr.bf16.vlgmr.msra.gmra.mrb[64].mxu1 %v7854_v51 }
 0x1f9   : > { %v3202_v39 = vshll.u32 %v3136_v43, 16  ;;  %v3597_v13 = vor.u32 %v3596_v12, %v3593_v38  ;;  %v1158_v53 = vor.u32 %v1157_v9, %v1154_v20  ;;  %v1166_v33 = vor.u32 %v1165_v50, %v1162_v1  ;;  %3067 = vmatmul.mubr.bf16.gmra.mrb[64].mxu0 %v8058_v14  ;;  %v1362_v43 = vld [vmem:[#allocation2 + $0xc8] sm:$0x1f]  ;;  %6109 = vmatprep.mubr.msk.bf16.mxu1 %vm1671_vm1, %v8103_v56 }
 0x1fa   : > { %v1557_v40 = vrot.slane %v1555_v57, 4  ;;  %v1560_v28 = vrot.slane %v1558_v60, 5  ;;  %v1565_v24 = vrot.slane %v1563_v46, 4  ;;  %v1568_v11 = vrot.slane %v1566_v23, 5  ;;  %6065 = vmatprep.mubr.msk.bf16.mxu0 %vm1671_vm1, %v8067_v4  ;;  %v9344_v9 = vld [vmem:[#allocation33_spill] sm:$0xff]  ;;  %v3825_v60 = vpop.permute.xlu1 %3824 }
 0x1fb   : > { %v3600_v17 = vshrl.u32 %v6476_v19, 16  ;;  %v3201_v15 = vrot.slane %v3199_v61, 3  ;;  %v3603_v25 = vshll.u32 %v6476_v19, 16  ;;  %v3608_v7 = vshrl.u32 %v3535_v0, 16  ;;  %v1660_v12 = vpop.permute.xlu0 %1659 }
 0x1fc   : > { %v3611_v26 = vshll.u32 %v3535_v0, 16  ;;  %v3204_v34 = vrot.slane %v3202_v39, 4  ;;  %v9342_v27 = vshrl.u32 %v9341_v55, 16  ;;  %v9343_v47 = vshll.u32 %v9341_v55, 16  ;;  %v973_v39 = vld [vmem:[#allocation2 + $0xc0] sm:$0xf8] }
 0x1fd   : > { %v1169_v59 = vshrl.u32 %v971_v22, 16  ;;  %v1710_v16 = vsel %vm1671_vm1, %v1150_v30, %v1658_v35  ;;  %v1553_v62 = vsel %vm1366_vm15, %v1544_v6, %v1552_v2  ;;  %v3602_v58 = vrot.slane %v3600_v17, 4  ;;  %v6477_v30 = vld [vmem:[#allocation2 + $0xc0] sm:$0xf0] }
 0x1fe   : > { %v3209_v31 = vrot.slane %v9342_v27, 3  ;;  %v3212_v63 = vrot.slane %v9343_v47, 4  ;;  %v3605_v36 = vrot.slane %v3603_v25, 5  ;;  %v3197_v52 = vsel %vm343_vm3, %v3188_v5, %v3196_v45  ;;  %v3140_v27 = vld [vmem:[#allocation2 + $0x60] sm:$0xf8] }
 0x1ff   : > { %v3610_v32 = vrot.slane %v3608_v7, 4  ;;  %v3613_v41 = vrot.slane %v3611_v26, 5  ;;  %v1172_v21 = vshll.u32 %v971_v22, 16  ;;  %v3858_v8 = vsel %vm1671_vm1, %v3197_v52, %v3823_v49  ;;  %v9347_v22 = vld [vmem:[#allocation19_spill] sm:$0xff] }
 0x200   : > { %v3598_v54 = vsel %vm1366_vm15, %v3589_v10, %v3597_v13  ;;  %v1167_v29 = vsel %vm343_vm3, %v1158_v53, %v1166_v33  ;;  %v1561_v38 = vor.u32 %v1560_v28, %v1557_v40  ;;  %v1569_v48 = vor.u32 %v1568_v11, %v1565_v24  ;;  %v3536_v11 = vld [vmem:[#allocation2 + $0x68] sm:$0x1f]  ;;  %4102 = vmatmul.mubr.bf16.gmra.mrb[68].mxu1 %v3858_v8 }
 0x201   : > { %v3205_v37 = vor.u32 %v3204_v34, %v3201_v15  ;;  %v3213_v14 = vor.u32 %v3212_v63, %v3209_v31  ;;  %v1171_v1 = vrot.slane %v1169_v59, 3  ;;  %v3606_v20 = vor.u32 %v3605_v36, %v3602_v58  ;;  %3075 = vmatmul.mubr.bf16.gmra.mrb[68].mxu0 %v1710_v16  ;;  %v6478_v34 = vld [vmem:[#allocation2 + $0x60] sm:$0xf0]  ;;  %v1363_v58 = vld [vmem:[#allocation2 + $0xd8] sm:$0x1f]  ;;  %6110 = vmatprep.mubr.msk.bf16.mxu1 %vm1671_vm1, %v3598_v54  ;;  %v1662_v54 = vpop.permute.xlu0 %1661 }
 0x202   : > { %v9345_v44 = vshrl.u32 %v9344_v9, 16  ;;  %v9346_v42 = vshll.u32 %v9344_v9, 16  ;;  %v3216_v57 = vshrl.u32 %v3138_v18, 16  ;;  %v3614_v46 = vor.u32 %v3613_v41, %v3610_v32  ;;  %6066 = vmatprep.mubr.msk.bf16.mxu0 %vm1671_vm1, %v1553_v62  ;;  %v9350_v32 = vld [vmem:[#allocation34_spill] sm:$0xff] }
 0x203   : > { %v1174_v23 = vrot.slane %v1172_v21, 4  ;;  %v1572_v6 = vshrl.u32 %v6477_v30, 16  ;;  %v3219_v2 = vshll.u32 %v3138_v18, 16  ;;  %v1714_v61 = vsel %vm1671_vm1, %v1167_v29, %v1660_v12 }
 0x204   : > { %v1179_v50 = vrot.slane %v9345_v44, 3  ;;  %v1182_v4 = vrot.slane %v9346_v42, 4  ;;  %v1575_v5 = vshll.u32 %v6477_v30, 16  ;;  %v1580_v45 = vshrl.u32 %v1362_v43, 16 }
 0x205   : > { %v1583_v10 = vshll.u32 %v1362_v43, 16  ;;  %v1570_v0 = vsel %vm1366_vm15, %v1561_v38, %v1569_v48  ;;  %v3214_v13 = vsel %vm343_vm3, %v3205_v37, %v3213_v14  ;;  %v3218_v53 = vrot.slane %v3216_v57, 3  ;;  %v6479_v38 = vld [vmem:[#allocation2 + $0xd0] sm:$0xf0] }
 0x206   : > { %v3221_v51 = vrot.slane %v3219_v2, 4  ;;  %v8141_v33 = vsel %vm1671_vm1, %v3214_v13, %v3825_v60  ;;  %v1183_v40 = vor.u32 %v1182_v4, %v1179_v50  ;;  %v9348_v35 = vshrl.u32 %v9347_v22, 16  ;;  %v3827_v60 = vpop.permute.xlu1 %3826  ;;  %v3537_v2 = vld [vmem:[#allocation2 + $0x78] sm:$0x1f] }
 0x207   : > { %v9349_v56 = vshll.u32 %v9347_v22, 16  ;;  %v8148_v19 = vsel %vm1366_vm15, %v3606_v20, %v3614_v46  ;;  %v1175_v17 = vor.u32 %v1174_v23, %v1171_v1  ;;  %v1574_v15 = vrot.slane %v1572_v6, 4 }
 0x208   : > { %v3226_v28 = vrot.slane %v9348_v35, 3  ;;  %v1186_v25 = vshrl.u32 %v973_v39, 16  ;;  %v1577_v7 = vrot.slane %v1575_v5, 5  ;;  %v1582_v26 = vrot.slane %v1580_v45, 4  ;;  %v6480_v35 = vld [vmem:[#allocation2 + $0x70] sm:$0xf0]  ;;  %4110 = vmatmul.mubr.bf16.gmra.mrb[72].mxu1 %v8141_v33 }
 0x209   : > { %v3229_v24 = vrot.slane %v9349_v56, 4  ;;  %v1585_v49 = vrot.slane %v1583_v10, 5  ;;  %v3617_v55 = vshrl.u32 %v6478_v34, 16  ;;  %v3222_v31 = vor.u32 %v3221_v51, %v3218_v53  ;;  %3083 = vmatmul.mubr.bf16.gmra.mrb[72].mxu0 %v1714_v61  ;;  %v975_v61 = vld [vmem:[#allocation2 + $0xd0] sm:$0xf8]  ;;  %6111 = vmatprep.mubr.msk.bf16.mxu1 %vm1671_vm1, %v8148_v19 }
 0x20a   : > { %v3620_v47 = vshll.u32 %v6478_v34, 16  ;;  %v3625_v63 = vshrl.u32 %v3536_v11, 16  ;;  %v1189_v59 = vshll.u32 %v973_v39, 16  ;;  %v3628_v36 = vshll.u32 %v3536_v11, 16  ;;  %6067 = vmatprep.mubr.msk.bf16.mxu0 %vm1671_vm1, %v1570_v0  ;;  %v9353_v39 = vld [vmem:[#allocation21_spill] sm:$0xff] }
 0x20b   : > { %v3230_v16 = vor.u32 %v3229_v24, %v3226_v28  ;;  %v1188_v52 = vrot.slane %v1186_v25, 3  ;;  %v9351_v41 = vshrl.u32 %v9350_v32, 16  ;;  %v9352_v62 = vshll.u32 %v9350_v32, 16 }
 0x20c   : > { %v1191_v18 = vrot.slane %v1189_v59, 4  ;;  %v1589_v12 = vshrl.u32 %v6479_v38, 16  ;;  %v1592_v48 = vshll.u32 %v6479_v38, 16  ;;  %v1184_v37 = vsel %vm343_vm3, %v1175_v17, %v1183_v40 }
 0x20d   : > { %v1196_v21 = vrot.slane %v9351_v41, 3  ;;  %v1199_v29 = vrot.slane %v9352_v62, 4  ;;  %v1597_v14 = vshrl.u32 %v1363_v58, 16  ;;  %v1600_v1 = vshll.u32 %v1363_v58, 16 }
 0x20e   : > { %v3233_v43 = vshrl.u32 %v3140_v27, 16  ;;  %v1578_v20 = vor.u32 %v1577_v7, %v1574_v15  ;;  %v1586_v9 = vor.u32 %v1585_v49, %v1582_v26  ;;  %v8157_v44 = vrot.slane %v3617_v55, 4  ;;  %v1364_v49 = vld [vmem:[#allocation2 + $0xe8] sm:$0x1f] }
 0x20f   : > { %v8159_v50 = vrot.slane %v3620_v47, 5  ;;  %v3231_v8 = vsel %vm343_vm3, %v3222_v31, %v3230_v16  ;;  %v8162_v42 = vrot.slane %v3625_v63, 4  ;;  %v8164_v4 = vrot.slane %v3628_v36, 5  ;;  %v3142_v31 = vld [vmem:[#allocation2 + $0x70] sm:$0xf8] }
 0x210   : > { %v3236_v57 = vshll.u32 %v3140_v27, 16  ;;  %v1192_v46 = vor.u32 %v1191_v18, %v1188_v52  ;;  %v1200_v23 = vor.u32 %v1199_v29, %v1196_v21  ;;  %v8166_v30 = vrot.slane %v1589_v12, 4  ;;  %v6481_v16 = vld [vmem:[#allocation2 + $0xe0] sm:$0xf0]  ;;  %v1664_v29 = vpop.permute.xlu0 %1663  ;;  %v9356_v12 = vld [vmem:[#allocation35_spill] sm:$0xff] }
 0x211   : > { %v8168_v6 = vrot.slane %v1592_v48, 5  ;;  %v8171_v5 = vrot.slane %v1597_v14, 4  ;;  %v8173_v45 = vrot.slane %v1600_v1, 5  ;;  %v8175_v10 = vrot.slane %v3233_v43, 3 }
 0x212   : > { %v9354_v13 = vshrl.u32 %v9353_v39, 16  ;;  %v8181_v51 = vrot.slane %v3236_v57, 4  ;;  %v9355_v40 = vshll.u32 %v9353_v39, 16  ;;  %v3634_v28 = vshrl.u32 %v6480_v35, 16  ;;  %v9359_v57 = vld [vmem:[#allocation24_spill] sm:$0xff] }
 0x213   : > { %v3637_v0 = vshll.u32 %v6480_v35, 16  ;;  %v1718_v56 = vsel %vm1671_vm1, %v1184_v37, %v1662_v54  ;;  %v1587_v24 = vsel %vm1366_vm15, %v1578_v20, %v1586_v9  ;;  %v3866_v11 = vsel %vm1671_vm1, %v3231_v8, %v3827_v60  ;;  %v3538_v8 = vld [vmem:[#allocation2 + $0x88] sm:$0x1f] }
 0x214   : > { %v8179_v53 = vrot.slane %v9354_v13, 3  ;;  %v8185_v22 = vrot.slane %v9355_v40, 4  ;;  %v3642_v17 = vshrl.u32 %v3537_v2, 16  ;;  %v3623_v15 = vor.u32 %v8159_v50, %v8157_v44  ;;  %3091 = vmatmul.mubr.bf16.gmra.mrb[76].mxu0 %v1718_v56  ;;  %4118 = vmatmul.mubr.bf16.gmra.mrb[76].mxu1 %v3866_v11 }
 0x215   : > { %v3631_v25 = vor.u32 %v8164_v4, %v8162_v42  ;;  %v3645_v7 = vshll.u32 %v3537_v2, 16  ;;  %v1203_v26 = vshrl.u32 %v975_v61, 16  ;;  %v1201_v34 = vsel %vm343_vm3, %v1192_v46, %v1200_v23  ;;  %6068 = vmatprep.mubr.msk.bf16.mxu0 %vm1671_vm1, %v1587_v24  ;;  %v6482_v2 = vld [vmem:[#allocation2 + $0x80] sm:$0xf0] }
 0x216   : > { %v1595_v55 = vor.u32 %v8168_v6, %v8166_v30  ;;  %v1603_v33 = vor.u32 %v8173_v45, %v8171_v5  ;;  %v1206_v27 = vshll.u32 %v975_v61, 16  ;;  %v3239_v47 = vor.u32 %v8181_v51, %v8175_v10  ;;  %v3829_v10 = vpop.permute.xlu1 %3828  ;;  %v977_v51 = vld [vmem:[#allocation2 + $0xe0] sm:$0xf8] }
 0x217   : > { %v3247_v63 = vor.u32 %v8185_v22, %v8179_v53  ;;  %v8206_v59 = vrot.slane %v3634_v28, 4  ;;  %v8208_v58 = vrot.slane %v3637_v0, 5  ;;  %v8210_v19 = vrot.slane %v3642_v17, 4  ;;  %v1365_v17 = vld [vmem:[#allocation2 + $0xf8] sm:$0x1f] }
 0x218   : > { %v1606_v36 = vshrl.u32 %v6481_v16, 16  ;;  %v1609_v52 = vshll.u32 %v6481_v16, 16  ;;  %v1614_v32 = vshrl.u32 %v1364_v49, 16  ;;  %v3647_v41 = vrot.slane %v3645_v7, 5 }
 0x219   : > { %v1205_v21 = vrot.slane %v1203_v26, 3  ;;  %v1617_v18 = vshll.u32 %v1364_v49, 16  ;;  %v3250_v62 = vshrl.u32 %v3142_v31, 16  ;;  %v1208_v38 = vrot.slane %v1206_v27, 4 }
 0x21a   : > { %v9357_v48 = vshrl.u32 %v9356_v12, 16  ;;  %v9358_v14 = vshll.u32 %v9356_v12, 16  ;;  %v3253_v43 = vshll.u32 %v3142_v31, 16  ;;  %v1608_v20 = vrot.slane %v1606_v36, 4  ;;  %v3144_v31 = vld [vmem:[#allocation2 + $0x80] sm:$0xf8] }
 0x21b   : > { %v1611_v9 = vrot.slane %v1609_v52, 5  ;;  %v1616_v44 = vrot.slane %v1614_v32, 4  ;;  %v1619_v50 = vrot.slane %v1617_v18, 5  ;;  %v3252_v42 = vrot.slane %v3250_v62, 3 }
 0x21c   : > { %v1213_v37 = vrot.slane %v9357_v48, 3  ;;  %v1216_v1 = vrot.slane %v9358_v14, 4  ;;  %v3255_v4 = vrot.slane %v3253_v43, 4  ;;  %v9360_v60 = vshrl.u32 %v9359_v57, 16  ;;  %v9362_v48 = vld [vmem:[#allocation36_spill] sm:$0xff] }
 0x21d   : > { %v9361_v46 = vshll.u32 %v9359_v57, 16  ;;  %v3632_v30 = vsel %vm1366_vm15, %v3623_v15, %v3631_v25  ;;  %v1722_v6 = vsel %vm1671_vm1, %v1201_v34, %v1664_v29  ;;  %v3651_v5 = vshrl.u32 %v6482_v2, 16  ;;  %v1666_v15 = vpop.permute.xlu0 %1665  ;;  %v3539_v29 = vld [vmem:[#allocation2 + $0x98] sm:$0x1f] }
 0x21e   : > { %v3260_v54 = vrot.slane %v9360_v60, 3  ;;  %v3654_v45 = vshll.u32 %v6482_v2, 16  ;;  %6112 = vmatprep.mubr.msk.bf16.mxu1 %vm1671_vm1, %v3632_v30  ;;  %v1209_v39 = vor.u32 %v1208_v38, %v1205_v21  ;;  %v1217_v13 = vor.u32 %v1216_v1, %v1213_v37  ;;  %3099 = vmatmul.mubr.bf16.gmra.mrb[80].mxu0 %v1722_v6  ;;  %v9365_v6 = vld [vmem:[#allocation27_spill] sm:$0xff] }
 0x21f   : > { %v3263_v23 = vrot.slane %v9361_v46, 4  ;;  %v3659_v53 = vshrl.u32 %v3538_v8, 16  ;;  %v3662_v61 = vshll.u32 %v3538_v8, 16  ;;  %v1604_v40 = vsel %vm1366_vm15, %v1595_v55, %v1603_v33 }
 0x220   : > { %v3248_v22 = vsel %vm343_vm3, %v3239_v47, %v3247_v63  ;;  %v3640_v35 = vor.u32 %v8208_v58, %v8206_v59  ;;  %v3648_v28 = vor.u32 %v3647_v41, %v8210_v19  ;;  %v1612_v0 = vor.u32 %v1611_v9, %v1608_v20  ;;  %6069 = vmatprep.mubr.msk.bf16.mxu0 %vm1671_vm1, %v1604_v40  ;;  %v6483_v47 = vld [vmem:[#allocation2 + $0xf0] sm:$0xf0]  ;;  %v3831_v20 = vpop.permute.xlu1 %3830 }
 0x221   : > { %v1620_v56 = vor.u32 %v1619_v50, %v1616_v44  ;;  %v3256_v24 = vor.u32 %v3255_v4, %v3252_v42  ;;  %v3264_v11 = vor.u32 %v3263_v23, %v3260_v54  ;;  %v3870_v25 = vsel %vm1671_vm1, %v3248_v22, %v3829_v10  ;;  %v979_v42 = vld [vmem:[#allocation2 + $0xf0] sm:$0xf8] }
 0x222   : > { %v8230_v7 = vrot.slane %v3651_v5, 4  ;;  %v8232_v26 = vrot.slane %v3654_v45, 5  ;;  %v1220_v49 = vshrl.u32 %v977_v51, 16  ;;  %v1218_v34 = vsel %vm343_vm3, %v1209_v39, %v1217_v13  ;;  %4126 = vmatmul.mubr.bf16.gmra.mrb[80].mxu1 %v3870_v25  ;;  %v6484_v4 = vld [vmem:[#allocation2 + $0x90] sm:$0xf0] }
 0x223   : > { %v3661_v55 = vrot.slane %v3659_v53, 4  ;;  %v3664_v33 = vrot.slane %v3662_v61, 5  ;;  %v1223_v27 = vshll.u32 %v977_v51, 16  ;;  %v1623_v63 = vshrl.u32 %v6483_v47, 16  ;;  %v6485_v39 = vld [vmem:[#allocation2 + $0xf8] sm:$0xf] }
 0x224   : > { %v1626_v59 = vshll.u32 %v6483_v47, 16  ;;  %v1631_v58 = vshrl.u32 %v1365_v17, 16  ;;  %v1634_v19 = vshll.u32 %v1365_v17, 16  ;;  %v3649_v16 = vsel %vm1366_vm15, %v3640_v35, %v3648_v28  ;;  %v3146_v17 = vld [vmem:[#allocation2 + $0x90] sm:$0xf8] }
 0x225   : > { %v1726_v36 = vsel %vm1671_vm1, %v1218_v34, %v1666_v15  ;;  %v1621_v52 = vsel %vm1366_vm15, %v1612_v0, %v1620_v56  ;;  %v3265_v32 = vsel %vm343_vm3, %v3256_v24, %v3264_v11  ;;  %v3657_v41 = vor.u32 %v8232_v26, %v8230_v7  ;;  %6113 = vmatprep.mubr.msk.bf16.mxu1 %vm1671_vm1, %v3649_v16  ;;  %v6486_v15 = vld [vmem:[#allocation2 + $0x98] sm:$0xf]  ;;  %v1668_v7 = vpop.permute.xlu0 %1667 }
 0x226   : > { %v1222_v21 = vrot.slane %v1220_v49, 3  ;;  %v3267_v18 = vshrl.u32 %v3144_v31, 16  ;;  %v3270_v62 = vshll.u32 %v3144_v31, 16  ;;  %v3665_v38 = vor.u32 %v3664_v33, %v3661_v55  ;;  %3107 = vmatmul.mubr.bf16.gmra.mrb[84].mxu0 %v1726_v36 }
 0x227   : > { %v1225_v12 = vrot.slane %v1223_v27, 4  ;;  %v9363_v37 = vshrl.u32 %v9362_v48, 16  ;;  %v9364_v1 = vshll.u32 %v9362_v48, 16  ;;  %v1625_v9 = vrot.slane %v1623_v63, 4  ;;  %6070 = vmatprep.mubr.msk.bf16.mxu0 %vm1671_vm1, %v1621_v52  ;;  %v9368_v27 = vld [vmem:[#allocation37_spill] sm:$0xff] }
 0x228   : > { %v1628_v44 = vrot.slane %v1626_v59, 5  ;;  %v1633_v50 = vrot.slane %v1631_v58, 4  ;;  %v1636_v8 = vrot.slane %v1634_v19, 5  ;;  %v3668_v57 = vshrl.u32 %v6484_v4, 16  ;;  %v3540_v59 = vld [vmem:[#allocation2 + $0xa8] sm:$0x1f] }
 0x229   : > { %v1230_v14 = vrot.slane %v9363_v37, 3  ;;  %v1233_v43 = vrot.slane %v9364_v1, 4  ;;  %v3671_v60 = vshll.u32 %v6484_v4, 16  ;;  %v3676_v54 = vshrl.u32 %v3539_v29, 16  ;;  %v1670_v4 = vpop.permute.xlu0 %1669 }
 0x22a   : > { %v3679_v46 = vshll.u32 %v3539_v29, 16  ;;  %v3269_v23 = vrot.slane %v3267_v18, 3  ;;  %v3272_v30 = vrot.slane %v3270_v62, 4  ;;  %v9366_v2 = vshrl.u32 %v9365_v6, 16  ;;  %v3833_v18 = vpop.permute.xlu1 %3832  ;;  %v6487_v62 = vld [vmem:[#allocation2 + $0xa0] sm:$0xf0] }
 0x22b   : > { %v9367_v45 = vshll.u32 %v9365_v6, 16  ;;  %v1248_v13 = vshll.u32 %v6485_v39, 16  ;;  %v3874_v53 = vsel %vm1671_vm1, %v3265_v32, %v3831_v20  ;;  %v1237_v61 = vshrl.u32 %v979_v42, 16 }
 0x22c   : > { %v3277_v5 = vrot.slane %v9366_v2, 3  ;;  %v1240_v51 = vshll.u32 %v979_v42, 16  ;;  %v1226_v40 = vor.u32 %v1225_v12, %v1222_v21  ;;  %v1234_v22 = vor.u32 %v1233_v43, %v1230_v14  ;;  %4134 = vmatmul.mubr.bf16.gmra.mrb[84].mxu1 %v3874_v53  ;;  %v3148_v42 = vld [vmem:[#allocation2 + $0xa0] sm:$0xf8] }
 0x22d   : > { %v3280_v10 = vrot.slane %v9367_v45, 4  ;;  %v1629_v35 = vor.u32 %v1628_v44, %v1625_v9  ;;  %v1637_v28 = vor.u32 %v1636_v8, %v1633_v50  ;;  %v3670_v0 = vrot.slane %v3668_v57, 4 }
 0x22e   : > { %v3673_v56 = vrot.slane %v3671_v60, 5  ;;  %v3678_v24 = vrot.slane %v3676_v54, 4  ;;  %v3681_v11 = vrot.slane %v3679_v46, 5  ;;  %v3292_v25 = vshrl.u32 %v6486_v15, 16 }
 0x22f   : > { %v3666_v26 = vsel %vm1366_vm15, %v3657_v41, %v3665_v38  ;;  %v3273_v49 = vor.u32 %v3272_v30, %v3269_v23  ;;  %v3281_v34 = vor.u32 %v3280_v10, %v3277_v5  ;;  %v1239_v55 = vrot.slane %v1237_v61, 3  ;;  %v6488_v23 = vld [vmem:[#allocation2 + $0xa8] sm:$0xf]  ;;  %v3541_v5 = vld [vmem:[#allocation2 + $0xb8] sm:$0x1f] }
 0x230   : > { %6114 = vmatprep.mubr.msk.bf16.mxu1 %vm1671_vm1, %v3666_v26  ;;  %v1242_v33 = vrot.slane %v1240_v51, 4  ;;  %v9369_v31 = vshrl.u32 %v9368_v27, 16  ;;  %v1250_v63 = vrot.slane %v1248_v13, 4  ;;  %v3295_v58 = vshll.u32 %v6486_v15, 16  ;;  %v6489_v61 = vld [vmem:[#allocation2 + $0xb0] sm:$0xf0] }
 0x231   : > { %v1235_v19 = vsel %vm343_vm3, %v1226_v40, %v1234_v22  ;;  %v3284_v16 = vshrl.u32 %v3146_v17, 16  ;;  %v3287_v36 = vshll.u32 %v3146_v17, 16  ;;  %v1638_v32 = vsel %vm1366_vm15, %v1629_v35, %v1637_v28  ;;  %v3835_v22 = vpop.permute.xlu1 %3834 }
 0x232   : > { %v1247_v47 = vrot.slane %v9369_v31, 3  ;;  %v1730_v52 = vsel %vm1671_vm1, %v1235_v19, %v1668_v7  ;;  %v3674_v41 = vor.u32 %v3673_v56, %v3670_v0  ;;  %v3682_v21 = vor.u32 %v3681_v11, %v3678_v24  ;;  %v3150_v7 = vld [vmem:[#allocation2 + $0xb0] sm:$0xf8]  ;;  %v6490_v31 = vld [vmem:[#allocation2 + $0xb8] sm:$0xf] }
 0x233   : > { %3115 = vmatmul.mubr.bf16.gmra.mrb[88].mxu0 %v1730_v52  ;;  %v3685_v29 = vshrl.u32 %v6487_v62, 16  ;;  %v3688_v38 = vshll.u32 %v6487_v62, 16  ;;  %v3693_v12 = vshrl.u32 %v3540_v59, 16  ;;  %v3696_v48 = vshll.u32 %v3540_v59, 16  ;;  %v3542_v19 = vld [vmem:[#allocation2 + $0xc8] sm:$0x1f] }
 0x234   : > { %6071 = vmatprep.mubr.msk.bf16.mxu0 %vm1671_vm1, %v1638_v32  ;;  %v3282_v37 = vsel %vm343_vm3, %v3273_v49, %v3281_v34  ;;  %v1243_v14 = vor.u32 %v1242_v33, %v1239_v55  ;;  %v1251_v1 = vor.u32 %v1250_v63, %v1247_v47  ;;  %v3286_v43 = vrot.slane %v3284_v16, 3  ;;  %v6491_v32 = vld [vmem:[#allocation2 + $0xc0] sm:$0xf0] }
 0x235   : > { %v3289_v20 = vrot.slane %v3287_v36, 4  ;;  %v3294_v9 = vrot.slane %v3292_v25, 3  ;;  %v3297_v44 = vrot.slane %v3295_v58, 4  ;;  %v3878_v50 = vsel %vm1671_vm1, %v3282_v37, %v3833_v18 }
 0x236   : > { %v3683_v8 = vsel %vm1366_vm15, %v3674_v41, %v3682_v21  ;;  %4142 = vmatmul.mubr.bf16.gmra.mrb[88].mxu1 %v3878_v50  ;;  %v3687_v57 = vrot.slane %v3685_v29, 4  ;;  %v3690_v60 = vrot.slane %v3688_v38, 5  ;;  %v3695_v54 = vrot.slane %v3693_v12, 4  ;;  %v3837_v21 = vpop.permute.xlu1 %3836 }
 0x237   : > { %v3698_v46 = vrot.slane %v3696_v48, 5  ;;  %v3309_v30 = vshrl.u32 %v6488_v23, 16  ;;  %v3312_v6 = vshll.u32 %v6488_v23, 16  ;;  %6115 = vmatprep.mubr.msk.bf16.mxu1 %vm1671_vm1, %v3683_v8  ;;  %v1252_v2 = vsel %vm343_vm3, %v1243_v14, %v1251_v1 }
 0x238   : > { %v3290_v45 = vor.u32 %v3289_v20, %v3286_v43  ;;  %v3298_v10 = vor.u32 %v3297_v44, %v3294_v9  ;;  %v3301_v39 = vshrl.u32 %v3148_v42, 16  ;;  %v3304_v13 = vshll.u32 %v3148_v42, 16  ;;  %v3152_v43 = vld [vmem:[#allocation2 + $0xc0] sm:$0xf8] }
 0x239   : > { %v1734_v53 = vsel %vm1671_vm1, %v1252_v2, %v1670_v4  ;;  %v3702_v51 = vshrl.u32 %v6489_v61, 16  ;;  %v3705_v40 = vshll.u32 %v6489_v61, 16  ;;  %v3691_v35 = vor.u32 %v3690_v60, %v3687_v57  ;;  %v3543_v4 = vld [vmem:[#allocation2 + $0xd8] sm:$0x1f] }
 0x23a   : > { %v3699_v28 = vor.u32 %v3698_v46, %v3695_v54  ;;  %v3710_v0 = vshrl.u32 %v3541_v5, 16  ;;  %v3713_v56 = vshll.u32 %v3541_v5, 16  ;;  %v3311_v24 = vrot.slane %v3309_v30, 3  ;;  %v6492_v46 = vld [vmem:[#allocation2 + $0xc8] sm:$0xf]  ;;  %v3839_v2 = vpop.permute.xlu1 %3838 }
 0x23b   : > { %3123 = vmatmul.mubr.bf16.gmra.mrb[92].mxu0 %v1734_v53  ;;  %v3299_v11 = vsel %vm343_vm3, %v3290_v45, %v3298_v10  ;;  %v3303_v17 = vrot.slane %v3301_v39, 3  ;;  %v3306_v15 = vrot.slane %v3304_v13, 4  ;;  %v3314_v25 = vrot.slane %v3312_v6, 4  ;;  %v6493_v5 = vld [vmem:[#allocation2 + $0xd0] sm:$0xf0] }
 0x23c   : > { %4517 = vmatprep.mubr.bf16.mxu0 %v9274_v3  ;;  %v3882_v26 = vsel %vm1671_vm1, %v3299_v11, %v3835_v22  ;;  %v3704_v49 = vrot.slane %v3702_v51, 4  ;;  %v3707_v34 = vrot.slane %v3705_v40, 5  ;;  %v3700_v55 = vsel %vm1366_vm15, %v3691_v35, %v3699_v28 }
 0x23d   : > { %v3712_v33 = vrot.slane %v3710_v0, 4  ;;  %v3715_v27 = vrot.slane %v3713_v56, 5  ;;  %v3326_v47 = vshrl.u32 %v6490_v31, 16  ;;  %v3329_v63 = vshll.u32 %v6490_v31, 16  ;;  %v3154_v56 = vld [vmem:[#allocation2 + $0xd0] sm:$0xf8] }
 0x23e   : > { %4150 = vmatmul.mubr.bf16.gmra.mrb[92].mxu1 %v3882_v26  ;;  %v3318_v59 = vshrl.u32 %v3150_v7, 16  ;;  %v3321_v58 = vshll.u32 %v3150_v7, 16  ;;  %v3307_v16 = vor.u32 %v3306_v15, %v3303_v17  ;;  %v3315_v36 = vor.u32 %v3314_v25, %v3311_v24  ;;  %v6494_v7 = vld [vmem:[#allocation2 + $0xd8] sm:$0xf] }
 0x23f   : > { %6116 = vmatprep.mubr.msk.bf16.mxu1 %vm1671_vm1, %v3700_v55  ;;  %v3708_v52 = vor.u32 %v3707_v34, %v3704_v49  ;;  %v3719_v41 = vshrl.u32 %v6491_v32, 16  ;;  %v3716_v18 = vor.u32 %v3715_v27, %v3712_v33  ;;  %v3722_v62 = vshll.u32 %v6491_v32, 16  ;;  %v3544_v33 = vld [vmem:[#allocation2 + $0xe8] sm:$0x1f]  ;;  %v3156_v32 = vld [vmem:[#allocation2 + $0xe0] sm:$0xf8] }
 0x240   : > { %v3727_v29 = vshrl.u32 %v3542_v19, 16  ;;  %v3730_v38 = vshll.u32 %v3542_v19, 16  ;;  %v3320_v12 = vrot.slane %v3318_v59, 3  ;;  %v3323_v48 = vrot.slane %v3321_v58, 4  ;;  %v3841_v59 = vpop.permute.xlu1 %3840  ;;  %v6495_v58 = vld [vmem:[#allocation2 + $0xe0] sm:$0xf0] }
 0x241   : > { %v3328_v37 = vrot.slane %v3326_v47, 3  ;;  %v3331_v14 = vrot.slane %v3329_v63, 4  ;;  %v3316_v1 = vsel %vm343_vm3, %v3307_v16, %v3315_v36  ;;  %v3721_v9 = vrot.slane %v3719_v41, 4 }
 0x242   : > { %v3886_v20 = vsel %vm1671_vm1, %v3316_v1, %v3837_v21  ;;  %v3717_v44 = vsel %vm1366_vm15, %v3708_v52, %v3716_v18  ;;  %v3724_v50 = vrot.slane %v3722_v62, 5  ;;  %v3729_v8 = vrot.slane %v3727_v29, 4 }
 0x243   : > { %v3732_v42 = vrot.slane %v3730_v38, 5  ;;  %v3324_v57 = vor.u32 %v3323_v48, %v3320_v12  ;;  %v3332_v60 = vor.u32 %v3331_v14, %v3328_v37  ;;  %v3335_v54 = vshrl.u32 %v3152_v43, 16  ;;  %v6496_v38 = vld [vmem:[#allocation2 + $0xe8] sm:$0xf] }
 0x244   : > { %v3343_v23 = vshrl.u32 %v6492_v46, 16  ;;  %v3346_v30 = vshll.u32 %v6492_v46, 16  ;;  %v3338_v6 = vshll.u32 %v3152_v43, 16  ;;  %v3736_v45 = vshrl.u32 %v6493_v5, 16 }
 0x245   : > { %v3739_v10 = vshll.u32 %v6493_v5, 16  ;;  %v3744_v39 = vshrl.u32 %v3543_v4, 16  ;;  %v3747_v13 = vshll.u32 %v3543_v4, 16  ;;  %v3725_v53 = vor.u32 %v3724_v50, %v3721_v9 }
 0x246   : > { %4158 = vmatmul.mubr.bf16.gmra.mrb[96].mxu1 %v3886_v20  ;;  %v3733_v61 = vor.u32 %v3732_v42, %v3729_v8  ;;  %v3333_v51 = vsel %vm343_vm3, %v3324_v57, %v3332_v60  ;;  %v3337_v40 = vrot.slane %v3335_v54, 3  ;;  %v3340_v35 = vrot.slane %v3338_v6, 4  ;;  %v3843_v57 = vpop.permute.xlu1 %3842  ;;  %v6497_v54 = vld [vmem:[#allocation2 + $0xf0] sm:$0xf0] }
 0x247   : > { %6117 = vmatprep.mubr.msk.bf16.mxu1 %vm1671_vm1, %v3717_v44  ;;  %v3890_v22 = vsel %vm1671_vm1, %v3333_v51, %v3839_v2  ;;  %v3345_v28 = vrot.slane %v3343_v23, 3  ;;  %v3348_v0 = vrot.slane %v3346_v30, 4  ;;  %v3738_v24 = vrot.slane %v3736_v45, 4  ;;  %v3545_v44 = vld [vmem:[#allocation2 + $0xf8] sm:$0x1f] }
 0x248   : > { %v3741_v11 = vrot.slane %v3739_v10, 5  ;;  %v3746_v17 = vrot.slane %v3744_v39, 4  ;;  %v3749_v15 = vrot.slane %v3747_v13, 5  ;;  %v3734_v25 = vsel %vm1366_vm15, %v3725_v53, %v3733_v61 }
 0x249   : > { %v3360_v26 = vshrl.u32 %v6494_v7, 16  ;;  %v3363_v49 = vshll.u32 %v6494_v7, 16  ;;  %v3352_v34 = vshrl.u32 %v3154_v56, 16  ;;  %v3355_v55 = vshll.u32 %v3154_v56, 16  ;;  %v6498_v7 = vld [vmem:[#allocation2 + $0xf8] sm:$0xf] }
 0x24a   : > { %v3341_v27 = vor.u32 %v3340_v35, %v3337_v40  ;;  %v3349_v31 = vor.u32 %v3348_v0, %v3345_v28  ;;  %v3742_v47 = vor.u32 %v3741_v11, %v3738_v24  ;;  %v3750_v63 = vor.u32 %v3749_v15, %v3746_v17  ;;  %v3158_v24 = vld [vmem:[#allocation2 + $0xf0] sm:$0xf8] }
 0x24b   : > { %v3753_v19 = vshrl.u32 %v6495_v58, 16  ;;  %v3756_v16 = vshll.u32 %v6495_v58, 16  ;;  %v3761_v36 = vshrl.u32 %v3544_v33, 16  ;;  %v3764_v52 = vshll.u32 %v3544_v33, 16  ;;  %v8284_v60 = vpop.f32.mrb[0].mxu1 }
 0x24c   : > { %v3354_v41 = vrot.slane %v3352_v34, 3  ;;  %v3357_v21 = vrot.slane %v3355_v55, 4  ;;  %v3362_v18 = vrot.slane %v3360_v26, 3  ;;  %v3365_v62 = vrot.slane %v3363_v49, 4  ;;  %v2725_v2 = vpop.f32.mrb[1].mxu1 }
 0x24d   : > { %v3350_v29 = vsel %vm343_vm3, %v3341_v27, %v3349_v31  ;;  %v3377_v12 = vshrl.u32 %v6496_v38, 16  ;;  %v3751_v37 = vsel %vm1366_vm15, %v3742_v47, %v3750_v63  ;;  %v3369_v14 = vshrl.u32 %v3156_v32, 16  ;;  %v8286_v39 = vpop.f32.mrb[2].mxu1  ;;  %v6499_v47 = vld [vmem:[#allocation2 + $0x100] sm:$0xf0] }
 0x24e   : > { %4166 = vmatmul.mubr.bf16.gmra.mrb[100].mxu1 %v3890_v22  ;;  %v3894_v48 = vsel %vm1671_vm1, %v3350_v29, %v3841_v59  ;;  %v3755_v1 = vrot.slane %v3753_v19, 4  ;;  %v3758_v43 = vrot.slane %v3756_v16, 5  ;;  %v3763_v20 = vrot.slane %v3761_v36, 4  ;;  %v2728_v40 = vpop.f32.mrb[3].mxu1  ;;  %v3845_v59 = vpop.permute.xlu1 %3844  ;;  %v3162_v2 = vld [vmem:[#allocation2 + $0x110] sm:$0xf8] }
 0x24f   : > { %6118 = vmatprep.mubr.msk.bf16.mxu1 %vm1671_vm1, %v3734_v25  ;;  %v3766_v9 = vrot.slane %v3764_v52, 5  ;;  %v3380_v50 = vshll.u32 %v6496_v38, 16  ;;  %v3358_v8 = vor.u32 %v3357_v21, %v3354_v41  ;;  %v3366_v42 = vor.u32 %v3365_v62, %v3362_v18  ;;  %v3546_v25 = vld [vmem:[#allocation2 + $0x108] sm:$0x1f]  ;;  %v3160_v52 = vld [vmem:[#allocation2 + $0x100] sm:$0xf8] }
 0x250   : > { %v3372_v4 = vshll.u32 %v3156_v32, 16  ;;  %v3770_v46 = vshrl.u32 %v6497_v54, 16  ;;  %v3773_v23 = vshll.u32 %v6497_v54, 16  ;;  %v3778_v30 = vshrl.u32 %v3545_v44, 16  ;;  %v6500_v32 = vld [vmem:[#allocation2 + $0x108] sm:$0xf] }
 0x251   : > { %v3781_v6 = vshll.u32 %v3545_v44, 16  ;;  %v3759_v5 = vor.u32 %v3758_v43, %v3755_v1  ;;  %v3767_v45 = vor.u32 %v3766_v9, %v3763_v20  ;;  %v3371_v10 = vrot.slane %v3369_v14, 3  ;;  %v3547_v20 = vld [vmem:[#allocation2 + $0x118] sm:$0x1f] }
 0x252   : > { %v3367_v13 = vsel %vm343_vm3, %v3358_v8, %v3366_v42  ;;  %v3374_v53 = vrot.slane %v3372_v4, 4  ;;  %v3379_v61 = vrot.slane %v3377_v12, 3  ;;  %v3382_v51 = vrot.slane %v3380_v50, 4  ;;  %v6501_v4 = vld [vmem:[#allocation2 + $0x110] sm:$0xf0] }
 0x253   : > { %v3898_v22 = vsel %vm1671_vm1, %v3367_v13, %v3843_v57  ;;  %v3772_v35 = vrot.slane %v3770_v46, 4  ;;  %v3775_v28 = vrot.slane %v3773_v23, 5  ;;  %v3780_v0 = vrot.slane %v3778_v30, 4  ;;  %v8292_v33 = vpop.f32.mrb[4].mxu1 }
 0x254   : > { %v3783_v56 = vrot.slane %v3781_v6, 5  ;;  %v3768_v11 = vsel %vm1366_vm15, %v3759_v5, %v3767_v45  ;;  %v3375_v17 = vor.u32 %v3374_v53, %v3371_v10  ;;  %v3383_v15 = vor.u32 %v3382_v51, %v3379_v61  ;;  %v2733_v58 = vpop.f32.mrb[5].mxu1  ;;  %v6502_v5 = vld [vmem:[#allocation2 + $0x118] sm:$0xf]  ;;  %v3847_v61 = vpop.permute.xlu1 %3846 }
 0x255   : > { %v3394_v26 = vshrl.u32 %v6498_v7, 16  ;;  %v3397_v49 = vshll.u32 %v6498_v7, 16  ;;  %v3386_v34 = vshrl.u32 %v3158_v24, 16  ;;  %v3389_v55 = vshll.u32 %v3158_v24, 16  ;;  %v8294_v21 = vpop.f32.mrb[6].mxu1 }
 0x256   : > { %4174 = vmatmul.mubr.bf16.gmra.mrb[104].mxu1 %v3894_v48  ;;  %v3776_v27 = vor.u32 %v3775_v28, %v3772_v35  ;;  %v3784_v31 = vor.u32 %v3783_v56, %v3780_v0  ;;  %v3787_v63 = vshrl.u32 %v6499_v47, 16  ;;  %v3790_v19 = vshll.u32 %v6499_v47, 16  ;;  %v2736_v62 = vpop.f32.mrb[7].mxu1 }
 0x257   : > { %6119 = vmatprep.mubr.msk.bf16.mxu1 %vm1671_vm1, %v3751_v37  ;;  %v3795_v16 = vshrl.u32 %v3546_v25, 16  ;;  %v3798_v36 = vshll.u32 %v3546_v25, 16  ;;  %v3411_v41 = vshrl.u32 %v6500_v32, 16  ;;  %v3384_v18 = vsel %vm343_vm3, %v3375_v17, %v3383_v15 }
 0x258   : > { %v3388_v29 = vrot.slane %v3386_v34, 3  ;;  %v3391_v38 = vrot.slane %v3389_v55, 4  ;;  %v3396_v12 = vrot.slane %v3394_v26, 3  ;;  %v3399_v48 = vrot.slane %v3397_v49, 4 }
 0x259   : > { %v3902_v37 = vsel %vm1671_vm1, %v3384_v18, %v3845_v59  ;;  %v3785_v14 = vsel %vm1366_vm15, %v3776_v27, %v3784_v31  ;;  %v3789_v1 = vrot.slane %v3787_v63, 4  ;;  %v3403_v43 = vshrl.u32 %v3160_v52, 16 }
 0x25a   : > { %v3792_v9 = vrot.slane %v3790_v19, 5  ;;  %v3797_v44 = vrot.slane %v3795_v16, 4  ;;  %v3800_v50 = vrot.slane %v3798_v36, 5  ;;  %v3406_v8 = vshll.u32 %v3160_v52, 16  ;;  %v3849_v52 = vpop.permute.xlu1 %3848 }
 0x25b   : > { %v3414_v42 = vshll.u32 %v6500_v32, 16  ;;  %v3804_v57 = vshrl.u32 %v6501_v4, 16  ;;  %v3807_v54 = vshll.u32 %v6501_v4, 16  ;;  %v3392_v46 = vor.u32 %v3391_v38, %v3388_v29  ;;  %v8300_v13 = vpop.f32.mrb[8].mxu1 }
 0x25c   : > { %v3400_v23 = vor.u32 %v3399_v48, %v3396_v12  ;;  %v3812_v30 = vshrl.u32 %v3547_v20, 16  ;;  %v3815_v6 = vshll.u32 %v3547_v20, 16  ;;  %v3428_v45 = vshrl.u32 %v6502_v5, 16  ;;  %v2741_v51 = vpop.f32.mrb[9].mxu1 }
 0x25d   : > { %v3431_v10 = vshll.u32 %v6502_v5, 16  ;;  %v3405_v53 = vrot.slane %v3403_v43, 3  ;;  %v3793_v40 = vor.u32 %v3792_v9, %v3789_v1  ;;  %v3408_v35 = vrot.slane %v3406_v8, 4  ;;  %v8302_v0 = vpop.f32.mrb[10].mxu1 }
 0x25e   : > { %4182 = vmatmul.mubr.bf16.gmra.mrb[108].mxu1 %v3898_v22  ;;  %v3801_v22 = vor.u32 %v3800_v50, %v3797_v44  ;;  %v3413_v28 = vrot.slane %v3411_v41, 3  ;;  %v3416_v56 = vrot.slane %v3414_v42, 4  ;;  %v3806_v24 = vrot.slane %v3804_v57, 4  ;;  %v2744_v15 = vpop.f32.mrb[11].mxu1 }
 0x25f   : > { %6120 = vmatprep.mubr.msk.bf16.mxu1 %vm1671_vm1, %v3768_v11  ;;  %v3809_v11 = vrot.slane %v3807_v54, 5  ;;  %v3420_v17 = vshrl.u32 %v3162_v2, 16  ;;  %v3401_v25 = vsel %vm343_vm3, %v3392_v46, %v3400_v23  ;;  %v3814_v7 = vrot.slane %v3812_v30, 4 }
 0x260   : > { %v3817_v26 = vrot.slane %v3815_v6, 5  ;;  %v3423_v49 = vshll.u32 %v3162_v2, 16  ;;  %v3906_v34 = vsel %vm1671_vm1, %v3401_v25, %v3847_v61  ;;  %v3802_v55 = vsel %vm1366_vm15, %v3793_v40, %v3801_v22 }
 0x261   : > { %v3409_v27 = vor.u32 %v3408_v35, %v3405_v53  ;;  %v3417_v31 = vor.u32 %v3416_v56, %v3413_v28  ;;  %v3810_v47 = vor.u32 %v3809_v11, %v3806_v24  ;;  %v3422_v63 = vrot.slane %v3420_v17, 3 }
 0x262   : > { %v3818_v59 = vor.u32 %v3817_v26, %v3814_v7  ;;  %v3425_v58 = vrot.slane %v3423_v49, 4  ;;  %v3430_v19 = vrot.slane %v3428_v45, 3  ;;  %v3433_v16 = vrot.slane %v3431_v10, 4 }
 0x263   : > { %v8308_v36 = vpop.f32.mrb[12].mxu1  ;;  %v3418_v62 = vsel %vm343_vm3, %v3409_v27, %v3417_v31  ;;  %vm5554_vm8 = vcmask 7168   ;;  %vm5641_vm11 = vcmask 121856   ;;  %vm5418_vm12 = vcmask 1039360  }
 0x264   : > { %v2749_v32 = vpop.f32.mrb[13].mxu1  ;;  %v3819_v29 = vsel %vm1366_vm15, %v3810_v47, %v3818_v59  ;;  %v3426_v38 = vor.u32 %v3425_v58, %v3422_v63  ;;  %v3434_v12 = vor.u32 %v3433_v16, %v3430_v19  ;;  %v3910_v48 = vsel %vm1671_vm1, %v3418_v62, %v3849_v52 }
 0x265   : > { %v8310_v41 = vpop.f32.mrb[14].mxu1  ;;  %vm5407_vm14 = vcmask 908288   ;;  %vm5816_vm15 = vcmask 1040384  }
 0x266   : > { %4190 = vmatmul.mubr.bf16.gmra.mrb[112].mxu1 %v3902_v37  ;;  %v2752_v18 = vpop.f32.mrb[15].mxu1  ;;  %v3851_v37 = vpop.permute.xlu1 %3850 }
 0x267   : > { %6121 = vmatprep.mubr.msk.bf16.mxu1 %vm1671_vm1, %v3785_v14  ;;  %v3435_v14 = vsel %vm343_vm3, %v3426_v38, %v3434_v12 }
 0x268   : > { %v3914_v9 = vsel %vm1671_vm1, %v3435_v14, %v3851_v37 }
 0x26b   : > { %v2755_v1 = vpop.f32.mrb[16].mxu1 }
 0x26c   : > { %v2757_v43 = vpop.f32.mrb[17].mxu1 }
 0x26d   : > { %v2758_v20 = vpop.f32.mrb[18].mxu1 }
 0x26e   : > { %4198 = vmatmul.mubr.bf16.gmra.mrb[116].mxu1 %v3906_v34  ;;  %v2760_v44 = vpop.f32.mrb[19].mxu1 }
 0x26f   : > { %6122 = vmatprep.mubr.msk.bf16.mxu1 %vm1671_vm1, %v3802_v55 }
 0x273   : > { %v8319_v50 = vpop.f32.mrb[20].mxu1 }
 0x274   : > { %v2765_v8 = vpop.f32.mrb[21].mxu1 }
 0x275   : > { %v8321_v42 = vpop.f32.mrb[22].mxu1 }
 0x276   : > { %4206 = vmatmul.mubr.bf16.gmra.mrb[120].mxu1 %v3910_v48  ;;  %v2768_v4 = vpop.f32.mrb[23].mxu1 }
 0x277   : > { %6123 = vmatprep.mubr.msk.bf16.mxu1 %vm1671_vm1, %v3819_v29 }
 0x27b   : > { %v8323_v57 = vpop.f32.mrb[24].mxu1 }
 0x27c   : > { %v2773_v54 = vpop.f32.mrb[25].mxu1 }
 0x27d   : > { %v8325_v46 = vpop.f32.mrb[26].mxu1 }
 0x27e   : > { %4214 = vmatmul.mubr.bf16.gmra.mrb[124].mxu1 %v3914_v9  ;;  %v2776_v23 = vpop.f32.mrb[27].mxu1 }
 0x27f   : > { %4988 = vmatprep.mubr.bf16.mxu1 %v9274_v3 }
 0x283   : > { %v8327_v30 = vpop.f32.mrb[28].mxu1 }
 0x284   : > { %v2781_v6 = vpop.f32.mrb[29].mxu1 }
 0x285   : > { %v8329_v2 = vpop.f32.mrb[30].mxu1 }
 0x286   : > { %v2784_v5 = vpop.f32.mrb[31].mxu1 }
 0x28b   : > { %v8337_v22 = vpop.f32.mrb[32].mxu1 }
 0x28c   : > { %v3004_v45 = vpop.f32.mrb[32].mxu0  ;;  %v2789_v35 = vpop.f32.mrb[33].mxu1 }
 0x28d   : > { %v8332_v10 = vadd.f32 %v3004_v45, %v8284_v60  ;;  %v3006_v53 = vpop.f32.mrb[33].mxu0  ;;  %v8339_v28 = vpop.f32.mrb[34].mxu1 }
 0x28e   : > { %v3007_v61 = vpop.f32.mrb[34].mxu0  ;;  %v2792_v56 = vpop.f32.mrb[35].mxu1 }
 0x28f   : > { %v8335_v51 = vadd.f32 %v3007_v61, %v8286_v39  ;;  %v3009_v40 = vpop.f32.mrb[35].mxu0 }
 0x293   : > { %v8347_v7 = vpop.f32.mrb[36].mxu1 }
 0x294   : > { %v3012_v24 = vpop.f32.mrb[36].mxu0  ;;  %v2797_v39 = vpop.f32.mrb[37].mxu1 }
 0x295   : > { %v8342_v11 = vadd.f32 %v3012_v24, %v8292_v33  ;;  %v3014_v17 = vpop.f32.mrb[37].mxu0  ;;  %v8349_v26 = vpop.f32.mrb[38].mxu1 }
 0x296   : > { %v3015_v15 = vpop.f32.mrb[38].mxu0  ;;  %v2800_v49 = vpop.f32.mrb[39].mxu1 }
 0x297   : > { %v8345_v60 = vadd.f32 %v3015_v15, %v8294_v21  ;;  %v3017_v25 = vpop.f32.mrb[39].mxu0 }
 0x29b   : > { %v8357_v63 = vpop.f32.mrb[40].mxu1 }
 0x29c   : > { %v3020_v34 = vpop.f32.mrb[40].mxu0  ;;  %v2805_v21 = vpop.f32.mrb[41].mxu1 }
 0x29d   : > { %v8352_v55 = vadd.f32 %v3020_v34, %v8300_v13  ;;  %v3022_v27 = vpop.f32.mrb[41].mxu0  ;;  %v8359_v59 = vpop.f32.mrb[42].mxu1 }
 0x29e   : > { %v3023_v31 = vpop.f32.mrb[42].mxu0  ;;  %v2808_v58 = vpop.f32.mrb[43].mxu1 }
 0x29f   : > { %v8355_v33 = vadd.f32 %v3023_v31, %v8302_v0  ;;  %v3025_v47 = vpop.f32.mrb[43].mxu0 }
 0x2a3   : > { %v8367_v62 = vpop.f32.mrb[44].mxu1 }
 0x2a4   : > { %v3028_v19 = vpop.f32.mrb[44].mxu0  ;;  %v2813_v0 = vpop.f32.mrb[45].mxu1 }
 0x2a5   : > { %v8362_v16 = vadd.f32 %v3028_v19, %v8308_v36  ;;  %v3030_v52 = vpop.f32.mrb[45].mxu0  ;;  %v8369_v29 = vpop.f32.mrb[46].mxu1 }
 0x2a6   : > { %v3031_v32 = vpop.f32.mrb[46].mxu0  ;;  %v2816_v38 = vpop.f32.mrb[47].mxu1 }
 0x2a7   : > { %v8365_v13 = vadd.f32 %v3031_v32, %v8310_v41  ;;  %v3033_v18 = vpop.f32.mrb[47].mxu0 }
 0x2ab   : > { %v8375_v9 = vpop.f32.mrb[48].mxu1 }
 0x2ac   : > { %v3036_v12 = vpop.f32.mrb[48].mxu0  ;;  %v2821_v44 = vpop.f32.mrb[49].mxu1 }
 0x2ad   : > { %v8371_v48 = vadd.f32 %v3036_v12, %v2755_v1  ;;  %v3038_v37 = vpop.f32.mrb[49].mxu0  ;;  %v8377_v41 = vpop.f32.mrb[50].mxu1 }
 0x2ae   : > { %v3039_v14 = vpop.f32.mrb[50].mxu0  ;;  %v2824_v8 = vpop.f32.mrb[51].mxu1 }
 0x2af   : > { %v8373_v43 = vadd.f32 %v3039_v14, %v2758_v20  ;;  %v3041_v36 = vpop.f32.mrb[51].mxu0 }
 0x2b3   : > { %v8385_v45 = vpop.f32.mrb[52].mxu1 }
 0x2b4   : > { %v3044_v4 = vpop.f32.mrb[52].mxu0  ;;  %v2829_v20 = vpop.f32.mrb[53].mxu1 }
 0x2b5   : > { %v8380_v54 = vadd.f32 %v3044_v4, %v8319_v50  ;;  %v3046_v23 = vpop.f32.mrb[53].mxu0  ;;  %v8387_v53 = vpop.f32.mrb[54].mxu1 }
 0x2b6   : > { %v3047_v6 = vpop.f32.mrb[54].mxu0  ;;  %v2832_v61 = vpop.f32.mrb[55].mxu1 }
 0x2b7   : > { %v8383_v1 = vadd.f32 %v3047_v6, %v8321_v42  ;;  %v3049_v5 = vpop.f32.mrb[55].mxu0 }
 0x2bb   : > { %v8395_v15 = vpop.f32.mrb[56].mxu1 }
 0x2bc   : > { %v3052_v40 = vpop.f32.mrb[56].mxu0  ;;  %v2837_v42 = vpop.f32.mrb[57].mxu1 }
 0x2bd   : > { %v8390_v35 = vadd.f32 %v3052_v40, %v8323_v57  ;;  %v3054_v56 = vpop.f32.mrb[57].mxu0  ;;  %v8397_v25 = vpop.f32.mrb[58].mxu1 }
 0x2be   : > { %v3055_v24 = vpop.f32.mrb[58].mxu0  ;;  %v2840_v39 = vpop.f32.mrb[59].mxu1 }
 0x2bf   : > { %v8393_v50 = vadd.f32 %v3055_v24, %v8325_v46  ;;  %v3057_v17 = vpop.f32.mrb[59].mxu0 }
 0x2c3   : > { %v8405_v21 = vpop.f32.mrb[60].mxu1 }
 0x2c4   : > { %v3060_v49 = vpop.f32.mrb[60].mxu0  ;;  %v2845_v46 = vpop.f32.mrb[61].mxu1 }
 0x2c5   : > { %v8400_v34 = vadd.f32 %v3060_v49, %v8327_v30  ;;  %v3062_v27 = vpop.f32.mrb[61].mxu0  ;;  %v8407_v58 = vpop.f32.mrb[62].mxu1 }
 0x2c6   : > { %v3063_v31 = vpop.f32.mrb[62].mxu0  ;;  %v2848_v19 = vpop.f32.mrb[63].mxu1 }
 0x2c7   : > { %v8403_v57 = vadd.f32 %v3063_v31, %v8329_v2  ;;  %v3065_v47 = vpop.f32.mrb[63].mxu0 }
 0x2cb   : > { %v4095_v12 = vpop.f32.mrb[64].mxu1 }
 0x2cc   : > { %v3068_v52 = vpop.f32.mrb[64].mxu0  ;;  %v8416_v2 = vadd.f32 %v4095_v12, %v8332_v10  ;;  %v4097_v37 = vpop.f32.mrb[65].mxu1 }
 0x2cd   : > { %v8410_v32 = vadd.f32 %v3068_v52, %v8337_v22  ;;  %v3070_v18 = vpop.f32.mrb[65].mxu0  ;;  %v4098_v14 = vpop.f32.mrb[66].mxu1 }
 0x2ce   : > { %v3071_v0 = vpop.f32.mrb[66].mxu0  ;;  %v8419_v36 = vadd.f32 %v4098_v14, %v8335_v51  ;;  %v4100_v44 = vpop.f32.mrb[67].mxu1 }
 0x2cf   : > { %v8413_v30 = vadd.f32 %v3071_v0, %v8339_v28  ;;  %v3073_v38 = vpop.f32.mrb[67].mxu0 }
 0x2d3   : > { %v4103_v5 = vpop.f32.mrb[68].mxu1 }
 0x2d4   : > { %v3076_v8 = vpop.f32.mrb[68].mxu0  ;;  %v8428_v10 = vadd.f32 %v4103_v5, %v8342_v11  ;;  %v4105_v20 = vpop.f32.mrb[69].mxu1 }
 0x2d5   : > { %v8422_v22 = vadd.f32 %v3076_v8, %v8347_v7  ;;  %v3078_v4 = vpop.f32.mrb[69].mxu0  ;;  %v4106_v61 = vpop.f32.mrb[70].mxu1 }
 0x2d6   : > { %v3079_v23 = vpop.f32.mrb[70].mxu0  ;;  %v8431_v51 = vadd.f32 %v4106_v61, %v8345_v60  ;;  %v4108_v40 = vpop.f32.mrb[71].mxu1 }
 0x2d7   : > { %v8425_v28 = vadd.f32 %v3079_v23, %v8349_v26  ;;  %v3081_v6 = vpop.f32.mrb[71].mxu0 }
 0x2db   : > { %v4111_v39 = vpop.f32.mrb[72].mxu1 }
 0x2dc   : > { %v3084_v56 = vpop.f32.mrb[72].mxu0  ;;  %v8440_v11 = vadd.f32 %v4111_v39, %v8352_v55  ;;  %v4113_v49 = vpop.f32.mrb[73].mxu1 }
 0x2dd   : > { %v8434_v7 = vadd.f32 %v3084_v56, %v8357_v63  ;;  %v3086_v24 = vpop.f32.mrb[73].mxu0  ;;  %v4114_v27 = vpop.f32.mrb[74].mxu1 }
 0x2de   : > { %v3087_v17 = vpop.f32.mrb[74].mxu0  ;;  %v8443_v60 = vadd.f32 %v4114_v27, %v8355_v33  ;;  %v4116_v31 = vpop.f32.mrb[75].mxu1 }
 0x2df   : > { %v8437_v26 = vadd.f32 %v3087_v17, %v8359_v59  ;;  %v3089_v42 = vpop.f32.mrb[75].mxu0 }
 0x2e7   : > { %v3092_v47 = vpop.f32.mrb[76].mxu0  ;;  %v4119_v18 = vpop.f32.mrb[76].mxu1 }
 0x2e8   : > { %v8446_v63 = vadd.f32 %v3092_v47, %v8367_v62  ;;  %v3094_v46 = vpop.f32.mrb[77].mxu0  ;;  %v8452_v55 = vadd.f32 %v4119_v18, %v8362_v16  ;;  %v4121_v0 = vpop.f32.mrb[77].mxu1 }
 0x2e9   : > { %v3095_v19 = vpop.f32.mrb[78].mxu0  ;;  %v4122_v38 = vpop.f32.mrb[78].mxu1 }
 0x2ea   : > { %v8449_v59 = vadd.f32 %v3095_v19, %v8369_v29  ;;  %v3097_v52 = vpop.f32.mrb[79].mxu0  ;;  %v8455_v33 = vadd.f32 %v4122_v38, %v8365_v13  ;;  %v4124_v12 = vpop.f32.mrb[79].mxu1 }
 0x2f1   : > { %v3100_v37 = vpop.f32.mrb[80].mxu0 }
 0x2f2   : > { %v8458_v62 = vadd.f32 %v3100_v37, %v8375_v9  ;;  %v3102_v14 = vpop.f32.mrb[81].mxu0 }
 0x2f3   : > { %v3103_v44 = vpop.f32.mrb[82].mxu0 }
 0x2f4   : > { %v8461_v29 = vadd.f32 %v3103_v44, %v8377_v41  ;;  %v3105_v8 = vpop.f32.mrb[83].mxu0 }
 0x2f5   : > { %v4127_v4 = vpop.f32.mrb[80].mxu1 }
 0x2f6   : > { %v8464_v16 = vadd.f32 %v4127_v4, %v8371_v48  ;;  %v4129_v23 = vpop.f32.mrb[81].mxu1 }
 0x2f7   : > { %v4130_v6 = vpop.f32.mrb[82].mxu1 }
 0x2f8   : > { %v8467_v13 = vadd.f32 %v4130_v6, %v8373_v43  ;;  %v4132_v5 = vpop.f32.mrb[83].mxu1 }
 0x2f9   : > { %v3108_v20 = vpop.f32.mrb[84].mxu0 }
 0x2fa   : > { %v8470_v9 = vadd.f32 %v3108_v20, %v8385_v45  ;;  %v3110_v61 = vpop.f32.mrb[85].mxu0 }
 0x2fb   : > { %v3111_v40 = vpop.f32.mrb[86].mxu0 }
 0x2fc   : > { %v8473_v41 = vadd.f32 %v3111_v40, %v8387_v53  ;;  %v3113_v56 = vpop.f32.mrb[87].mxu0 }
 0x2ff   : > { %v4135_v24 = vpop.f32.mrb[84].mxu1 }
 0x300   : > { %v8476_v48 = vadd.f32 %v4135_v24, %v8380_v54  ;;  %v4137_v17 = vpop.f32.mrb[85].mxu1 }
 0x301   : > { %v4138_v42 = vpop.f32.mrb[86].mxu1 }
 0x302   : > { %v8479_v43 = vadd.f32 %v4138_v42, %v8383_v1  ;;  %v4140_v39 = vpop.f32.mrb[87].mxu1 }
 0x306   : > { %v3116_v49 = vpop.f32.mrb[88].mxu0 }
 0x307   : > { %v8482_v45 = vadd.f32 %v3116_v49, %v8395_v15  ;;  %v3118_v27 = vpop.f32.mrb[89].mxu0 }
 0x308   : > { %v3119_v31 = vpop.f32.mrb[90].mxu0 }
 0x309   : > { %v8485_v53 = vadd.f32 %v3119_v31, %v8397_v25  ;;  %v3121_v47 = vpop.f32.mrb[91].mxu0  ;;  %v4143_v46 = vpop.f32.mrb[88].mxu1 }
 0x30a   : > { %v8488_v54 = vadd.f32 %v4143_v46, %v8390_v35  ;;  %v4145_v19 = vpop.f32.mrb[89].mxu1 }
 0x30b   : > { %v4146_v52 = vpop.f32.mrb[90].mxu1 }
 0x30c   : > { %v8491_v1 = vadd.f32 %v4146_v52, %v8393_v50  ;;  %v4148_v18 = vpop.f32.mrb[91].mxu1 }
 0x30e   : > { %v3124_v0 = vpop.f32.mrb[92].mxu0 }
 0x30f   : > { %v8494_v15 = vadd.f32 %v3124_v0, %v8405_v21  ;;  %v3126_v38 = vpop.f32.mrb[93].mxu0  ;;  %v8508_v21 = vld [vmem:[%s9129_s4] ss:$0 sm:$0xff] }
 0x310   : > { %v3127_v12 = vpop.f32.mrb[94].mxu0  ;;  %v4262_v20 = vadd.f32 %v8508_v21, %v8419_v36 }
 0x311   : > { %v8497_v25 = vadd.f32 %v3127_v12, %v8407_v58  ;;  %v3129_v37 = vpop.f32.mrb[95].mxu0  ;;  %v4151_v14 = vpop.f32.mrb[92].mxu1  ;;  %v4261_v58 = vadd.f32 %v8508_v21, %v8416_v2 }
 0x312   : > { %v8500_v35 = vadd.f32 %v4151_v14, %v8400_v34  ;;  %v4153_v44 = vpop.f32.mrb[93].mxu1  ;;  %v4294_v42 = vmax.f32 %v4262_v20, 0.0  ;;  %v4265_v14 = vadd.f32 %v8508_v21, %v8440_v11 }
 0x313   : > { %v4154_v8 = vpop.f32.mrb[94].mxu1  ;;  %v4293_v56 = vmax.f32 %v4261_v58, 0.0 }
 0x314   : > { %v8503_v50 = vadd.f32 %v4154_v8, %v8403_v57  ;;  %v4156_v4 = vpop.f32.mrb[95].mxu1 }
 0x319   : > { %v4159_v23 = vpop.f32.mrb[96].mxu1 }
 0x31a   : > { %v4238_v6 = vadd.f32 %v4159_v23, %v8410_v32  ;;  %v4161_v5 = vpop.f32.mrb[97].mxu1  ;;  %v4263_v32 = vadd.f32 %v8508_v21, %v8428_v10 }
 0x31b   : > { %v4162_v34 = vpop.f32.mrb[98].mxu1  ;;  %v4297_v5 = vmax.f32 %v4265_v14, 0.0  ;;  %v4271_v14 = vadd.f32 %v8508_v21, %v8476_v48 }
 0x31c   : > { %v4277_v57 = vadd.f32 %v8508_v21, %v4238_v6  ;;  %v4239_v61 = vadd.f32 %v4162_v34, %v8413_v30  ;;  %v4164_v40 = vpop.f32.mrb[99].mxu1  ;;  %v4264_v30 = vadd.f32 %v8508_v21, %v8431_v51  ;;  %v4295_v18 = vmax.f32 %v4263_v32, 0.0 }
 0x31d   : > { %v4267_v40 = vadd.f32 %v8508_v21, %v8452_v55 }
 0x31e   : > { %v4309_v24 = vmax.f32 %v4277_v57, 0.0  ;;  %v4278_v17 = vadd.f32 %v8508_v21, %v4239_v61  ;;  %v4296_v10 = vmax.f32 %v4264_v30, 0.0 }
 0x320   : > { %v4310_v39 = vmax.f32 %v4278_v17, 0.0  ;;  %v6253_v49 = vpack.i.bf16 %v4293_v56, %v4309_v24 }
 0x321   : > { %v4167_v2 = vpop.f32.mrb[100].mxu1 }
 0x322   : > { %v4240_v27 = vadd.f32 %v4167_v2, %v8422_v22  ;;  %v4169_v31 = vpop.f32.mrb[101].mxu1  ;;  %6254 = vxpose.xlu0.b32.start [1/16] %v6253_v49, 128  ;;  %v6255_v36 = vpack.i.bf16 %v4294_v42, %v4310_v39  ;;  %v4299_v2 = vmax.f32 %v4267_v40, 0.0 }
 0x323   : > { %v4170_v47 = vpop.f32.mrb[102].mxu1 }
 0x324   : > { %v4279_v46 = vadd.f32 %v8508_v21, %v4240_v27  ;;  %v4241_v19 = vadd.f32 %v4170_v47, %v8425_v28  ;;  %v4172_v52 = vpop.f32.mrb[103].mxu1  ;;  %v4266_v28 = vadd.f32 %v8508_v21, %v8443_v60  ;;  %v4269_v47 = vadd.f32 %v8508_v21, %v8464_v16 }
 0x326   : > { %v4311_v0 = vmax.f32 %v4279_v46, 0.0  ;;  %v4280_v38 = vadd.f32 %v8508_v21, %v4241_v19  ;;  %6256 = vxpose.xlu0.b32.cont [2/16] %v6255_v36, 128  ;;  %v4298_v11 = vmax.f32 %v4266_v28, 0.0 }
 0x328   : > { %v4312_v12 = vmax.f32 %v4280_v38, 0.0  ;;  %v6257_v22 = vpack.i.bf16 %v4295_v18, %v4311_v0  ;;  %v4301_v38 = vmax.f32 %v4269_v47, 0.0 }
 0x329   : > { %v4175_v37 = vpop.f32.mrb[104].mxu1 }
 0x32a   : > { %v4242_v44 = vadd.f32 %v4175_v37, %v8434_v7  ;;  %v4177_v51 = vpop.f32.mrb[105].mxu1  ;;  %6258 = vxpose.xlu0.b32.cont [3/16] %v6257_v22, 128  ;;  %v6259_v8 = vpack.i.bf16 %v4296_v10, %v4312_v12 }
 0x32b   : > { %v4178_v4 = vpop.f32.mrb[106].mxu1 }
 0x32c   : > { %v4281_v23 = vadd.f32 %v8508_v21, %v4242_v44  ;;  %v4243_v58 = vadd.f32 %v4178_v4, %v8437_v26  ;;  %v4180_v6 = vpop.f32.mrb[107].mxu1  ;;  %v4268_v26 = vadd.f32 %v8508_v21, %v8455_v33 }
 0x32e   : > { %v4313_v34 = vmax.f32 %v4281_v23, 0.0  ;;  %v4282_v20 = vadd.f32 %v8508_v21, %v4243_v58  ;;  %6260 = vxpose.xlu0.b32.cont [4/16] %v6259_v8, 128  ;;  %v4300_v55 = vmax.f32 %v4268_v26, 0.0  ;;  %v4303_v58 = vmax.f32 %v4271_v14, 0.0 }
 0x330   : > { %v4314_v57 = vmax.f32 %v4282_v20, 0.0  ;;  %v6261_v7 = vpack.i.bf16 %v4297_v5, %v4313_v34 }
 0x331   : > { %v4183_v61 = vpop.f32.mrb[108].mxu1 }
 0x332   : > { %v4244_v56 = vadd.f32 %v4183_v61, %v8446_v63  ;;  %v4185_v60 = vpop.f32.mrb[109].mxu1  ;;  %6262 = vxpose.xlu0.b32.cont [5/16] %v6261_v7, 128  ;;  %v6263_v24 = vpack.i.bf16 %v4298_v11, %v4314_v57  ;;  %v4273_v11 = vadd.f32 %v8508_v21, %v8488_v54 }
 0x333   : > { %v4186_v17 = vpop.f32.mrb[110].mxu1 }
 0x334   : > { %v4283_v42 = vadd.f32 %v8508_v21, %v4244_v56  ;;  %v4245_v39 = vadd.f32 %v4186_v17, %v8449_v59  ;;  %v4188_v49 = vpop.f32.mrb[111].mxu1  ;;  %v4270_v59 = vadd.f32 %v8508_v21, %v8467_v13 }
 0x335   : > { %v4275_v49 = vadd.f32 %v8508_v21, %v8500_v35 }
 0x336   : > { %v4315_v32 = vmax.f32 %v4283_v42, 0.0  ;;  %v4284_v27 = vadd.f32 %v8508_v21, %v4245_v39  ;;  %6264 = vxpose.xlu0.b32.cont [6/16] %v6263_v24, 128  ;;  %v4302_v16 = vmax.f32 %v4270_v59, 0.0  ;;  %v4305_v24 = vmax.f32 %v4273_v11, 0.0  ;;  %v8602_v59 = vld [vmem:[%s9131_s6 + $0x20] sm:$0xff] }
 0x338   : > { %v4316_v31 = vmax.f32 %v4284_v27, 0.0  ;;  %v6265_v63 = vpack.i.bf16 %v4299_v2, %v4315_v32 }
 0x339   : > { %v4191_v36 = vpop.f32.mrb[112].mxu1 }
 0x33a   : > { %v4246_v30 = vadd.f32 %v4191_v36, %v8458_v62  ;;  %v4193_v33 = vpop.f32.mrb[113].mxu1  ;;  %6266 = vxpose.xlu0.b32.cont [7/16] %v6265_v63, 128  ;;  %v6267_v46 = vpack.i.bf16 %v4300_v55, %v4316_v31  ;;  %v4307_v36 = vmax.f32 %v4275_v49, 0.0 }
 0x33b   : > { %v4194_v19 = vpop.f32.mrb[114].mxu1 }
 0x33c   : > { %v4285_v52 = vadd.f32 %v8508_v21, %v4246_v30  ;;  %v4247_v18 = vadd.f32 %v4194_v19, %v8461_v29  ;;  %v4196_v0 = vpop.f32.mrb[115].mxu1  ;;  %v4272_v29 = vadd.f32 %v8508_v21, %v8479_v43  ;;  %v8596_v19 = vld [vmem:[%s9131_s6 + $0x18] sm:$0xff] }
 0x33d   : > { %v8619_v0 = vld [vmem:[%s9131_s6 + $0x38] sm:$0xff] }
 0x33e   : > { %v4317_v10 = vmax.f32 %v4285_v52, 0.0  ;;  %v4286_v12 = vadd.f32 %v8508_v21, %v4247_v18  ;;  %6268 = vxpose.xlu0.b32.cont [8/16] %v6267_v46, 128  ;;  %v4304_v48 = vmax.f32 %v4272_v29, 0.0  ;;  %v8608_v52 = vld [vmem:[%s9131_s6 + $0x28] sm:$0xff]  ;;  %v8614_v18 = vld [vmem:[%s9131_s6 + $0x30] sm:$0xff] }
 0x340   : > { %v4318_v22 = vmax.f32 %v4286_v12, 0.0  ;;  %v6269_v62 = vpack.i.bf16 %v4301_v38, %v4317_v10 }
 0x341   : > { %v4199_v37 = vpop.f32.mrb[116].mxu1 }
 0x342   : > { %v4248_v44 = vadd.f32 %v4199_v37, %v8470_v9  ;;  %v4201_v13 = vpop.f32.mrb[117].mxu1  ;;  %6270 = vxpose.xlu0.b32.cont [9/16] %v6269_v62, 128  ;;  %v6271_v51 = vpack.i.bf16 %v4302_v16, %v4318_v22 }
 0x343   : > { %v4202_v8 = vpop.f32.mrb[118].mxu1 }
 0x344   : > { %v4287_v4 = vadd.f32 %v8508_v21, %v4248_v44  ;;  %v4249_v28 = vadd.f32 %v4202_v8, %v8473_v41  ;;  %v4204_v23 = vpop.f32.mrb[119].mxu1  ;;  %v4274_v41 = vadd.f32 %v8508_v21, %v8491_v1 }
 0x346   : > { %v4319_v6 = vmax.f32 %v4287_v4, 0.0  ;;  %v4288_v5 = vadd.f32 %v8508_v21, %v4249_v28  ;;  %6272 = vxpose.xlu0.b32.cont [10/16] %v6271_v51, 128  ;;  %v4306_v54 = vmax.f32 %v4274_v41, 0.0 }
 0x348   : > { %v4320_v34 = vmax.f32 %v4288_v5, 0.0  ;;  %v6273_v9 = vpack.i.bf16 %v4303_v58, %v4319_v6 }
 0x349   : > { %v4207_v20 = vpop.f32.mrb[120].mxu1 }
 0x34a   : > { %v4250_v57 = vadd.f32 %v4207_v20, %v8482_v45  ;;  %v4209_v43 = vpop.f32.mrb[121].mxu1  ;;  %6274 = vxpose.xlu0.b32.cont [11/16] %v6273_v9, 128  ;;  %v6275_v7 = vpack.i.bf16 %v4304_v48, %v4320_v34 }
 0x34b   : > { %v4210_v61 = vpop.f32.mrb[122].mxu1 }
 0x34c   : > { %v4289_v40 = vadd.f32 %v8508_v21, %v4250_v57  ;;  %v4251_v56 = vadd.f32 %v4210_v61, %v8485_v53  ;;  %v4212_v60 = vpop.f32.mrb[123].mxu1  ;;  %v4276_v53 = vadd.f32 %v8508_v21, %v8503_v50  ;;  %v8577_v50 = vld [vmem:[%s9131_s6] sm:$0xff] }
 0x34d   : > { %4423 = vperm.xlu1 %6365, %v8577_v50  }
 0x34e   : > { %v4321_v17 = vmax.f32 %v4289_v40, 0.0  ;;  %v4290_v26 = vadd.f32 %v8508_v21, %v4251_v56  ;;  %6276 = vxpose.xlu0.b32.cont [12/16] %v6275_v7, 128  ;;  %v4308_v35 = vmax.f32 %v4276_v53, 0.0 }
 0x350   : > { %v4322_v42 = vmax.f32 %v4290_v26, 0.0  ;;  %v6277_v45 = vpack.i.bf16 %v4305_v24, %v4321_v17 }
 0x351   : > { %v4215_v39 = vpop.f32.mrb[124].mxu1 }
 0x352   : > { %v4252_v2 = vadd.f32 %v4215_v39, %v8494_v15  ;;  %v4217_v1 = vpop.f32.mrb[125].mxu1  ;;  %6278 = vxpose.xlu0.b32.cont [13/16] %v6277_v45, 128  ;;  %v6279_v32 = vpack.i.bf16 %v4306_v54, %v4322_v42 }
 0x353   : > { %v4218_v27 = vpop.f32.mrb[126].mxu1 }
 0x354   : > { %v4291_v55 = vadd.f32 %v8508_v21, %v4252_v2  ;;  %v4253_v31 = vadd.f32 %v4218_v27, %v8497_v25  ;;  %v4220_v63 = vpop.f32.mrb[127].mxu1  ;;  %v8583_v25 = vld [vmem:[%s9131_s6 + $0x8] sm:$0xff] }
 0x355   : > { %4428 = vperm.xlu1 %6365, %v8583_v25  }
 0x356   : > { %v4323_v47 = vmax.f32 %v4291_v55, 0.0  ;;  %v4292_v30 = vadd.f32 %v8508_v21, %v4253_v31  ;;  %6280 = vxpose.xlu0.b32.cont [14/16] %v6279_v32, 128  ;;  %v8589_v21 = vld [vmem:[%s9131_s6 + $0x10] sm:$0xff] }
 0x358   : > { %v4324_v33 = vmax.f32 %v4292_v30, 0.0  ;;  %v6281_v15 = vpack.i.bf16 %v4307_v36, %v4323_v47 }
 0x359   : > { %4433 = vperm.xlu1 %6365, %v8589_v21  }
 0x35a   : > { %6282 = vxpose.xlu0.b32.cont [15/16] %v6281_v15, 128  ;;  %v6283_v46 = vpack.i.bf16 %v4308_v35, %v4324_v33 }
 0x35d   : > { %4438 = vperm.xlu1 %6365, %v8596_v19  }
 0x35e   : > { %6284 = vxpose.xlu0.b32.end [16/16] %v6283_v46, 128 }
 0x361   : > { %4443 = vperm.xlu1 %6365, %v8602_v59  }
 0x365   : > { %4448 = vperm.xlu1 %6365, %v8608_v52  }
 0x369   : > { %4453 = vperm.xlu1 %6365, %v8614_v18  }
 0x36d   : > { %4458 = vperm.xlu1 %6365, %v8619_v0  }
 0x371   : > { %4658 = vperm.xlu1 %6365, %v8577_v50  }
 0x375   : > { %4663 = vperm.xlu1 %6365, %v8583_v25  }
 0x379   : > { %4668 = vperm.xlu1 %6365, %v8589_v21  }
 0x37d   : > { %4673 = vperm.xlu1 %6365, %v8596_v19  }
 0x381   : > { %4678 = vperm.xlu1 %6365, %v8602_v59  }
 0x385   : > { %4683 = vperm.xlu1 %6365, %v8608_v52  }
 0x387   : > { %6366 = vset.pattern.permute.xlu0 %v9274_v3 }
 0x388   : > { %4929 = vperm.xlu0 %6366, %v8619_v0  }
 0x389   : > { %4688 = vperm.xlu1 %6365, %v8614_v18  }
 0x38d   : > { %4693 = vperm.xlu1 %6365, %v8619_v0  }
 0x391   : > { %4894 = vperm.xlu1 %6365, %v8577_v50  }
 0x395   : > { %4899 = vperm.xlu1 %6365, %v8583_v25  }
 0x399   : > { %4904 = vperm.xlu1 %6365, %v8589_v21  }
 0x39d   : > { %4909 = vperm.xlu1 %6365, %v8596_v19  }
 0x3a1   : > { %4914 = vperm.xlu1 %6365, %v8602_v59  }
 0x3a2   : > { %v6285_v38 = vpop.trf.xlu0 }
 0x3a3   : > { %v6289_v10 = vunpack.i.h.bf16 %v6285_v38  ;;  %v6286_v12 = vunpack.i.l.bf16 %v6285_v38 }
 0x3a5   : > { %4919 = vperm.xlu1 %6365, %v8608_v52  }
 0x3a6   : > { %v6290_v16 = vpop.trf.xlu0 }
 0x3a7   : > { %v6294_v22 = vunpack.i.h.bf16 %v6290_v16  ;;  %v6291_v62 = vunpack.i.l.bf16 %v6290_v16 }
 0x3a9   : > { %v8627_v37 = vpack.c.bf16 %v6291_v62, %v6286_v12  ;;  %v8629_v14 = vpack.c.bf16 %v6294_v22, %v6289_v10  ;;  %4924 = vperm.xlu1 %6365, %v8614_v18  }
 0x3aa   : > { %v6295_v44 = vpop.trf.xlu0 }
 0x3ab   : > { %4485 = vmatprep.subr.bf16.mxu0 %v8627_v37  ;;  %4956 = vmatprep.subr.bf16.mxu1 %v8627_v37  ;;  %v6299_v13 = vunpack.i.h.bf16 %v6295_v44  ;;  %v6296_v51 = vunpack.i.l.bf16 %v6295_v44 }
 0x3ac   : > { %4486 = vmatpush1.bf16.msra.mxu0 %v8629_v14  ;;  %4957 = vmatpush1.bf16.msra.mxu1 %v8629_v14 }
 0x3ad   : > { %5130 = vperm.xlu1 %6365, %v8577_v50   ;;  %v6421_v50 = vld [vmem:[%s9130_s5 + $0x40] sm:$0xff]  }
 0x3ae   : > { %v6300_v8 = vpop.trf.xlu0 }
 0x3af   : > { %v6304_v29 = vunpack.i.h.bf16 %v6300_v8  ;;  %v6301_v4 = vunpack.i.l.bf16 %v6300_v8  ;;  %v6420_v8 = vld [vmem:[%s9130_s5] sm:$0xff]  }
 0x3b1   : > { %v8636_v28 = vpack.c.bf16 %v6301_v4, %v6296_v51  ;;  %v8638_v23 = vpack.c.bf16 %v6304_v29, %v6299_v13  ;;  %5135 = vperm.xlu1 %6365, %v8583_v25   ;;  %v6422_v25 = vld [vmem:[%s9130_s5 + $0x8] sm:$0xff]   ;;  %v6430_v4 = vld [vmem:[%s9130_s5 + $0x70] sm:$0xff]  }
 0x3b2   : > { %v6305_v58 = vpop.trf.xlu0  ;;  %v6429_v29 = vld [vmem:[%s9130_s5 + $0x68] sm:$0xff]  }
 0x3b3   : > { %4487 = vmatprep.subr.bf16.mxu0 %v8636_v28  ;;  %4958 = vmatprep.subr.bf16.mxu1 %v8636_v28  ;;  %v6309_v6 = vunpack.i.h.bf16 %v6305_v58  ;;  %v6306_v5 = vunpack.i.l.bf16 %v6305_v58  ;;  %v6431_v58 = vld [vmem:[%s9130_s5 + $0x78] sm:$0xff]  }
 0x3b4   : > { %4488 = vmatpush1.bf16.msra.mxu0 %v8638_v23  ;;  %4959 = vmatpush1.bf16.msra.mxu1 %v8638_v23 }
 0x3b5   : > { %5140 = vperm.xlu1 %6365, %v8589_v21   ;;  %v6423_v21 = vld [vmem:[%s9130_s5 + $0x48] sm:$0xff]  }
 0x3b6   : > { %v6310_v48 = vpop.trf.xlu0 }
 0x3b7   : > { %v6314_v34 = vunpack.i.h.bf16 %v6310_v48  ;;  %v6311_v9 = vunpack.i.l.bf16 %v6310_v48 }
 0x3b9   : > { %v8646_v20 = vpack.c.bf16 %v6311_v9, %v6306_v5  ;;  %v8648_v11 = vpack.c.bf16 %v6314_v34, %v6309_v6  ;;  %5145 = vperm.xlu1 %6365, %v8596_v19   ;;  %v6424_v19 = vld [vmem:[%s9130_s5 + $0x10] sm:$0xff]  }
 0x3ba   : > { %v6315_v57 = vpop.trf.xlu0 }
 0x3bb   : > { %4489 = vmatprep.subr.bf16.mxu0 %v8646_v20  ;;  %4960 = vmatprep.subr.bf16.mxu1 %v8646_v20  ;;  %v6319_v43 = vunpack.i.h.bf16 %v6315_v57  ;;  %v6316_v7 = vunpack.i.l.bf16 %v6315_v57 }
 0x3bc   : > { %4490 = vmatpush1.bf16.msra.mxu0 %v8648_v11  ;;  %4961 = vmatpush1.bf16.msra.mxu1 %v8648_v11 }
 0x3bd   : > { %5150 = vperm.xlu1 %6365, %v8602_v59   ;;  %v6425_v59 = vld [vmem:[%s9130_s5 + $0x50] sm:$0xff]  }
 0x3be   : > { %v6320_v61 = vpop.trf.xlu0 }
 0x3bf   : > { %v6324_v41 = vunpack.i.h.bf16 %v6320_v61  ;;  %v6321_v40 = vunpack.i.l.bf16 %v6320_v61 }
 0x3c1   : > { %v8656_v56 = vpack.c.bf16 %v6321_v40, %v6316_v7  ;;  %v8658_v60 = vpack.c.bf16 %v6324_v41, %v6319_v43  ;;  %5155 = vperm.xlu1 %6365, %v8608_v52   ;;  %v6426_v52 = vld [vmem:[%s9130_s5 + $0x18] sm:$0xff]  }
 0x3c2   : > { %v6325_v24 = vpop.trf.xlu0 }
 0x3c3   : > { %4491 = vmatprep.subr.bf16.mxu0 %v8656_v56  ;;  %4962 = vmatprep.subr.bf16.mxu1 %v8656_v56  ;;  %v6329_v17 = vunpack.i.h.bf16 %v6325_v24  ;;  %v6326_v26 = vunpack.i.l.bf16 %v6325_v24 }
 0x3c4   : > { %4492 = vmatpush1.bf16.msra.mxu0 %v8658_v60  ;;  %4963 = vmatpush1.bf16.msra.mxu1 %v8658_v60 }
 0x3c5   : > { %5160 = vperm.xlu1 %6365, %v8614_v18   ;;  %v6427_v18 = vld [vmem:[%s9130_s5 + $0x58] sm:$0xff]  }
 0x3c6   : > { %v6330_v54 = vpop.trf.xlu0 }
 0x3c7   : > { %v6334_v42 = vunpack.i.h.bf16 %v6330_v54  ;;  %v6331_v45 = vunpack.i.l.bf16 %v6330_v54 }
 0x3c9   : > { %v8666_v39 = vpack.c.bf16 %v6331_v45, %v6326_v26  ;;  %v8668_v49 = vpack.c.bf16 %v6334_v42, %v6329_v17  ;;  %5165 = vperm.xlu1 %6365, %v8619_v0   ;;  %v6428_v0 = vld [vmem:[%s9130_s5 + $0x60] sm:$0xff]   ;;  %v5347_v45 = vlaneseq }
 0x3ca   : > { %v6335_v2 = vpop.trf.xlu0 }
 0x3cb   : > { %4493 = vmatprep.subr.bf16.mxu0 %v8666_v39  ;;  %4964 = vmatprep.subr.bf16.mxu1 %v8666_v39  ;;  %v6339_v1 = vunpack.i.h.bf16 %v6335_v2  ;;  %v6336_v32 = vunpack.i.l.bf16 %v6335_v2  ;;  %v6514_v2 = vmov 1966171168  }
 0x3cc   : > { %4494 = vmatpush1.bf16.msra.mxu0 %v8668_v49  ;;  %4965 = vmatpush1.bf16.msra.mxu1 %v8668_v49  ;;  %v4424_v6 = vpop.permute.xlu1 %4423 }
 0x3ce   : > { %v6340_v27 = vpop.trf.xlu0 }
 0x3cf   : > { %v6344_v53 = vunpack.i.h.bf16 %v6340_v27  ;;  %v6341_v55 = vunpack.i.l.bf16 %v6340_v27 }
 0x3d1   : > { %v8676_v31 = vpack.c.bf16 %v6341_v55, %v6336_v32  ;;  %v8678_v63 = vpack.c.bf16 %v6344_v53, %v6339_v1  ;;  %v5391_v1 = vunpack.c.l.s4 %v6514_v2  ;;  %v8802_v32 = vand.u32 127, %v5347_v45 }
 0x3d2   : > { %v6345_v36 = vpop.trf.xlu0 }
 0x3d3   : > { %4495 = vmatprep.subr.bf16.mxu0 %v8676_v31  ;;  %4966 = vmatprep.subr.bf16.mxu1 %v8676_v31  ;;  %v6349_v47 = vunpack.i.h.bf16 %v6345_v36  ;;  %v6346_v30 = vunpack.i.l.bf16 %v6345_v36  ;;  %v8805_v53 = vadd.s32 128, %v8802_v32  ;;  %v9203_v55 = vand.u32 15, %v8802_v32 }
 0x3d4   : > { %4496 = vmatpush1.bf16.msra.mxu0 %v8678_v63  ;;  %4967 = vmatpush1.bf16.msra.mxu1 %v8678_v63  ;;  %v4429_v5 = vpop.permute.xlu1 %4428  ;;  %v5392_v36 = vunpack.c.0.s8 %v5391_v1 }
 0x3d5   : > { %vm5380_vm2 = vcmp.le.s32.totalorder %v9203_v55, 14 }
 0x3d6   : > { %v6350_v35 = vpop.trf.xlu0 }
 0x3d7   : > { %v6354_v33 = vunpack.i.h.bf16 %v6350_v35  ;;  %v6351_v15 = vunpack.i.l.bf16 %v6350_v35  ;;  %v9200_v35 = vmov 0.0  }
 0x3d8   : > { %v8774_v48 = vpop.permute.xlu1 %4433 }
 0x3d9   : > { %v8686_v46 = vpack.c.bf16 %v6351_v15, %v6346_v30  ;;  %v8688_v38 = vpack.c.bf16 %v6354_v33, %v6349_v47  ;;  %v8808_v47 = vshrl.u32 %v5347_v45, 7  ;;  %v9202_v30 = vand.u32 15, %v8805_v53 }
 0x3da   : > { %v6355_v10 = vpop.trf.xlu0  ;;  %v6175_v33 = vsel %vm5380_vm2, 1.0, %v9200_v35  ;;  %vm5824_vm2 = vcmask 1042432  }
 0x3db   : > { %4497 = vmatprep.subr.bf16.mxu0 %v8686_v46  ;;  %4968 = vmatprep.subr.bf16.mxu1 %v8686_v46  ;;  %v6359_v12 = vunpack.i.h.bf16 %v6355_v10  ;;  %v6356_v16 = vunpack.i.l.bf16 %v6355_v10  ;;  %9372 = vst [vmem:[#allocation5_spill] sm:$0xff] %v8808_v47  ;;  %vm5381_vm3 = vcmp.le.s32.totalorder %v9202_v30, 14  ;;  %v8817_v15 = vsub.s32 %v5392_v36, %v8808_v47 }
 0x3dc   : > { %4498 = vmatpush1.bf16.msra.mxu0 %v8688_v38  ;;  %4969 = vmatpush1.bf16.msra.mxu1 %v8688_v38  ;;  %v8776_v34 = vpop.permute.xlu1 %4438 }
 0x3de   : > { %v6360_v22 = vpop.trf.xlu0 }
 0x3df   : > { %v6364_v62 = vunpack.i.h.bf16 %v6360_v22  ;;  %v6361_v44 = vunpack.i.l.bf16 %v6360_v22 }
 0x3e0   : > { %v8778_v9 = vpop.permute.xlu1 %4443 }
 0x3e1   : > { %v8696_v13 = vpack.c.bf16 %v6361_v44, %v6356_v16  ;;  %v8698_v51 = vpack.c.bf16 %v6364_v62, %v6359_v12  ;;  %v6176_v12 = vsel %vm5381_vm3, 1.0, %v9200_v35 }
 0x3e2   : > { %v5502_v16 = vcombine.low %v6175_v33, %v6176_v12 }
 0x3e3   : > { %4499 = vmatprep.subr.bf16.mxu0 %v8696_v13  ;;  %4970 = vmatprep.subr.bf16.mxu1 %v8696_v13 }
 0x3e4   : > { %4500 = vmatpush1.bf16.msra.mxu0 %v8698_v51  ;;  %4971 = vmatpush1.bf16.msra.mxu1 %v8698_v51  ;;  %v8780_v57 = vpop.permute.xlu1 %4448  ;;  %v5509_v22 = vrot.slane %v5502_v16, %v8817_v15 }
 0x3e5   : > { %5192 = vmatprep.subr.bf16.mxu1 %v8627_v37 }
 0x3e6   : > { %v5516_v62 = vrot.slane %v5509_v22, %v8817_v15 }
 0x3e7   : > { %4518 = vmatmul.mubr.bf16.vlgmr.msra.gmra.mrb[96].mxu0 %v6420_v8  ;;  %4989 = vmatmul.mubr.bf16.vlgmr.msra.gmra.mrb[128].mxu1 %v6421_v50 }
 0x3e8   : > { %5193 = vmatpush1.bf16.msra.mxu1 %v8629_v14  ;;  %4527 = vmatprep.mubr.bf16.mxu0 %v9274_v3  ;;  %v8782_v43 = vpop.permute.xlu1 %4453 }
 0x3e9   : > { %5194 = vmatprep.subr.bf16.mxu1 %v8636_v28  ;;  %4998 = vmatprep.mubr.bf16.mxu1 %v9274_v3 }
 0x3ea   : > { %5517 = vrot.lane.b32.xlu1 %v5516_v62, %s6516_s16 }
 0x3ec   : > { %5195 = vmatpush1.bf16.msra.mxu1 %v8638_v23  ;;  %v8784_v7 = vpop.permute.xlu1 %4458 }
 0x3ed   : > { %5196 = vmatprep.subr.bf16.mxu1 %v8646_v20 }
 0x3ee   : > { %5551 = vrot.lane.b32.xlu1 %v5516_v62, %s6517_s17 }
 0x3ef   : > { %4528 = vmatmul.mubr.bf16.gmra.mrb[100].mxu0 %v6422_v25  ;;  %4999 = vmatmul.mubr.bf16.gmra.mrb[132].mxu1 %v6423_v21 }
 0x3f0   : > { %5197 = vmatpush1.bf16.msra.mxu1 %v8648_v11  ;;  %4537 = vmatprep.mubr.bf16.mxu0 %v9274_v3  ;;  %v8786_v61 = vpop.permute.xlu1 %4658 }
 0x3f1   : > { %5198 = vmatprep.subr.bf16.mxu1 %v8656_v56  ;;  %5008 = vmatprep.mubr.bf16.mxu1 %v9274_v3 }
 0x3f2   : > { %5722 = vrot.lane.b32.xlu1 %v5516_v62, %s6518_s18 }
 0x3f4   : > { %5199 = vmatpush1.bf16.msra.mxu1 %v8658_v60  ;;  %v8788_v41 = vpop.permute.xlu1 %4663 }
 0x3f5   : > { %5200 = vmatprep.subr.bf16.mxu1 %v8666_v39 }
 0x3f7   : > { %4538 = vmatmul.mubr.bf16.gmra.mrb[104].mxu0 %v6424_v19  ;;  %5009 = vmatmul.mubr.bf16.gmra.mrb[136].mxu1 %v6425_v59 }
 0x3f8   : > { %5201 = vmatpush1.bf16.msra.mxu1 %v8668_v49  ;;  %4547 = vmatprep.mubr.bf16.mxu0 %v9274_v3  ;;  %v8790_v40 = vpop.permute.xlu1 %4668 }
 0x3f9   : > { %5202 = vmatprep.subr.bf16.mxu1 %v8676_v31  ;;  %5018 = vmatprep.mubr.bf16.mxu1 %v9274_v3 }
 0x3fc   : > { %5203 = vmatpush1.bf16.msra.mxu1 %v8678_v63  ;;  %v8792_v24 = vpop.permute.xlu1 %4673 }
 0x3fd   : > { %5204 = vmatprep.subr.bf16.mxu1 %v8686_v46 }
 0x3ff   : > { %4548 = vmatmul.mubr.bf16.gmra.mrb[108].mxu0 %v6426_v52  ;;  %5019 = vmatmul.mubr.bf16.gmra.mrb[140].mxu1 %v6427_v18 }
 0x400   : > { %5205 = vmatpush1.bf16.msra.mxu1 %v8688_v38  ;;  %5224 = vmatprep.mubr.bf16.mxu1 %v9274_v3  ;;  %v8794_v17 = vpop.permute.xlu1 %4678 }
 0x401   : > { %5206 = vmatprep.subr.bf16.mxu1 %v8696_v13  ;;  %4624 = vmatprep.mubr.bf16.mxu0 %v9274_v3 }
 0x404   : > { %5207 = vmatpush1.bf16.msra.mxu1 %v8698_v51  ;;  %v8796_v26 = vpop.permute.xlu1 %4683 }
 0x407   : > { %5225 = vmatmul.mubr.bf16.vlgmr.msra.gmra.mrb[144].mxu1 %v6428_v0 }
 0x408   : > { %5234 = vmatprep.mubr.bf16.mxu1 %v9274_v3  ;;  %v8798_v54 = vpop.permute.xlu1 %4688 }
 0x409   : > { %9370 = vst [vmem:[#allocation14_spill] sm:$0xff] %v8798_v54 }
 0x40c   : > { %v8800_v42 = vpop.permute.xlu1 %4693 }
 0x40d   : > { %9371 = vst [vmem:[#allocation38_spill] sm:$0xff] %v8800_v42 }
 0x40f   : > { %5235 = vmatmul.mubr.bf16.gmra.mrb[148].mxu1 %v6429_v29 }
 0x410   : > { %5244 = vmatprep.mubr.bf16.mxu1 %v9274_v3  ;;  %v4895_v27 = vpop.permute.xlu1 %4894 }
 0x414   : > { %v4900_v10 = vpop.permute.xlu1 %4899 }
 0x417   : > { %5245 = vmatmul.mubr.bf16.gmra.mrb[152].mxu1 %v6430_v4 }
 0x418   : > { %5254 = vmatprep.mubr.bf16.mxu1 %v9274_v3  ;;  %v4905_v44 = vpop.permute.xlu1 %4904 }
 0x41c   : > { %v4910_v8 = vpop.permute.xlu1 %4909 }
 0x41f   : > { %5255 = vmatmul.mubr.bf16.gmra.mrb[156].mxu1 %v6431_v58 }
 0x420   : > { %v8823_v50 = vpop.permute.xlu1 %4914 }
 0x424   : > { %v8825_v25 = vpop.permute.xlu1 %4919 }
 0x428   : > { %v8827_v54 = vpop.permute.xlu1 %4924 }
 0x4ba   : > { %v4519_v21 = vpop.f32.mrb[96].mxu0  ;;  %v4990_v19 = vpop.f32.mrb[128].mxu1 }
 0x4bb   : > { %v4520_v59 = vadd.f32 %v4519_v21, %v4424_v6  ;;  %v4521_v52 = vpop.f32.mrb[97].mxu0  ;;  %v4991_v18 = vadd.f32 %v4990_v19, %v4895_v27  ;;  %v4992_v0 = vpop.f32.mrb[129].mxu1 }
 0x4bc   : > { %v4522_v29 = vadd.f32 %v4521_v52, %v4424_v6  ;;  %v4523_v4 = vpop.f32.mrb[98].mxu0  ;;  %v4993_v58 = vadd.f32 %v4992_v0, %v4895_v27  ;;  %v4994_v45 = vpop.f32.mrb[130].mxu1 }
 0x4bd   : > { %v4524_v2 = vadd.f32 %v4523_v4, %v4429_v5  ;;  %v4525_v1 = vpop.f32.mrb[99].mxu0  ;;  %v4995_v36 = vadd.f32 %v4994_v45, %v4900_v10  ;;  %v4996_v33 = vpop.f32.mrb[131].mxu1  ;;  %v4558_v22 = vmax.f32 %v4520_v59, 0.0  ;;  %v5029_v35 = vmax.f32 %v4991_v18, 0.0 }
 0x4be   : > { %v4526_v12 = vadd.f32 %v4525_v1, %v4429_v5  ;;  %v4997_v16 = vadd.f32 %v4996_v33, %v4900_v10  ;;  %v4559_v55 = vmax.f32 %v4522_v29, 0.0  ;;  %v5030_v21 = vmax.f32 %v4993_v58, 0.0 }
 0x4bf   : > { %v4560_v62 = vmax.f32 %v4524_v2, 0.0  ;;  %v5031_v30 = vmax.f32 %v4995_v36, 0.0 }
 0x4c0   : > { %v4561_v47 = vmax.f32 %v4526_v12, 0.0  ;;  %v5032_v42 = vmax.f32 %v4997_v16, 0.0 }
 0x4c1   : > { %v4576_v19 = vpack.c.bf16 %v4560_v62, %v4558_v22  ;;  %v8829_v6 = vpack.c.bf16 %v5031_v30, %v5029_v35 }
 0x4c2   : > { %v4577_v27 = vpack.c.bf16 %v4561_v47, %v4559_v55  ;;  %v4529_v52 = vpop.f32.mrb[100].mxu0  ;;  %v8831_v0 = vpack.c.bf16 %v5032_v42, %v5030_v21  ;;  %v5000_v4 = vpop.f32.mrb[132].mxu1 }
 0x4c3   : > { %v4530_v5 = vadd.f32 %v4529_v52, %v8774_v48  ;;  %v4531_v10 = vpop.f32.mrb[101].mxu0  ;;  %v5001_v59 = vadd.f32 %v5000_v4, %v4905_v44  ;;  %v5002_v18 = vpop.f32.mrb[133].mxu1 }
 0x4c4   : > { %v4532_v29 = vadd.f32 %v4531_v10, %v8774_v48  ;;  %v4533_v45 = vpop.f32.mrb[102].mxu0  ;;  %4592 = vmatprep.subr.bf16.mxu0 %v4577_v27  ;;  %v5003_v58 = vadd.f32 %v5002_v18, %v4905_v44  ;;  %v5004_v2 = vpop.f32.mrb[134].mxu1 }
 0x4c5   : > { %v4534_v1 = vadd.f32 %v4533_v45, %v8776_v34  ;;  %v4535_v30 = vpop.f32.mrb[103].mxu0  ;;  %4593 = vmatpush1.bf16.msra.mxu0 %v4576_v19  ;;  %v5005_v55 = vadd.f32 %v5004_v2, %v4910_v8  ;;  %v5006_v47 = vpop.f32.mrb[135].mxu1  ;;  %v4562_v36 = vmax.f32 %v4530_v5, 0.0  ;;  %v5033_v12 = vmax.f32 %v5001_v59, 0.0 }
 0x4c6   : > { %v4536_v42 = vadd.f32 %v4535_v30, %v8776_v34  ;;  %v5007_v35 = vadd.f32 %v5006_v47, %v4910_v8  ;;  %v4563_v22 = vmax.f32 %v4532_v29, 0.0  ;;  %v5034_v48 = vmax.f32 %v5003_v58, 0.0  ;;  %v8837_v44 = vpop.permute.xlu1 %5130 }
 0x4c7   : > { %v4564_v33 = vmax.f32 %v4534_v1, 0.0  ;;  %v5035_v16 = vmax.f32 %v5005_v55, 0.0 }
 0x4c8   : > { %v4565_v62 = vmax.f32 %v4536_v42, 0.0  ;;  %v5036_v21 = vmax.f32 %v5007_v35, 0.0 }
 0x4c9   : > { %v4578_v27 = vpack.c.bf16 %v4564_v33, %v4562_v36  ;;  %v8839_v52 = vpack.c.bf16 %v5035_v16, %v5033_v12 }
 0x4ca   : > { %v4579_v4 = vpack.c.bf16 %v4565_v62, %v4563_v22  ;;  %v4539_v19 = vpop.f32.mrb[104].mxu0  ;;  %v8841_v10 = vpack.c.bf16 %v5036_v21, %v5034_v48  ;;  %v5010_v18 = vpop.f32.mrb[136].mxu1 }
 0x4cb   : > { %v4540_v34 = vadd.f32 %v4539_v19, %v8778_v9  ;;  %v4541_v8 = vpop.f32.mrb[105].mxu0  ;;  %v5011_v5 = vadd.f32 %v5010_v18, %v8823_v50  ;;  %v5012_v59 = vpop.f32.mrb[137].mxu1 }
 0x4cc   : > { %v4542_v29 = vadd.f32 %v4541_v8, %v8778_v9  ;;  %v4543_v45 = vpop.f32.mrb[106].mxu0  ;;  %4594 = vmatprep.subr.bf16.mxu0 %v4579_v4  ;;  %v5013_v58 = vadd.f32 %v5012_v59, %v8823_v50  ;;  %v5014_v2 = vpop.f32.mrb[138].mxu1 }
 0x4cd   : > { %v4544_v1 = vadd.f32 %v4543_v45, %v8780_v57  ;;  %v4545_v30 = vpop.f32.mrb[107].mxu0  ;;  %4595 = vmatpush1.bf16.msra.mxu0 %v4578_v27  ;;  %v5015_v55 = vadd.f32 %v5014_v2, %v8825_v25  ;;  %v5016_v47 = vpop.f32.mrb[139].mxu1  ;;  %v4566_v36 = vmax.f32 %v4540_v34, 0.0  ;;  %v5037_v12 = vmax.f32 %v5011_v5, 0.0 }
 0x4ce   : > { %v4546_v42 = vadd.f32 %v4545_v30, %v8780_v57  ;;  %v5017_v35 = vadd.f32 %v5016_v47, %v8825_v25  ;;  %v4567_v16 = vmax.f32 %v4542_v29, 0.0  ;;  %v5136_v62 = vpop.permute.xlu1 %5135  ;;  %v5038_v50 = vmax.f32 %v5013_v58, 0.0  ;;  %v8853_v27 = vpop.permute.xlu0 %4929 }
 0x4cf   : > { %v4568_v33 = vmax.f32 %v4544_v1, 0.0  ;;  %v5039_v9 = vmax.f32 %v5015_v55, 0.0 }
 0x4d0   : > { %v4569_v22 = vmax.f32 %v4546_v42, 0.0  ;;  %v5040_v48 = vmax.f32 %v5017_v35, 0.0 }
 0x4d1   : > { %v4580_v21 = vpack.c.bf16 %v4568_v33, %v4566_v36  ;;  %v8851_v4 = vpack.c.bf16 %v5039_v9, %v5037_v12 }
 0x4d2   : > { %v4581_v19 = vpack.c.bf16 %v4569_v22, %v4567_v16  ;;  %v4549_v18 = vpop.f32.mrb[108].mxu0  ;;  %v8855_v8 = vpack.c.bf16 %v5040_v48, %v5038_v50  ;;  %v5020_v57 = vpop.f32.mrb[140].mxu1 }
 0x4d3   : > { %v4550_v25 = vadd.f32 %v4549_v18, %v8782_v43  ;;  %v4551_v34 = vpop.f32.mrb[109].mxu0  ;;  %v5021_v5 = vadd.f32 %v5020_v57, %v8827_v54  ;;  %v8859_v59 = vpop.f32.mrb[141].mxu1 }
 0x4d4   : > { %v4552_v29 = vadd.f32 %v4551_v34, %v8782_v43  ;;  %v4553_v45 = vpop.f32.mrb[110].mxu0  ;;  %4596 = vmatprep.subr.bf16.mxu0 %v4581_v19  ;;  %v5024_v58 = vpop.f32.mrb[142].mxu1 }
 0x4d5   : > { %v4554_v2 = vadd.f32 %v4553_v45, %v8784_v7  ;;  %v4555_v1 = vpop.f32.mrb[111].mxu0  ;;  %4597 = vmatpush1.bf16.msra.mxu0 %v4580_v21  ;;  %v8863_v30 = vpop.f32.mrb[143].mxu1  ;;  %v5025_v55 = vadd.f32 %v5024_v58, %v8853_v27  ;;  %v4570_v35 = vmax.f32 %v4550_v25, 0.0  ;;  %v5041_v33 = vmax.f32 %v5021_v5, 0.0 }
 0x4d6   : > { %v4556_v47 = vadd.f32 %v4555_v1, %v8784_v7  ;;  %v5141_v42 = vpop.permute.xlu1 %5140  ;;  %v4571_v9 = vmax.f32 %v4552_v29, 0.0  ;;  %v6432_v7 = vld [vmem:[%s9132_s7] sm:$0x1f]  }
 0x4d7   : > { %v4572_v36 = vmax.f32 %v4554_v2, 0.0  ;;  %v5043_v12 = vmax.f32 %v5025_v55, 0.0 }
 0x4d8   : > { %v4573_v43 = vmax.f32 %v4556_v47, 0.0 }
 0x4d9   : > { %v4582_v16 = vpack.c.bf16 %v4572_v36, %v4570_v35  ;;  %v8867_v22 = vpack.c.bf16 %v5043_v12, %v5041_v33 }
 0x4da   : > { %v4583_v50 = vpack.c.bf16 %v4573_v43, %v4571_v9  ;;  %v5226_v48 = vpop.f32.mrb[144].mxu1  ;;  %v5146_v18 = vpop.permute.xlu1 %5145 }
 0x4db   : > { %v5227_v21 = vadd.f32 %v5226_v48, %v8837_v44  ;;  %v5228_v19 = vpop.f32.mrb[145].mxu1 }
 0x4dc   : > { %4598 = vmatprep.subr.bf16.mxu0 %v4583_v50  ;;  %v5229_v57 = vadd.f32 %v5228_v19, %v8837_v44  ;;  %v5230_v25 = vpop.f32.mrb[146].mxu1 }
 0x4dd   : > { %4599 = vmatpush1.bf16.msra.mxu0 %v4582_v16  ;;  %v5231_v34 = vadd.f32 %v5230_v25, %v5136_v62  ;;  %v5232_v5 = vpop.f32.mrb[147].mxu1  ;;  %v5265_v45 = vmax.f32 %v5227_v21, 0.0 }
 0x4de   : > { %4720 = vmatprep.subr.bf16.mxu0 %v8627_v37  ;;  %v5233_v29 = vadd.f32 %v5232_v5, %v5136_v62  ;;  %v5266_v2 = vmax.f32 %v5229_v57, 0.0  ;;  %v5151_v44 = vpop.permute.xlu1 %5150 }
 0x4df   : > { %v5267_v58 = vmax.f32 %v5231_v34, 0.0 }
 0x4e0   : > { %6130 = vmatmul.mubr.msk.bf16.vlgmr.msra.gmra.mrb[112].mxu0 %vm1671_vm1, %v6432_v7  ;;  %v5268_v1 = vmax.f32 %v5233_v29, 0.0 }
 0x4e1   : > { %4721 = vmatpush1.bf16.msra.mxu0 %v8629_v14  ;;  %v8877_v55 = vpack.c.bf16 %v5267_v58, %v5265_v45  ;;  %4752 = vmatprep.mubr.bf16.mxu0 %v9274_v3 }
 0x4e2   : > { %4722 = vmatprep.subr.bf16.mxu0 %v8636_v28  ;;  %v8881_v47 = vpack.c.bf16 %v5268_v1, %v5266_v2  ;;  %v5236_v35 = vpop.f32.mrb[148].mxu1  ;;  %v5156_v48 = vpop.permute.xlu1 %5155 }
 0x4e3   : > { %v5237_v37 = vadd.f32 %v5236_v35, %v5141_v42  ;;  %v5238_v62 = vpop.f32.mrb[149].mxu1 }
 0x4e4   : > { %v5239_v36 = vadd.f32 %v5238_v62, %v5141_v42  ;;  %v5240_v33 = vpop.f32.mrb[150].mxu1 }
 0x4e5   : > { %4723 = vmatpush1.bf16.msra.mxu0 %v8638_v23  ;;  %v5241_v12 = vadd.f32 %v5240_v33, %v5146_v18  ;;  %v5242_v9 = vpop.f32.mrb[151].mxu1  ;;  %v5269_v43 = vmax.f32 %v5237_v37, 0.0 }
 0x4e6   : > { %4724 = vmatprep.subr.bf16.mxu0 %v8646_v20  ;;  %v5243_v14 = vadd.f32 %v5242_v9, %v5146_v18  ;;  %v5270_v50 = vmax.f32 %v5239_v36, 0.0  ;;  %v5161_v34 = vpop.permute.xlu1 %5160 }
 0x4e7   : > { %v5271_v16 = vmax.f32 %v5241_v12, 0.0 }
 0x4e8   : > { %v5272_v28 = vmax.f32 %v5243_v14, 0.0 }
 0x4e9   : > { %4725 = vmatpush1.bf16.msra.mxu0 %v8648_v11  ;;  %v8886_v21 = vpack.c.bf16 %v5271_v16, %v5269_v43  ;;  %v5023_v16 = vadd.f32 %v8859_v59, %v8827_v54 }
 0x4ea   : > { %4726 = vmatprep.subr.bf16.mxu0 %v8656_v56  ;;  %v8889_v42 = vpack.c.bf16 %v5272_v28, %v5270_v50  ;;  %v5246_v19 = vpop.f32.mrb[152].mxu1 }
 0x4eb   : > { %v5247_v23 = vadd.f32 %v5246_v19, %v5151_v44  ;;  %v5248_v7 = vpop.f32.mrb[153].mxu1  ;;  %v9373_v19 = vand.u32 15, %v8802_v32 }
 0x4ec   : > { %v5249_v57 = vadd.f32 %v5248_v7, %v5151_v44  ;;  %v5250_v25 = vpop.f32.mrb[154].mxu1  ;;  %v9375_v7 = vmov 0.0  }
 0x4ed   : > { %4727 = vmatpush1.bf16.msra.mxu0 %v8658_v60  ;;  %v5251_v20 = vadd.f32 %v5250_v25, %v5156_v48  ;;  %v5252_v18 = vpop.f32.mrb[155].mxu1  ;;  %v5273_v11 = vmax.f32 %v5247_v23, 0.0  ;;  %vm5374_vm4 = vcmp.ge.s32.totalorder %v9373_v19, 1  ;;  %v9374_v23 = vand.u32 15, %v8805_v53  ;;  %467 = vst.msk [vmem:[#allocation3 + $0x18] sm:$0xff] %vm466_vm6, %v9375_v7  ;;  %470 = vst.msk [vmem:[#allocation3 + $0x58] sm:$0xff] %vm466_vm6, %v9375_v7 }
 0x4ee   : > { %4728 = vmatprep.subr.bf16.mxu0 %v8666_v39  ;;  %v5253_v5 = vadd.f32 %v5252_v18, %v5156_v48  ;;  %v5274_v45 = vmax.f32 %v5249_v57, 0.0  ;;  %v5166_v39 = vpop.permute.xlu1 %5165  ;;  %v5042_v48 = vmax.f32 %v5023_v16, 0.0  ;;  %v6173_v57 = vsel %vm5374_vm4, 1.0, %v9375_v7  ;;  %472 = vst.msk [vmem:[#allocation3 + $0x98] sm:$0xff] %vm466_vm6, %v9375_v7 }
 0x4ef   : > { %v5275_v29 = vmax.f32 %v5251_v20, 0.0  ;;  %vm5375_vm5 = vcmp.ge.s32.totalorder %v9374_v23, 1  ;;  %469 = vst.msk [vmem:[#allocation3 + $0x38] sm:$0x1] %vm468_vm7, %v9375_v7  ;;  %471 = vst.msk [vmem:[#allocation3 + $0x78] sm:$0x1] %vm468_vm7, %v9375_v7 }
 0x4f0   : > { %v5276_v58 = vmax.f32 %v5253_v5, 0.0  ;;  %v6174_v25 = vsel %vm5375_vm5, 1.0, %v9375_v7  ;;  %473 = vst.msk [vmem:[#allocation3 + $0xb8] sm:$0x1] %vm468_vm7, %v9375_v7 }
 0x4f1   : > { %4729 = vmatpush1.bf16.msra.mxu0 %v8668_v49  ;;  %v8894_v56 = vpack.c.bf16 %v5275_v29, %v5273_v11  ;;  %v5389_v20 = vcombine.low %v6173_v57, %v6174_v25  ;;  %462 = vst.msk [vmem:[#allocation3 + $0x80] sm:$0xff] %vm456_vm9, %v9375_v7  ;;  %460 = vst.msk [vmem:[#allocation3 + $0x40] sm:$0xff] %vm456_vm9, %v9375_v7 }
 0x4f2   : > { %4730 = vmatprep.subr.bf16.mxu0 %v8676_v31  ;;  %v8897_v2 = vpack.c.bf16 %v5276_v58, %v5274_v45  ;;  %v5256_v1 = vpop.f32.mrb[156].mxu1  ;;  %v8952_v53 = vpop.permute.xlu1 %5517  ;;  %464 = vst.msk [vmem:[#allocation3 + $0xc0] sm:$0xff] %vm456_vm9, %v9375_v7 }
 0x4f3   : > { %v5257_v60 = vadd.f32 %v5256_v1, %v5161_v34  ;;  %v5258_v44 = vpop.f32.mrb[157].mxu1  ;;  %v5396_v54 = vrot.slane %v5389_v20, %v8817_v15 }
 0x4f4   : > { %v5259_v35 = vadd.f32 %v5258_v44, %v5161_v34  ;;  %v5260_v37 = vpop.f32.mrb[158].mxu1 }
 0x4f5   : > { %4731 = vmatpush1.bf16.msra.mxu0 %v8678_v63  ;;  %v5261_v62 = vadd.f32 %v5260_v37, %v5166_v39  ;;  %v5262_v36 = vpop.f32.mrb[159].mxu1  ;;  %v5277_v49 = vmax.f32 %v5257_v60, 0.0  ;;  %v6433_v63 = vld [vmem:[%s9130_s5 + $0x20] sm:$0xff]   ;;  %v8944_v32 = vrot.slane %v5396_v54, %v8817_v15 }
 0x4f6   : > { %4732 = vmatprep.subr.bf16.mxu0 %v8686_v46  ;;  %v5263_v33 = vadd.f32 %v5262_v36, %v5166_v39  ;;  %v5278_v9 = vmax.f32 %v5259_v35, 0.0  ;;  %v6434_v46 = vld [vmem:[%s9130_s5 + $0x28] sm:$0xff]   ;;  %v5552_v18 = vpop.permute.xlu1 %5551 }
 0x4f7   : > { %v5279_v12 = vmax.f32 %v5261_v62, 0.0  ;;  %5638 = vrot.lane.b32.xlu0 %v8944_v32, %s6519_s30  ;;  %v5553_v34 = vrot.slane %v5552_v18, 7 }
 0x4f8   : > { %v5280_v14 = vmax.f32 %v5263_v33, 0.0 }
 0x4f9   : > { %4733 = vmatpush1.bf16.msra.mxu0 %v8688_v38  ;;  %v8902_v31 = vpack.c.bf16 %v5279_v12, %v5277_v49  ;;  %v6435_v38 = vld [vmem:[%s9130_s5 + $0x30] sm:$0xff]   ;;  %v8954_v5 = vsel %vm5554_vm8, %v5553_v34, %v5552_v18 }
 0x4fa   : > { %4734 = vmatprep.subr.bf16.mxu0 %v8696_v13  ;;  %v8905_v43 = vpack.c.bf16 %v5280_v14, %v5278_v9  ;;  %v6436_v13 = vld [vmem:[%s9130_s5 + $0x38] sm:$0xff]  }
 0x4fb   : > { %5433 = vrot.lane.b32.xlu0 %v8944_v32, %s6520_s10 }
 0x4fd   : > { %4735 = vmatpush1.bf16.msra.mxu0 %v8698_v51  ;;  %v5027_v51 = vadd.f32 %v8863_v30, %v8853_v27 }
 0x4ff   : > { %v5044_v50 = vmax.f32 %v5027_v51, 0.0 }
 0x500   : > { %4753 = vmatmul.mubr.bf16.vlgmr.msra.gmra.mrb[116].mxu0 %v6433_v63 }
 0x501   : > { %4762 = vmatprep.mubr.bf16.mxu0 %v9274_v3  ;;  %v8928_v28 = vpack.c.bf16 %v5044_v50, %v5042_v48 }
 0x508   : > { %4763 = vmatmul.mubr.bf16.gmra.mrb[120].mxu0 %v6434_v46 }
 0x509   : > { %4772 = vmatprep.mubr.bf16.mxu0 %v9274_v3 }
 0x510   : > { %4773 = vmatmul.mubr.bf16.gmra.mrb[124].mxu0 %v6435_v38 }
 0x511   : > { %4782 = vmatprep.mubr.bf16.mxu0 %v9274_v3 }
 0x518   : > { %4783 = vmatmul.mubr.bf16.gmra.mrb[128].mxu0 %v6436_v13 }
 0x519   : > { %4859 = vmatprep.mubr.bf16.mxu0 %v9274_v3 }
 0x5b3   : > { %v4626_v27 = vpop.f32.mrb[112].mxu0 }
 0x5b4   : > { %4635 = vst [vmem:[#allocation3 + $0x8] sm:$0xff] %v4626_v27  ;;  %v4628_v15 = vpop.f32.mrb[113].mxu0 }
 0x5b5   : > { %4636 = vst [vmem:[#allocation3 + $0x10] sm:$0xff] %v4628_v15  ;;  %v4630_v59 = vpop.f32.mrb[114].mxu0 }
 0x5b6   : > { %4637 = vst [vmem:[#allocation3 + $0x28] sm:$0x1] %v4630_v59  ;;  %v4632_v30 = vpop.f32.mrb[115].mxu0 }
 0x5b7   : > { %4638 = vst [vmem:[#allocation3 + $0x30] sm:$0x1] %v4632_v30 }
 0x5bc   : > { %v5677_v11 = vld [vmem:[#allocation3 + $0xa] ss:$8 sm:$0x7]  ;;  %v5597_v29 = vld [vmem:[#allocation3 + $0x9] ss:$8 sm:$0x3] }
 0x5bd   : > { %5599 = vrot.lane.b32.xlu1 %v5597_v29, %s6520_s10  ;;  %v5532_v45 = vld [vmem:[#allocation3 + $0xb] ss:$8 sm:$0x3]  ;;  %v5550_v58 = vld [vmem:[#allocation3 + $0xd] ss:$8 sm:$0x7]  ;;  %v5678_v1 = vmul.f32 %v5677_v11, %v8954_v5 }
 0x5be   : > { %5534 = vrot.lane.b32.xlu0 %v5532_v45, %s6521_s13  ;;  %v5557_v60 = vmul.f32 %v8954_v5, %v5550_v58 }
 0x5c1   : > { %5680 = vrot.lane.b32.xlu1 %v5678_v1, %s6520_s10 }
 0x5c2   : > { %5559 = vrot.lane.b32.xlu0 %v5557_v60, %s6522_s14 }
 0x5d3   : > { %v4754_v44 = vpop.f32.mrb[116].mxu0 }
 0x5d4   : > { %v4755_v35 = vadd.f32 %v4754_v44, %v8786_v61  ;;  %v4756_v37 = vpop.f32.mrb[117].mxu0 }
 0x5d5   : > { %v4757_v39 = vadd.f32 %v4756_v37, %v8786_v61  ;;  %v4758_v62 = vpop.f32.mrb[118].mxu0  ;;  %v9376_v37 = vld [vmem:[#allocation14_spill] sm:$0xff] }
 0x5d6   : > { %v4759_v36 = vadd.f32 %v4758_v62, %v8788_v41  ;;  %v4760_v33 = vpop.f32.mrb[119].mxu0  ;;  %v4793_v12 = vmax.f32 %v4755_v35, 0.0 }
 0x5d7   : > { %v4761_v49 = vadd.f32 %v4760_v33, %v8788_v41  ;;  %v4794_v14 = vmax.f32 %v4757_v39, 0.0  ;;  %v9377_v33 = vld [vmem:[#allocation38_spill] sm:$0xff] }
 0x5d8   : > { %v4795_v9 = vmax.f32 %v4759_v36, 0.0 }
 0x5d9   : > { %v4796_v63 = vmax.f32 %v4761_v49, 0.0 }
 0x5da   : > { %v4811_v46 = vpack.c.bf16 %v4795_v9, %v4793_v12 }
 0x5db   : > { %v4812_v38 = vpack.c.bf16 %v4796_v63, %v4794_v14  ;;  %v4764_v13 = vpop.f32.mrb[120].mxu0 }
 0x5dc   : > { %v4765_v51 = vadd.f32 %v4764_v13, %v8790_v40  ;;  %v4766_v16 = vpop.f32.mrb[121].mxu0 }
 0x5dd   : > { %v4767_v50 = vadd.f32 %v4766_v16, %v8790_v40  ;;  %v4768_v48 = vpop.f32.mrb[122].mxu0  ;;  %4827 = vmatprep.subr.bf16.mxu0 %v4812_v38 }
 0x5de   : > { %v4769_v61 = vadd.f32 %v4768_v48, %v8792_v24  ;;  %v4770_v19 = vpop.f32.mrb[123].mxu0  ;;  %4828 = vmatpush1.bf16.msra.mxu0 %v4811_v46  ;;  %v4797_v23 = vmax.f32 %v4765_v51, 0.0  ;;  %v6437_v51 = vld [vmem:[%s9132_s7] sm:$0x1f]  }
 0x5df   : > { %v4771_v41 = vadd.f32 %v4770_v19, %v8792_v24  ;;  %v4798_v25 = vmax.f32 %v4767_v50, 0.0 }
 0x5e0   : > { %v4799_v57 = vmax.f32 %v4769_v61, 0.0  ;;  %v5653_v61 = vld [vmem:[#allocation3 + $0xf] ss:$8 sm:$0x7] }
 0x5e1   : > { %v4800_v20 = vmax.f32 %v4771_v41, 0.0 }
 0x5e2   : > { %v4813_v54 = vpack.c.bf16 %v4799_v57, %v4797_v23 }
 0x5e3   : > { %v4814_v27 = vpack.c.bf16 %v4800_v20, %v4798_v25  ;;  %v4774_v15 = vpop.f32.mrb[124].mxu0 }
 0x5e4   : > { %v4775_v59 = vadd.f32 %v4774_v15, %v8794_v17  ;;  %v4776_v30 = vpop.f32.mrb[125].mxu0  ;;  %v5703_v15 = vld [vmem:[#allocation3 + $0xe] ss:$8 sm:$0x7] }
 0x5e5   : > { %v4777_v40 = vadd.f32 %v4776_v30, %v8794_v17  ;;  %v4778_v18 = vpop.f32.mrb[126].mxu0  ;;  %4829 = vmatprep.subr.bf16.mxu0 %v4814_v27  ;;  %v5723_v30 = vpop.permute.xlu1 %5722 }
 0x5e6   : > { %v4779_v34 = vadd.f32 %v4778_v18, %v8796_v26  ;;  %v4780_v11 = vpop.f32.mrb[127].mxu0  ;;  %4830 = vmatpush1.bf16.msra.mxu0 %v4813_v54  ;;  %v4801_v29 = vmax.f32 %v4775_v59, 0.0  ;;  %v5724_v18 = vrot.slane %v5723_v30, 7 }
 0x5e7   : > { %v4781_v24 = vadd.f32 %v4780_v11, %v8796_v26  ;;  %v4802_v58 = vmax.f32 %v4777_v40, 0.0  ;;  %v5721_v11 = vld [vmem:[#allocation3 + $0x28] ss:$8 sm:$0x7] }
 0x5e8   : > { %v4803_v45 = vmax.f32 %v4779_v34, 0.0 }
 0x5e9   : > { %v4804_v1 = vmax.f32 %v4781_v24, 0.0  ;;  %v5725_v24 = vsel %vm466_vm6, %v5724_v18, %v5723_v30  ;;  %v5671_v30 = vld [vmem:[#allocation3 + $0x8] ss:$8 sm:$0x3] }
 0x5ea   : > { %v4815_v60 = vpack.c.bf16 %v4803_v45, %v4801_v29 }
 0x5eb   : > { %v4816_v44 = vpack.c.bf16 %v4804_v1, %v4802_v58  ;;  %v4784_v35 = vpop.f32.mrb[128].mxu0  ;;  %v5727_v58 = vmul.f32 %v5725_v24, %v5721_v11 }
 0x5ec   : > { %v4785_v39 = vadd.f32 %v4784_v35, %v9376_v37  ;;  %v4786_v62 = vpop.f32.mrb[129].mxu0 }
 0x5ed   : > { %v4787_v17 = vadd.f32 %v4786_v62, %v9376_v37  ;;  %v4788_v36 = vpop.f32.mrb[130].mxu0  ;;  %4831 = vmatprep.subr.bf16.mxu0 %v4816_v44 }
 0x5ee   : > { %v4789_v49 = vadd.f32 %v4788_v36, %v9377_v33  ;;  %v4790_v12 = vpop.f32.mrb[131].mxu0  ;;  %4832 = vmatpush1.bf16.msra.mxu0 %v4815_v60  ;;  %v4805_v9 = vmax.f32 %v4785_v39, 0.0 }
 0x5ef   : > { %v4791_v26 = vadd.f32 %v4790_v12, %v9377_v33  ;;  %v4806_v63 = vmax.f32 %v4787_v17, 0.0  ;;  %v6177_v12 = vld [vmem:[#allocation4] ss:$0 sm:$0xff] }
 0x5f0   : > { %v4807_v14 = vmax.f32 %v4789_v49, 0.0 }
 0x5f1   : > { %v4808_v46 = vmax.f32 %v4791_v26, 0.0 }
 0x5f2   : > { %v4817_v38 = vpack.c.bf16 %v4807_v14, %v4805_v9 }
 0x5f3   : > { %v4818_v13 = vpack.c.bf16 %v4808_v46, %v4806_v63 }
 0x5f5   : > { %4833 = vmatprep.subr.bf16.mxu0 %v4818_v13 }
 0x5f6   : > { %4834 = vmatpush1.bf16.msra.mxu0 %v4817_v38 }
 0x5f7   : > { %5063 = vmatprep.subr.bf16.mxu0 %v8831_v0  ;;  %v6438_v0 = vld [vmem:[%s9132_s7] sm:$0x1f]  }
 0x5f9   : > { %6144 = vmatmul.mubr.msk.bf16.vlgmr.msra.gmra.mrb[132].mxu0 %vm1671_vm1, %v6437_v51 }
 0x5fa   : > { %5064 = vmatpush1.bf16.msra.mxu0 %v8829_v6  ;;  %5095 = vmatprep.mubr.bf16.mxu0 %v9274_v3  ;;  %v6439_v6 = vld [vmem:[%s9132_s7] sm:$0x1f]  }
 0x5fb   : > { %5065 = vmatprep.subr.bf16.mxu0 %v8841_v10 }
 0x5fe   : > { %5066 = vmatpush1.bf16.msra.mxu0 %v8839_v52 }
 0x5ff   : > { %5067 = vmatprep.subr.bf16.mxu0 %v8855_v8 }
 0x602   : > { %5068 = vmatpush1.bf16.msra.mxu0 %v8851_v4 }
 0x603   : > { %5069 = vmatprep.subr.bf16.mxu0 %v8928_v28 }
 0x606   : > { %5070 = vmatpush1.bf16.msra.mxu0 %v8867_v22 }
 0x607   : > { %5299 = vmatprep.subr.bf16.mxu0 %v8881_v47 }
 0x609   : > { %6158 = vmatmul.mubr.msk.bf16.vlgmr.msra.gmra.mrb[136].mxu0 %vm1671_vm1, %v6438_v0 }
 0x60a   : > { %5300 = vmatpush1.bf16.msra.mxu0 %v8877_v55  ;;  %5331 = vmatprep.mubr.bf16.mxu0 %v9274_v3 }
 0x60b   : > { %5301 = vmatprep.subr.bf16.mxu0 %v8889_v42 }
 0x60e   : > { %5302 = vmatpush1.bf16.msra.mxu0 %v8886_v21 }
 0x60f   : > { %5303 = vmatprep.subr.bf16.mxu0 %v8897_v2  ;;  %v5639_v2 = vpop.permute.xlu0 %5638 }
 0x612   : > { %5304 = vmatpush1.bf16.msra.mxu0 %v8894_v56  ;;  %v5519_v56 = vrot.slane %v8952_v53, 7 }
 0x613   : > { %5305 = vmatprep.subr.bf16.mxu0 %v8905_v43  ;;  %v5434_v1 = vpop.permute.xlu0 %5433 }
 0x614   : > { %v5521_v16 = vsel %vm5520_vm10, %v5519_v56, %v8952_v53  ;;  %v5435_v60 = vrot.slane %v5434_v1, 7 }
 0x616   : > { %5306 = vmatpush1.bf16.msra.mxu0 %v8902_v31  ;;  %v5640_v31 = vrot.slane %v5639_v2, 7  ;;  %v5436_v44 = vsel %vm5418_vm12, %v5435_v60, %v5434_v1 }
 0x618   : > { %v5642_v48 = vsel %vm5641_vm11, %v5640_v31, %v5639_v2 }
 0x619   : > { %6172 = vmatmul.mubr.msk.bf16.vlgmr.msra.gmra.mrb[140].mxu0 %vm1671_vm1, %v6439_v6  ;;  %vm5820_vm1 = vcmask 1041408  }
 0x62f   : > { %v5600_v26 = vpop.permute.xlu1 %5599 }
 0x630   : > { %v5535_v9 = vpop.permute.xlu0 %5534 }
 0x633   : > { %v5681_v14 = vpop.permute.xlu1 %5680 }
 0x634   : > { %v5560_v63 = vpop.permute.xlu0 %5559 }
 0x6cc   : > { %v4861_v3 = vpop.f32.mrb[132].mxu0 }
 0x6cd   : > { %4871 = vst [vmem:[#allocation3 + $0x48] sm:$0xff] %v4861_v3  ;;  %v4863_v52 = vpop.f32.mrb[133].mxu0  ;;  %v5601_v3 = vrot.slane %v5600_v26, 7 }
 0x6ce   : > { %4872 = vst [vmem:[#allocation3 + $0x50] sm:$0xff] %v4863_v52  ;;  %v4865_v10 = vpop.f32.mrb[134].mxu0 }
 0x6cf   : > { %4873 = vst [vmem:[#allocation3 + $0x68] sm:$0x1] %v4865_v10  ;;  %v4867_v4 = vpop.f32.mrb[135].mxu0 }
 0x6d0   : > { %4874 = vst [vmem:[#allocation3 + $0x70] sm:$0x1] %v4867_v4  ;;  %v5536_v4 = vrot.slane %v5535_v9, 7 }
 0x6d5   : > { %v5606_v8 = vld [vmem:[#allocation3 + $0x4a] ss:$8 sm:$0x3]  ;;  %v5541_v22 = vld [vmem:[#allocation3 + $0x4c] ss:$8 sm:$0x3] }
 0x6d6   : > { %5608 = vrot.lane.b32.xlu1 %v5606_v8, %s6520_s10  ;;  %5543 = vrot.lane.b32.xlu0 %v5541_v22, %s6521_s13  ;;  %v5637_v19 = vld [vmem:[#allocation3 + $0x4e] ss:$8 sm:$0x7]  ;;  %v5712_v23 = vld [vmem:[#allocation3 + $0x4f] ss:$8 sm:$0x7] }
 0x6d7   : > { %v5644_v57 = vmul.f32 %v5642_v48, %v5637_v19  ;;  %v5662_v45 = vld [vmem:[#allocation3 + $0x68] ss:$8 sm:$0x7]  ;;  %v5432_v37 = vld [vmem:[#allocation3 + $0x43] ss:$8 sm:$0x7] }
 0x6d8   : > { %v5438_v39 = vmul.f32 %v5436_v44, %v5432_v37  ;;  %v5457_v36 = vld [vmem:[#allocation3 + $0x4d] ss:$8 sm:$0x3]  ;;  %v5593_v0 = vld [vmem:[#allocation3 + $0x40] ss:$8 sm:$0x7] }
 0x6dc   : > { %v5097_v55 = vpop.f32.mrb[136].mxu0 }
 0x6dd   : > { %5107 = vst [vmem:[#allocation3 + $0x88] sm:$0xff] %v5097_v55  ;;  %v5099_v47 = vpop.f32.mrb[137].mxu0 }
 0x6de   : > { %5108 = vst [vmem:[#allocation3 + $0x90] sm:$0xff] %v5099_v47  ;;  %v5101_v21 = vpop.f32.mrb[138].mxu0  ;;  %v5594_v47 = vmul.f32 %v5593_v0, %v5436_v44  ;;  %v9378_v0 = vld [vmem:[#allocation5_spill] sm:$0xff] }
 0x6df   : > { %5109 = vst [vmem:[#allocation3 + $0xa8] sm:$0x1] %v5101_v21  ;;  %v5103_v42 = vpop.f32.mrb[139].mxu0 }
 0x6e0   : > { %5110 = vst [vmem:[#allocation3 + $0xb0] sm:$0x1] %v5103_v42 }
 0x6e5   : > { %v5619_v43 = vld [vmem:[#allocation3 + $0x8c] ss:$8 sm:$0x3]  ;;  %v5566_v28 = vld [vmem:[#allocation3 + $0x8e] ss:$8 sm:$0x3] }
 0x6e6   : > { %5621 = vrot.lane.b32.xlu1 %v5619_v43, %s6520_s10  ;;  %5568 = vrot.lane.b32.xlu0 %v5566_v28, %s6521_s13  ;;  %v5499_v7 = vld [vmem:[#allocation3 + $0x82] ss:$8 sm:$0x7]  ;;  %v5693_v20 = vld [vmem:[#allocation3 + $0x8d] ss:$8 sm:$0x7]  ;;  %v5602_v43 = vsel %vm5418_vm12, %v5601_v3, %v5600_v26  ;;  %v5537_v28 = vsel %vm5443_vm13, %v5536_v4, %v5535_v9 }
 0x6e7   : > { %v5523_v50 = vmul.f32 %v5521_v16, %v5499_v7  ;;  %v5694_v27 = vmul.f32 %v5693_v20, %v8954_v5  ;;  %v5584_v59 = vld [vmem:[#allocation3 + $0xa8] ss:$8 sm:$0x7]  ;;  %v5413_v35 = vld [vmem:[#allocation3 + $0x81] ss:$8 sm:$0x7] }
 0x6e8   : > { %v5585_v40 = vmul.f32 %v5584_v59, %v8954_v5  ;;  %v5448_v5 = vld [vmem:[#allocation3 + $0xc] ss:$8 sm:$0x3]  ;;  %v5476_v33 = vld [vmem:[#allocation3 + $0x8f] ss:$8 sm:$0x3] }
 0x6e9   : > { %v5493_v22 = vld [vmem:[#allocation3 + $0x80] ss:$8 sm:$0x7] }
 0x6ea   : > { %5655 = vrot.lane.b32.xlu1 %v5653_v61, %s6522_s14  ;;  %5525 = vrot.lane.b32.xlu0 %v5523_v50, %s6520_s10  ;;  %v5604_v50 = vadd.f32 %v5602_v43, %v5594_v47  ;;  %v9071_v43 = vsub.s32 2, %v9378_v0 }
 0x6ec   : > { %v5333_v41 = vpop.f32.mrb[140].mxu0 }
 0x6ed   : > { %5343 = vst [vmem:[#allocation3 + $0xc8] sm:$0xff] %v5333_v41  ;;  %v5335_v25 = vpop.f32.mrb[141].mxu0 }
 0x6ee   : > { %5344 = vst [vmem:[#allocation3 + $0xd0] sm:$0xff] %v5335_v25  ;;  %5714 = vrot.lane.b32.xlu1 %v5712_v23, %s6521_s13  ;;  %5646 = vrot.lane.b32.xlu0 %v5644_v57, %s6521_s13  ;;  %v5337_v53 = vpop.f32.mrb[142].mxu0  ;;  %v5561_v25 = vrot.slane %v5560_v63, 7 }
 0x6ef   : > { %5345 = vst [vmem:[#allocation3 + $0xe8] sm:$0x1] %v5337_v53  ;;  %v5339_v54 = vpop.f32.mrb[143].mxu0  ;;  %v5674_v53 = vld [vmem:[#allocation3 + $0x49] ss:$8 sm:$0x3] }
 0x6f0   : > { %5346 = vst [vmem:[#allocation3 + $0xf0] sm:$0x1] %v5339_v54 }
 0x6f2   : > { %5696 = vrot.lane.b32.xlu1 %v5694_v27, %s6520_s10  ;;  %5705 = vrot.lane.b32.xlu0 %v5703_v15, %s6521_s13  ;;  %v5682_v15 = vrot.slane %v5681_v14, 1 }
 0x6f5   : > { %v5628_v34 = vld [vmem:[#allocation3 + $0xcd] ss:$8 sm:$0x3]  ;;  %v5575_v29 = vld [vmem:[#allocation3 + $0xcf] ss:$8 sm:$0x3] }
 0x6f6   : > { %5630 = vrot.lane.b32.xlu1 %v5628_v34, %s6520_s10  ;;  %5587 = vrot.lane.b32.xlu0 %v5585_v40, %s6522_s14  ;;  %v5423_v62 = vld [vmem:[#allocation3 + $0xc2] ss:$8 sm:$0x7]  ;;  %v5466_v17 = vld [vmem:[#allocation3 + $0xc6] ss:$8 sm:$0x7]  ;;  %v5675_v34 = vadd.f32 %v5674_v53, %v5671_v30 }
 0x6f7   : > { %v5485_v49 = vld [vmem:[#allocation3 + $0xe8] ss:$8 sm:$0x3]  ;;  %v5496_v6 = vld [vmem:[#allocation3 + $0xc1] ss:$8 sm:$0x7] }
 0x6f8   : > { %v5497_v21 = vadd.f32 %v5496_v6, %v5493_v22  ;;  %v5615_v61 = vld [vmem:[#allocation3 + $0xc3] ss:$8 sm:$0x7]  ;;  %v5690_v26 = vld [vmem:[#allocation3 + $0xcc] ss:$8 sm:$0x3] }
 0x6f9   : > { %v5616_v54 = vmul.f32 %v5615_v61, %v5436_v44  ;;  %v9061_v6 = vsub.s32 0, %v9378_v0 }
 0x6fa   : > { %5577 = vrot.lane.b32.xlu1 %v5575_v29, %s6521_s13  ;;  %5664 = vrot.lane.b32.xlu0 %v5662_v45, %s6522_s14  ;;  %v5562_v29 = vsel %vm5407_vm14, %v5561_v25, %v5560_v63 }
 0x6fe   : > { %5404 = vrot.lane.b32.xlu0 %v8944_v32, %s6522_s14  ;;  %5729 = vrot.lane.b32.xlu1 %v5727_v58, %s6522_s14  ;;  %v5467_v32 = vmul.f32 %v5466_v17, %v5436_v44 }
 0x702   : > { %5450 = vrot.lane.b32.xlu0 %v5448_v5, %s6522_s14  ;;  %5415 = vrot.lane.b32.xlu1 %v5413_v35, %s6520_s10  ;;  %v5683_v5 = vsel %vm5418_vm12, %v5681_v14, %v5682_v15 }
 0x703   : > { %v5685_v37 = vadd.f32 %v5683_v5, %v5675_v34 }
 0x706   : > { %5425 = vrot.lane.b32.xlu0 %v5423_v62, %s6520_s10  ;;  %5440 = vrot.lane.b32.xlu1 %v5438_v39, %s6521_s13  ;;  %v5687_v39 = vld [vmem:[#allocation3 + $0x8b] ss:$8 sm:$0x3] }
 0x707   : > { %v5688_v14 = vadd.f32 %v5687_v39, %v5685_v37 }
 0x70a   : > { %5459 = vrot.lane.b32.xlu1 %v5457_v36, %s6522_s14  ;;  %5469 = vrot.lane.b32.xlu0 %v5467_v32, %s6521_s13 }
 0x70e   : > { %5478 = vrot.lane.b32.xlu1 %v5476_v33, %s6522_s14  ;;  %5487 = vrot.lane.b32.xlu0 %v5485_v49, %s6522_s14 }
 0x712   : > { %5835 = vperm.xlu1 %6365, %v6177_v12  }
 0x748   : > { %v5609_v46 = vpop.permute.xlu1 %5608  ;;  %v5544_v38 = vpop.permute.xlu0 %5543 }
 0x749   : > { %v5610_v8 = vrot.slane %v5609_v46, 7  ;;  %v5545_v16 = vrot.slane %v5544_v38, 7 }
 0x74b   : > { %v5611_v7 = vsel %vm5418_vm12, %v5610_v8, %v5609_v46  ;;  %v5546_v20 = vsel %vm5443_vm13, %v5545_v16, %v5544_v38 }
 0x74c   : > { %v5613_v41 = vadd.f32 %v5611_v7, %v5604_v50 }
 0x74e   : > { %v5617_v40 = vadd.f32 %v5616_v54, %v5613_v41 }
 0x758   : > { %v5622_v13 = vpop.permute.xlu1 %5621  ;;  %v5569_v51 = vpop.permute.xlu0 %5568 }
 0x759   : > { %v5623_v19 = vrot.slane %v5622_v13, 7  ;;  %v5570_v18 = vrot.slane %v5569_v51, 7 }
 0x75b   : > { %v5624_v59 = vsel %vm5418_vm12, %v5623_v19, %v5622_v13  ;;  %v5571_v35 = vsel %vm5443_vm13, %v5570_v18, %v5569_v51 }
 0x75c   : > { %v9042_v52 = vpop.permute.xlu1 %5655  ;;  %v5526_v10 = vpop.permute.xlu0 %5525  ;;  %v5626_v1 = vadd.f32 %v5624_v59, %v5617_v40 }
 0x75d   : > { %v5527_v55 = vrot.slane %v5526_v10, 1  ;;  %v5657_v36 = vrot.slane %v9042_v52, 7 }
 0x75f   : > { %v5528_v42 = vsel %vm5418_vm12, %v5526_v10, %v5527_v55  ;;  %v5658_v3 = vsel %vm5407_vm14, %v5657_v36, %v9042_v52  ;;  %v5691_v10 = vadd.f32 %v5690_v26, %v5688_v14 }
 0x760   : > { %v5530_v56 = vadd.f32 %v5528_v42, %v5497_v21  ;;  %v9045_v2 = vpop.permute.xlu1 %5714  ;;  %v5647_v31 = vpop.permute.xlu0 %5646  ;;  %v9067_v21 = vsub.s32 1, %v9378_v0 }
 0x761   : > { %v5648_v45 = vrot.slane %v5647_v31, 7 }
 0x762   : > { %v5539_v48 = vadd.f32 %v5537_v28, %v5530_v56 }
 0x763   : > { %v5649_v33 = vsel %vm5443_vm13, %v5648_v45, %v5647_v31  ;;  %v5716_v31 = vrot.slane %v9045_v2, 1 }
 0x764   : > { %v5697_v23 = vpop.permute.xlu1 %5696  ;;  %v5706_v57 = vpop.permute.xlu0 %5705  ;;  %v5548_v27 = vadd.f32 %v5546_v20, %v5539_v48 }
 0x765   : > { %v5698_v62 = vrot.slane %v5697_v23, 1  ;;  %v5707_v22 = vrot.slane %v5706_v57, 1  ;;  %v5717_v41 = vsel %vm5443_vm13, %v9045_v2, %v5716_v31 }
 0x766   : > { %v5564_v60 = vadd.f32 %v5562_v29, %v5548_v27  ;;  %v5386_v29 = vld [vmem:[#allocation3 + $0xc0] ss:$8 sm:$0x7] }
 0x767   : > { %v5699_v13 = vsel %vm5418_vm12, %v5697_v23, %v5698_v62  ;;  %v5708_v7 = vsel %vm5443_vm13, %v5706_v57, %v5707_v22 }
 0x768   : > { %v5631_v11 = vpop.permute.xlu1 %5630  ;;  %v5588_v24 = vpop.permute.xlu0 %5587  ;;  %v5573_v63 = vadd.f32 %v5571_v35, %v5564_v60  ;;  %v5701_v42 = vadd.f32 %v5699_v13, %v5691_v10 }
 0x769   : > { %v5632_v58 = vrot.slane %v5631_v11, 7  ;;  %v5589_v49 = vrot.slane %v5588_v24, 7 }
 0x76a   : > { %v5710_v61 = vadd.f32 %v5708_v7, %v5701_v42 }
 0x76b   : > { %v5633_v44 = vsel %vm5418_vm12, %v5632_v58, %v5631_v11  ;;  %v5590_v4 = vsel %vm5407_vm14, %v5589_v49, %v5588_v24 }
 0x76c   : > { %v5635_v17 = vadd.f32 %v5633_v44, %v5626_v1  ;;  %v5578_v32 = vpop.permute.xlu1 %5577  ;;  %v5665_v46 = vpop.permute.xlu0 %5664  ;;  %v5719_v20 = vadd.f32 %v5717_v41, %v5710_v61 }
 0x76d   : > { %v5579_v12 = vrot.slane %v5578_v32, 7  ;;  %v5666_v8 = vrot.slane %v5665_v46, 7 }
 0x76e   : > { %v5651_v9 = vadd.f32 %v5649_v33, %v5635_v17 }
 0x76f   : > { %v5580_v38 = vsel %vm5443_vm13, %v5579_v12, %v5578_v32  ;;  %v5667_v28 = vsel %vm5407_vm14, %v5666_v8, %v5665_v46 }
 0x770   : > { %v5582_v51 = vadd.f32 %v5580_v38, %v5573_v63  ;;  %v5660_v47 = vadd.f32 %v5658_v3, %v5651_v9  ;;  %v5730_v56 = vpop.permute.xlu1 %5729  ;;  %v5405_v15 = vpop.permute.xlu0 %5404 }
 0x771   : > { %v5731_v50 = vrot.slane %v5730_v56, 1  ;;  %v5406_v40 = vrot.slane %v5405_v15, 7 }
 0x772   : > { %v5592_v55 = vadd.f32 %v5590_v4, %v5582_v51  ;;  %v5669_v16 = vadd.f32 %v5667_v28, %v5660_v47 }
 0x773   : > { %v5732_v25 = vsel %vm5407_vm14, %v5730_v56, %v5731_v50  ;;  %v5408_v11 = vsel %vm5407_vm14, %v5406_v40, %v5405_v15 }
 0x774   : > { %v5755_v52 = vrot.slane %v5592_v55, %v9061_v6  ;;  %v5759_v48 = vrot.slane %v5592_v55, %v9067_v21  ;;  %v5763_v19 = vrot.slane %v5592_v55, %v9071_v43  ;;  %v5779_v23 = vrot.slane %v5669_v16, %v9061_v6  ;;  %v5451_v59 = vpop.permute.xlu0 %5450  ;;  %v5416_v30 = vpop.permute.xlu1 %5415 }
 0x775   : > { %v5783_v57 = vrot.slane %v5669_v16, %v9067_v21  ;;  %v5734_v53 = vadd.f32 %v5732_v25, %v5719_v20  ;;  %v5787_v54 = vrot.slane %v5669_v16, %v9071_v43  ;;  %v5417_v34 = vrot.slane %v5416_v30, 1 }
 0x776   : > { %5764 = vrot.lane.b32.xlu0 %v5755_v52, %s6520_s10  ;;  %5766 = vrot.lane.b32.xlu1 %v5759_v48, %s6520_s10  ;;  %v5410_v58 = vmul.f32 %v5408_v11, %v5386_v29  ;;  %v5452_v37 = vrot.slane %v5451_v59, 7 }
 0x777   : > { %v5803_v2 = vrot.slane %v5734_v53, %v9061_v6  ;;  %v5807_v27 = vrot.slane %v5734_v53, %v9067_v21  ;;  %v5419_v45 = vsel %vm5418_vm12, %v5416_v30, %v5417_v34 }
 0x778   : > { %v5426_v18 = vpop.permute.xlu0 %5425  ;;  %v5441_v1 = vpop.permute.xlu1 %5440  ;;  %v5421_v5 = vadd.f32 %v5419_v45, %v5410_v58  ;;  %v5453_v32 = vsel %vm5407_vm14, %v5452_v37, %v5451_v59 }
 0x779   : > { %v5427_v24 = vrot.slane %v5426_v18, 1  ;;  %v5442_v44 = vrot.slane %v5441_v1, 1 }
 0x77a   : > { %5768 = vrot.lane.b32.xlu0 %v5763_v19, %s6520_s10  ;;  %5788 = vrot.lane.b32.xlu1 %v5779_v23, %s6521_s13 }
 0x77b   : > { %v5428_v60 = vsel %vm5418_vm12, %v5426_v18, %v5427_v24  ;;  %v5444_v39 = vsel %vm5443_vm13, %v5441_v1, %v5442_v44 }
 0x77c   : > { %v5430_v35 = vadd.f32 %v5428_v60, %v5421_v5  ;;  %v5460_v17 = vpop.permute.xlu1 %5459  ;;  %v5470_v49 = vpop.permute.xlu0 %5469 }
 0x77d   : > { %v5461_v36 = vrot.slane %v5460_v17, 7  ;;  %v5471_v26 = vrot.slane %v5470_v49, 1 }
 0x77e   : > { %5790 = vrot.lane.b32.xlu0 %v5783_v57, %s6521_s13  ;;  %5792 = vrot.lane.b32.xlu1 %v5787_v54, %s6521_s13  ;;  %v5446_v62 = vadd.f32 %v5444_v39, %v5430_v35 }
 0x77f   : > { %v5462_v12 = vsel %vm5407_vm14, %v5461_v36, %v5460_v17  ;;  %v5472_v46 = vsel %vm5443_vm13, %v5470_v49, %v5471_v26 }
 0x780   : > { %v5455_v33 = vadd.f32 %v5453_v32, %v5446_v62  ;;  %v5479_v63 = vpop.permute.xlu1 %5478  ;;  %v5488_v38 = vpop.permute.xlu0 %5487 }
 0x781   : > { %v5480_v14 = vrot.slane %v5479_v63, 7  ;;  %v5489_v3 = vrot.slane %v5488_v38, 7 }
 0x782   : > { %5808 = vrot.lane.b32.xlu0 %v5803_v2, %s6522_s14  ;;  %5810 = vrot.lane.b32.xlu1 %v5807_v27, %s6522_s14  ;;  %v5464_v9 = vadd.f32 %v5462_v12, %v5455_v33 }
 0x783   : > { %v5481_v0 = vsel %vm5407_vm14, %v5480_v14, %v5479_v63  ;;  %v5490_v22 = vsel %vm5407_vm14, %v5489_v3, %v5488_v38 }
 0x784   : > { %v5474_v13 = vadd.f32 %v5472_v46, %v5464_v9 }
 0x786   : > { %v5483_v4 = vadd.f32 %v5481_v0, %v5474_v13 }
 0x788   : > { %v5492_v47 = vadd.f32 %v5490_v22, %v5483_v4 }
 0x78a   : > { %v5739_v28 = vrot.slane %v5492_v47, %v9061_v6  ;;  %v5747_v16 = vrot.slane %v5492_v47, %v9071_v43  ;;  %v5743_v48 = vrot.slane %v5492_v47, %v9067_v21 }
 0x791   : > { %v5836_v51 = vpop.permute.xlu1 %5835 }
 0x7e8   : > { %v5765_v10 = vpop.permute.xlu0 %5764  ;;  %v5767_v8 = vpop.permute.xlu1 %5766 }
 0x7e9   : > { %v5770_v56 = vsel %vm5418_vm12, %v5765_v10, %v5767_v8 }
 0x7ea   : > { %v5817_v61 = vsel %vm5816_vm15, %v5739_v28, %v5770_v56 }
 0x7ec   : > { %v5769_v55 = vpop.permute.xlu0 %5768  ;;  %v5789_v42 = vpop.permute.xlu1 %5788 }
 0x7ed   : > { %v5771_v50 = vsel %vm5418_vm12, %v5767_v8, %v5769_v55  ;;  %v5819_v41 = vsel %vm5816_vm15, %v5747_v16, %v5769_v55 }
 0x7ee   : > { %v5818_v6 = vsel %vm5816_vm15, %v5743_v48, %v5771_v50 }
 0x7f0   : > { %v5791_v31 = vpop.permute.xlu0 %5790  ;;  %v5793_v7 = vpop.permute.xlu1 %5792 }
 0x7f1   : > { %v5794_v52 = vsel %vm5443_vm13, %v5789_v42, %v5791_v31  ;;  %v5795_v19 = vsel %vm5443_vm13, %v5791_v31, %v5793_v7  ;;  %v5823_v20 = vsel %vm5820_vm1, %v5819_v41, %v5793_v7 }
 0x7f2   : > { %v5821_v25 = vsel %vm5820_vm1, %v5817_v61, %v5794_v52  ;;  %v5822_v54 = vsel %vm5820_vm1, %v5818_v6, %v5795_v19 }
 0x7f4   : > { %v5809_v23 = vpop.permute.xlu0 %5808  ;;  %v5811_v53 = vpop.permute.xlu1 %5810 }
 0x7f5   : > { %v5825_v57 = vsel %vm5824_vm2, %v5821_v25, %v5809_v23  ;;  %v5812_v2 = vsel %vm5407_vm14, %v5809_v23, %v5811_v53  ;;  %v5827_v27 = vsel %vm5824_vm2, %v5823_v20, %v5811_v53 }
 0x7f6   : > { %v5838_v43 = vadd.f32 %v5836_v51, %v5825_v57  ;;  %v5826_v15 = vsel %vm5824_vm2, %v5822_v54, %v5812_v2  ;;  %v5840_v21 = vadd.f32 %v5836_v51, %v5827_v27 }
 0x7f7   : > { %v5839_v30 = vadd.f32 %v5836_v51, %v5826_v15 }
 0x7f8   : > { %v5841_v59 = vsub.f32 0.0, %v5838_v43  ;;  %v5843_v40 = vsub.f32 0.0, %v5840_v21 }
 0x7f9   : > { %v5842_v34 = vsub.f32 0.0, %v5839_v30 }
 0x7fa   : > { %v5844_v18 = vmul.f32 1.442695, %v5841_v59  ;;  %v5848_v11 = vmul.f32 1.442695, %v5843_v40 }
 0x7fb   : > { %v5846_v24 = vmul.f32 1.442695, %v5842_v34 }
 0x7fc   : > { %6440 = vpow2.f32 %v5844_v18 }
 0x7fd   : > { %6442 = vpow2.f32 %v5848_v11 }
 0x7fe   : > { %6444 = vpow2.f32 %v5846_v24 }
 0x806   : > { %v6441_v29 = vpop.eup %6440 }
 0x807   : > { %v6443_v45 = vpop.eup %6442  ;;  %v5850_v58 = vadd.f32 1.0, %v6441_v29 }
 0x808   : > { %v6445_v1 = vpop.eup %6444  ;;  %v5852_v60 = vadd.f32 1.0, %v6443_v45 }
 0x809   : > { %6446 = vrcp.f32 %v5850_v58  ;;  %v5851_v5 = vadd.f32 1.0, %v6445_v1 }
 0x80a   : > { %6448 = vrcp.f32 %v5852_v60 }
 0x80b   : > { %6450 = vrcp.f32 %v5851_v5 }
 0x813   : > { %v6447_v44 = vpop.eup %6446 }
 0x814   : > { %v6449_v35 = vpop.eup %6448 }
 0x815   : > { %v6451_v37 = vpop.eup %6450  ;;  %5862 = vrot.lane.b32.xlu1 %v6449_v35, %s6518_s18 }
 0x816   : > { %v5859_v39 = vcombine.low %v6447_v44, %v6451_v37 }
 0x818   : > { %5860 = vrot.lane.b32.xlu0 %v5859_v39, %s6518_s18 }
 0x887   : > { %v5863_v62 = vpop.permute.xlu1 %5862 }
 0x888   : > { %v5865_v32 = vrot.slane %v5863_v62, 4 }
 0x88a   : > { %v5861_v17 = vpop.permute.xlu0 %5860 }
 0x88b   : > { %v5864_v36 = vrot.slane %v5861_v17, 4 }
 0x88d   : > { %v5866_v33 = vsel %vm651_vm0, %v5864_v36, %v5865_v32 }
 0x88e   : > { %v5867_v49 = vsel %vm466_vm6, %v5861_v17, %v5866_v33 }
 0x88f   : > { %5869 = vst [vmem:[%s334_s23] sm:$0xff] %v5867_v49 }
 0x890 PF: > { %s21_s11 = sadd.s32 1, %s6509_s11  }
 0x891   : > { %p18_p4 = scmp.ge.s32.totalorder %s21_s11, 4  }
 0x893   :  { %20 = sbr.rel (!%p18_p4) target bundleno = 3 (0x3), region = 130 }

</bundles_post_ra>
